<compile_context>
chip_gen: v6e
topology: v6e:2x2x1
jax: 0.10.0
libtpu: 0.0.40
codegen_flags: <defaults>
</compile_context>

<pallas_src>
import functools
import math

import jax
import jax.numpy as jnp
from jax.experimental import pallas as pl
from jax.experimental.pallas import tpu as pltpu

# Static SRCNN architecture constants.
K1, K2, K3 = 9, 5, 5          # kernel sizes
C1, C2 = 64, 32               # channel widths of layers 1 and 2
PAD1, PAD2, PAD3 = 4, 2, 2    # 'same' padding of each layer


def _make_fused_srcnn_kernel(H, W, compute_dtype):
    """Fused features -> map -> reconstruction kernel for one batch element."""
    HW = H * W

    def kernel(patches_ref, w1_ref, b1_ref, w2_ref, b2_ref, w3_ref, b3_ref,
               o_ref, a1_ref, a2_ref):
        # patches_ref: (1, HW, 81)   im2col of the 9x9 conv (compute_dtype)
        # w1_ref: (81, 64)           w2_ref: (5, 320, 32)      w3_ref: (5, 160, 8)
        # b*_ref: f32 biases         o_ref: (1, HW, 1) f32
        # a1_ref: (H+4, W+4, 64) f32 VMEM scratch (pad=2 halo for layer 2)
        # a2_ref: (H+4, W+4, 32) f32 VMEM scratch (pad=2 halo for layer 3)

        # ---- layer 1: features = ReLU(conv 9x9, 1 -> 64) as one K=81 MXU matmul.
        y1 = jnp.dot(patches_ref[0], w1_ref[...],
                     preferred_element_type=jnp.float32)            # (HW, 64) f32
        y1 = jnp.maximum(y1 + b1_ref[...], 0.0)
        a1_ref[...] = jnp.zeros_like(a1_ref)                         # zero the halo
        a1_ref[PAD2:PAD2 + H, PAD2:PAD2 + W, :] = y1.reshape(H, W, C1)

        # ---- layer 2: map = ReLU(conv 5x5, 64 -> 32); kw taps stacked along K=320.
        def l2_body(kh, acc):
            patch = jnp.concatenate(
                [a1_ref[pl.ds(kh, H), pl.ds(kw, W), :] for kw in range(K2)],
                axis=-1)                                             # (H, W, 5*64)
            patch = patch.reshape(HW, K2 * C1).astype(compute_dtype)
            return acc + jnp.dot(patch, w2_ref[kh],
                                 preferred_element_type=jnp.float32)

        acc2 = jax.lax.fori_loop(0, K2, l2_body,
                                 jnp.zeros((HW, C2), jnp.float32))
        y2 = jnp.maximum(acc2 + b2_ref[...], 0.0)
        a2_ref[...] = jnp.zeros_like(a2_ref)
        a2_ref[PAD3:PAD3 + H, PAD3:PAD3 + W, :] = y2.reshape(H, W, C2)

        # ---- layer 3: reconstruction = conv 5x5, 32 -> 1 (no ReLU); kw taps stacked
        #      along K=160, Cout zero-padded to 8 lanes for friendlier dot/store shapes.
        def l3_body(kh, acc):
            patch = jnp.concatenate(
                [a2_ref[pl.ds(kh, H), pl.ds(kw, W), :] for kw in range(K3)],
                axis=-1)                                             # (H, W, 5*32)
            patch = patch.reshape(HW, K3 * C2).astype(compute_dtype)
            return acc + jnp.dot(patch, w3_ref[kh],
                                 preferred_element_type=jnp.float32)

        acc3 = jax.lax.fori_loop(0, K3, l3_body,
                                 jnp.zeros((HW, 8), jnp.float32))
        o_ref[...] = (acc3[:, :1] + b3_ref[...])[None]               # (1, HW, 1)

    return kernel


def srcnn_forward(x_nchw, params, compute_dtype=jnp.bfloat16):
    """SRCNN forward pass. x_nchw: (N, 1, H, W) f32 -> (N, 1, H, W) f32."""
    (w1, b1), (w2, b2), (w3, b3) = params
    N, cin, H, W = x_nchw.shape
    assert cin == 1
    HW = H * W

    # Layer-1 im2col, done by XLA on the tiny 1-channel input: (N, HW, 81), tap-major
    # index t = kh*9 + kw, matching w1's (kh, kw) flattening below.
    xp = jnp.pad(x_nchw.reshape(N, H, W), ((0, 0), (PAD1, PAD1), (PAD1, PAD1)))
    patches = jnp.stack(
        [xp[:, kh:kh + H, kw:kw + W].reshape(N, HW)
         for kh in range(K1) for kw in range(K1)],
        axis=-1).astype(compute_dtype)

    # K-major weight layouts for the in-kernel dots.
    w1m = w1.reshape(K1 * K1, C1).astype(compute_dtype)               # (81, 64)
    w2m = w2.reshape(K2, K2 * C1, C2).astype(compute_dtype)           # (5, 320, 32)
    w3m = jnp.pad(w3.reshape(K3, K3 * C2, 1),
                  ((0, 0), (0, 0), (0, 7))).astype(compute_dtype)     # (5, 160, 8)
    b1m = b1.reshape(1, C1).astype(jnp.float32)
    b2m = b2.reshape(1, C2).astype(jnp.float32)
    b3m = b3.reshape(1, 1).astype(jnp.float32)

    kernel = _make_fused_srcnn_kernel(H, W, compute_dtype)
    out = pl.pallas_call(
        kernel,
        out_shape=jax.ShapeDtypeStruct((N, HW, 1), jnp.float32),
        grid_spec=pltpu.PrefetchScalarGridSpec(
            num_scalar_prefetch=0,
            grid=(N,),
            in_specs=[
                pl.BlockSpec((1, HW, K1 * K1), lambda n: (n, 0, 0)),   # im2col patches
                pl.BlockSpec((K1 * K1, C1), lambda n: (0, 0)),         # w1
                pl.BlockSpec((1, C1), lambda n: (0, 0)),               # b1
                pl.BlockSpec((K2, K2 * C1, C2), lambda n: (0, 0, 0)),  # w2 (kw-stacked)
                pl.BlockSpec((1, C2), lambda n: (0, 0)),               # b2
                pl.BlockSpec((K3, K3 * C2, 8), lambda n: (0, 0, 0)),   # w3 (Cout padded)
                pl.BlockSpec((1, 1), lambda n: (0, 0)),                # b3
            ],
            out_specs=pl.BlockSpec((1, HW, 1), lambda n: (n, 0, 0)),
            scratch_shapes=[
                pltpu.VMEM((H + 2 * PAD2, W + 2 * PAD2, C1), jnp.float32),  # a1 padded
                pltpu.VMEM((H + 2 * PAD3, W + 2 * PAD3, C2), jnp.float32),  # a2 padded
            ]),
        compiler_params=pltpu.CompilerParams(
            dimension_semantics=("parallel",),            # shard batch across v7x cores
            vmem_limit_bytes=32 * 1024 * 1024),
    )(patches, w1m, b1m, w2m, b2m, w3m, b3m)

    return out.reshape(N, H, W)[:, None, :, :]            # contiguous -> NCHW for free


def init_srcnn_params(key):
    """Deterministic synthetic init matching the PyTorch _initialize_weights() recipe."""
    k1, k2, k3 = jax.random.split(key, 3)
    # features: Conv2d(1, 64, 9x9), std = sqrt(2 / (out_channels * KH*KW)), bias = 0
    std1 = math.sqrt(2.0 / (C1 * K1 * K1))
    w1 = std1 * jax.random.normal(k1, (K1, K1, 1, C1), jnp.float32)
    b1 = jnp.zeros((C1,), jnp.float32)
    # map: Conv2d(64, 32, 5x5)
    std2 = math.sqrt(2.0 / (C2 * K2 * K2))
    w2 = std2 * jax.random.normal(k2, (K2, K2, C1, C2), jnp.float32)
    b2 = jnp.zeros((C2,), jnp.float32)
    # reconstruction: Conv2d(32, 1, 5x5), re-initialized with std 0.001
    w3 = 0.001 * jax.random.normal(k3, (K3, K3, C2, 1), jnp.float32)
    b3 = jnp.zeros((1,), jnp.float32)
    return (w1, b1), (w2, b2), (w3, b3)


def _reference_forward(x_nchw, params):
    """Pure-JAX reference (lax conv, f32 HIGHEST) for the correctness check."""
    (w1, b1), (w2, b2), (w3, b3) = params
    dn = ("NHWC", "HWIO", "NHWC")

    def conv(x, w, b, pad, relu):
        y = jax.lax.conv_general_dilated(
            x, w, window_strides=(1, 1), padding=[(pad, pad), (pad, pad)],
            dimension_numbers=dn, precision=jax.lax.Precision.HIGHEST) + b
        return jnp.maximum(y, 0.0) if relu else y

    x = jnp.transpose(x_nchw, (0, 2, 3, 1))
    out = conv(x, w1, b1, PAD1, True)
    out = conv(out, w2, b2, PAD2, True)
    out = conv(out, w3, b3, PAD3, False)
    return jnp.transpose(out, (0, 3, 1, 2))


if __name__ == "__main__":
    key = jax.random.PRNGKey(0)
    kx, kp = jax.random.split(key)
    # PyTorch SRCNN expects NCHW single-channel images.
    x = jax.random.normal(kx, (2, 1, 16, 16), jnp.float32)
    params = init_srcnn_params(kp)

    fwd = jax.jit(srcnn_forward)                                        # bf16 MXU operands
    fwd_f32 = jax.jit(functools.partial(srcnn_forward,
                                        compute_dtype=jnp.float32))     # exact-structure path

    y = jax.block_until_ready(fwd(x, params))
    y_f32 = jax.block_until_ready(fwd_f32(x, params))
    assert y.shape == (2, 1, 16, 16) and y.dtype == jnp.float32

    y_ref = _reference_forward(x, params)
    # f32-operand kernel validates the fused-kernel structure tightly.
    assert bool(jnp.allclose(y_f32, y_ref, atol=1e-4, rtol=1e-4))
    # Default bf16-operand / f32-accumulation fast path at the original tolerance.
    assert bool(jnp.allclose(y, y_ref, atol=1e-3, rtol=1e-3))

    print("KERNEL_OK")
</pallas_src>

<mosaic_0001>
module attributes {stable_mosaic.version = 11 : i64} {
  func.func @kernel(%arg0: i32, %arg1: memref<1x256x81xbf16, #tpu.memory_space<vmem>>, %arg2: memref<81x64xbf16, #tpu.memory_space<vmem>>, %arg3: memref<1x64xf32, #tpu.memory_space<vmem>>, %arg4: memref<5x320x32xbf16, #tpu.memory_space<vmem>>, %arg5: memref<1x32xf32, #tpu.memory_space<vmem>>, %arg6: memref<5x160x8xbf16, #tpu.memory_space<vmem>>, %arg7: memref<1x1xf32, #tpu.memory_space<vmem>>, %arg8: memref<1x256x1xf32, #tpu.memory_space<vmem>>, %arg9: memref<20x20x64xf32, #tpu.memory_space<vmem>>, %arg10: memref<20x20x32xf32, #tpu.memory_space<vmem>>) attributes {dimension_semantics = [#tpu.dimension_semantics<parallel>], iteration_bounds = array<i64: 2>, scalar_prefetch = 0 : i64, scratch_operands = 2 : i64, tpu.core_type = #tpu.core_type<tc>, window_params = [{transform_indices = @transform_0, window_bounds = array<i64: 1, 256, 81>}, {pipeline_mode = #tpu.pipeline_mode<synchronous>, transform_indices = @transform_1, window_bounds = array<i64: 81, 64>}, {pipeline_mode = #tpu.pipeline_mode<synchronous>, transform_indices = @transform_2, window_bounds = array<i64: 1, 64>}, {pipeline_mode = #tpu.pipeline_mode<synchronous>, transform_indices = @transform_3, window_bounds = array<i64: 5, 320, 32>}, {pipeline_mode = #tpu.pipeline_mode<synchronous>, transform_indices = @transform_4, window_bounds = array<i64: 1, 32>}, {pipeline_mode = #tpu.pipeline_mode<synchronous>, transform_indices = @transform_5, window_bounds = array<i64: 5, 160, 8>}, {pipeline_mode = #tpu.pipeline_mode<synchronous>, transform_indices = @transform_6, window_bounds = array<i64: 1, 1>}, {transform_indices = @transform_7, window_bounds = array<i64: 1, 256, 1>}]} {
    %c0 = arith.constant 0 : index
    %c0_0 = arith.constant 0 : index
    %c0_1 = arith.constant 0 : index
    %0 = vector.load %arg1[%c0, %c0_0, %c0_1] : memref<1x256x81xbf16, #tpu.memory_space<vmem>>, vector<1x256x81xbf16>
    %1 = vector.shape_cast %0 : vector<1x256x81xbf16> to vector<256x81xbf16>
    %c0_2 = arith.constant 0 : index
    %c0_3 = arith.constant 0 : index
    %2 = vector.load %arg2[%c0_2, %c0_3] : memref<81x64xbf16, #tpu.memory_space<vmem>>, vector<81x64xbf16>
    %cst = arith.constant dense<0.000000e+00> : vector<256x64xf32>
    %3 = tpu.matmul %1, %2, %cst {dimension_numbers = #tpu.dot_dimension_numbers<[1], [0], [0], [1], [0, 0, 1, 1], [], []>} : vector<256x81xbf16>, vector<81x64xbf16>, vector<256x64xf32> -> vector<256x64xf32>
    %c0_4 = arith.constant 0 : index
    %c0_5 = arith.constant 0 : index
    %4 = vector.load %arg3[%c0_4, %c0_5] : memref<1x64xf32, #tpu.memory_space<vmem>>, vector<1x64xf32>
    %5 = vector.broadcast %4 : vector<1x64xf32> to vector<256x64xf32>
    %6 = arith.addf %3, %5 : vector<256x64xf32>
    %cst_6 = arith.constant 0.000000e+00 : f32
    %7 = vector.broadcast %cst_6 : f32 to vector<256x64xf32>
    %8 = arith.maximumf %6, %7 : vector<256x64xf32>
    %cst_7 = arith.constant 0.000000e+00 : f32
    %9 = vector.broadcast %cst_7 : f32 to vector<20x20x64xf32>
    %c0_8 = arith.constant 0 : index
    %c0_9 = arith.constant 0 : index
    %c0_10 = arith.constant 0 : index
    %10 = vector.load %arg9[%c0_8, %c0_9, %c0_10] : memref<20x20x64xf32, #tpu.memory_space<vmem>>, vector<20x20x64xf32>
    tpu.vector_store %arg9[%c0_8, %c0_9, %c0_10], %9 {strides = array<i32>} : memref<20x20x64xf32, #tpu.memory_space<vmem>>, vector<20x20x64xf32>,
    %11 = vector.shape_cast %8 : vector<256x64xf32> to vector<16x16x64xf32>
    %c2 = arith.constant 2 : index
    %c2_11 = arith.constant 2 : index
    %c0_12 = arith.constant 0 : index
    %12 = vector.load %arg9[%c2, %c2_11, %c0_12] : memref<20x20x64xf32, #tpu.memory_space<vmem>>, vector<16x16x64xf32>
    tpu.vector_store %arg9[%c2, %c2_11, %c0_12], %11 {strides = array<i32>} : memref<20x20x64xf32, #tpu.memory_space<vmem>>, vector<16x16x64xf32>,
    %cst_13 = arith.constant 0.000000e+00 : f32
    %13 = vector.broadcast %cst_13 : f32 to vector<256x32xf32>
    %c0_i32 = arith.constant 0 : i32
    %c5_i32 = arith.constant 5 : i32
    %14 = arith.addi %c0_i32, %c5_i32 : i32
    %c1_i32 = arith.constant 1 : i32
    %15 = scf.for %arg11 = %c0_i32 to %14 step %c1_i32 iter_args(%arg12 = %13) -> (vector<256x32xf32>)  : i32 {
      %34 = arith.index_cast %arg11 : i32 to index
      %c0_35 = arith.constant 0 : index
      %c0_36 = arith.constant 0 : index
      %35 = vector.load %arg9[%34, %c0_35, %c0_36] : memref<20x20x64xf32, #tpu.memory_space<vmem>>, vector<16x16x64xf32>
      %36 = arith.index_cast %arg11 : i32 to index
      %c1 = arith.constant 1 : index
      %c0_37 = arith.constant 0 : index
      %37 = vector.load %arg9[%36, %c1, %c0_37] : memref<20x20x64xf32, #tpu.memory_space<vmem>>, vector<16x16x64xf32>
      %38 = arith.index_cast %arg11 : i32 to index
      %c2_38 = arith.constant 2 : index
      %c0_39 = arith.constant 0 : index
      %39 = vector.load %arg9[%38, %c2_38, %c0_39] : memref<20x20x64xf32, #tpu.memory_space<vmem>>, vector<16x16x64xf32>
      %40 = arith.index_cast %arg11 : i32 to index
      %c3 = arith.constant 3 : index
      %c0_40 = arith.constant 0 : index
      %41 = vector.load %arg9[%40, %c3, %c0_40] : memref<20x20x64xf32, #tpu.memory_space<vmem>>, vector<16x16x64xf32>
      %42 = arith.index_cast %arg11 : i32 to index
      %c4 = arith.constant 4 : index
      %c0_41 = arith.constant 0 : index
      %43 = vector.load %arg9[%42, %c4, %c0_41] : memref<20x20x64xf32, #tpu.memory_space<vmem>>, vector<16x16x64xf32>
      %44 = tpu.concatenate %35, %37, %39, %41, %43 in 2 : vector<16x16x64xf32>, vector<16x16x64xf32>, vector<16x16x64xf32>, vector<16x16x64xf32>, vector<16x16x64xf32> -> vector<16x16x320xf32>
      %45 = vector.shape_cast %44 : vector<16x16x320xf32> to vector<256x320xf32>
      %46 = arith.truncf %45 : vector<256x320xf32> to vector<256x320xbf16>
      %47 = arith.index_cast %arg11 : i32 to index
      %c0_42 = arith.constant 0 : index
      %c0_43 = arith.constant 0 : index
      %48 = vector.load %arg4[%47, %c0_42, %c0_43] : memref<5x320x32xbf16, #tpu.memory_space<vmem>>, vector<1x320x32xbf16>
      %49 = vector.shape_cast %48 : vector<1x320x32xbf16> to vector<320x32xbf16>
      %cst_44 = arith.constant dense<0.000000e+00> : vector<256x32xf32>
      %50 = tpu.matmul %46, %49, %cst_44 {dimension_numbers = #tpu.dot_dimension_numbers<[1], [0], [0], [1], [0, 0, 1, 1], [], []>} : vector<256x320xbf16>, vector<320x32xbf16>, vector<256x32xf32> -> vector<256x32xf32>
      %51 = arith.addf %arg12, %50 : vector<256x32xf32>
      scf.yield %51 : vector<256x32xf32>
    }
    %c5_i32_14 = arith.constant 5 : i32
    %c0_15 = arith.constant 0 : index
    %c0_16 = arith.constant 0 : index
    %16 = vector.load %arg5[%c0_15, %c0_16] : memref<1x32xf32, #tpu.memory_space<vmem>>, vector<1x32xf32>
    %17 = vector.broadcast %16 : vector<1x32xf32> to vector<256x32xf32>
    %18 = arith.addf %15, %17 : vector<256x32xf32>
    %cst_17 = arith.constant 0.000000e+00 : f32
    %19 = vector.broadcast %cst_17 : f32 to vector<256x32xf32>
    %20 = arith.maximumf %18, %19 : vector<256x32xf32>
    %cst_18 = arith.constant 0.000000e+00 : f32
    %21 = vector.broadcast %cst_18 : f32 to vector<20x20x32xf32>
    %c0_19 = arith.constant 0 : index
    %c0_20 = arith.constant 0 : index
    %c0_21 = arith.constant 0 : index
    %22 = vector.load %arg10[%c0_19, %c0_20, %c0_21] : memref<20x20x32xf32, #tpu.memory_space<vmem>>, vector<20x20x32xf32>
    tpu.vector_store %arg10[%c0_19, %c0_20, %c0_21], %21 {strides = array<i32>} : memref<20x20x32xf32, #tpu.memory_space<vmem>>, vector<20x20x32xf32>,
    %23 = vector.shape_cast %20 : vector<256x32xf32> to vector<16x16x32xf32>
    %c2_22 = arith.constant 2 : index
    %c2_23 = arith.constant 2 : index
    %c0_24 = arith.constant 0 : index
    %24 = vector.load %arg10[%c2_22, %c2_23, %c0_24] : memref<20x20x32xf32, #tpu.memory_space<vmem>>, vector<16x16x32xf32>
    tpu.vector_store %arg10[%c2_22, %c2_23, %c0_24], %23 {strides = array<i32>} : memref<20x20x32xf32, #tpu.memory_space<vmem>>, vector<16x16x32xf32>,
    %cst_25 = arith.constant 0.000000e+00 : f32
    %25 = vector.broadcast %cst_25 : f32 to vector<256x8xf32>
    %c0_i32_26 = arith.constant 0 : i32
    %c5_i32_27 = arith.constant 5 : i32
    %26 = arith.addi %c0_i32_26, %c5_i32_27 : i32
    %c1_i32_28 = arith.constant 1 : i32
    %27 = scf.for %arg11 = %c0_i32_26 to %26 step %c1_i32_28 iter_args(%arg12 = %25) -> (vector<256x8xf32>)  : i32 {
      %34 = arith.index_cast %arg11 : i32 to index
      %c0_35 = arith.constant 0 : index
      %c0_36 = arith.constant 0 : index
      %35 = vector.load %arg10[%34, %c0_35, %c0_36] : memref<20x20x32xf32, #tpu.memory_space<vmem>>, vector<16x16x32xf32>
      %36 = arith.index_cast %arg11 : i32 to index
      %c1 = arith.constant 1 : index
      %c0_37 = arith.constant 0 : index
      %37 = vector.load %arg10[%36, %c1, %c0_37] : memref<20x20x32xf32, #tpu.memory_space<vmem>>, vector<16x16x32xf32>
      %38 = arith.index_cast %arg11 : i32 to index
      %c2_38 = arith.constant 2 : index
      %c0_39 = arith.constant 0 : index
      %39 = vector.load %arg10[%38, %c2_38, %c0_39] : memref<20x20x32xf32, #tpu.memory_space<vmem>>, vector<16x16x32xf32>
      %40 = arith.index_cast %arg11 : i32 to index
      %c3 = arith.constant 3 : index
      %c0_40 = arith.constant 0 : index
      %41 = vector.load %arg10[%40, %c3, %c0_40] : memref<20x20x32xf32, #tpu.memory_space<vmem>>, vector<16x16x32xf32>
      %42 = arith.index_cast %arg11 : i32 to index
      %c4 = arith.constant 4 : index
      %c0_41 = arith.constant 0 : index
      %43 = vector.load %arg10[%42, %c4, %c0_41] : memref<20x20x32xf32, #tpu.memory_space<vmem>>, vector<16x16x32xf32>
      %44 = tpu.concatenate %35, %37, %39, %41, %43 in 2 : vector<16x16x32xf32>, vector<16x16x32xf32>, vector<16x16x32xf32>, vector<16x16x32xf32>, vector<16x16x32xf32> -> vector<16x16x160xf32>
      %45 = vector.shape_cast %44 : vector<16x16x160xf32> to vector<256x160xf32>
      %46 = arith.truncf %45 : vector<256x160xf32> to vector<256x160xbf16>
      %47 = arith.index_cast %arg11 : i32 to index
      %c0_42 = arith.constant 0 : index
      %c0_43 = arith.constant 0 : index
      %48 = vector.load %arg6[%47, %c0_42, %c0_43] : memref<5x160x8xbf16, #tpu.memory_space<vmem>>, vector<1x160x8xbf16>
      %49 = vector.shape_cast %48 : vector<1x160x8xbf16> to vector<160x8xbf16>
      %cst_44 = arith.constant dense<0.000000e+00> : vector<256x8xf32>
      %50 = tpu.matmul %46, %49, %cst_44 {dimension_numbers = #tpu.dot_dimension_numbers<[1], [0], [0], [1], [0, 0, 1, 1], [], []>} : vector<256x160xbf16>, vector<160x8xbf16>, vector<256x8xf32> -> vector<256x8xf32>
      %51 = arith.addf %arg12, %50 : vector<256x8xf32>
      scf.yield %51 : vector<256x8xf32>
    }
    %c5_i32_29 = arith.constant 5 : i32
    %28 = vector.extract_strided_slice %27 {offsets = [0, 0], sizes = [256, 1], strides = [1, 1]} : vector<256x8xf32> to vector<256x1xf32>
    %c0_30 = arith.constant 0 : index
    %c0_31 = arith.constant 0 : index
    %29 = vector.load %arg7[%c0_30, %c0_31] : memref<1x1xf32, #tpu.memory_space<vmem>>, vector<1x1xf32>
    %30 = vector.broadcast %29 : vector<1x1xf32> to vector<256x1xf32>
    %31 = arith.addf %28, %30 : vector<256x1xf32>
    %32 = vector.shape_cast %31 : vector<256x1xf32> to vector<1x256x1xf32>
    %c0_32 = arith.constant 0 : index
    %c0_33 = arith.constant 0 : index
    %c0_34 = arith.constant 0 : index
    %33 = vector.load %arg8[%c0_32, %c0_33, %c0_34] : memref<1x256x1xf32, #tpu.memory_space<vmem>>, vector<1x256x1xf32>
    tpu.vector_store %arg8[%c0_32, %c0_33, %c0_34], %32 {strides = array<i32>} : memref<1x256x1xf32, #tpu.memory_space<vmem>>, vector<1x256x1xf32>,
    return
  }
  func.func @transform_0(%arg0: i32) -> (i32, i32, i32) {
    %c0_i32 = arith.constant 0 : i32
    %c0_i32_0 = arith.constant 0 : i32
    %c0_i32_1 = arith.constant 0 : i32
    return %arg0, %c0_i32, %c0_i32_0 : i32, i32, i32
  }
  func.func @transform_1(%arg0: i32) -> (i32, i32) {
    %c0_i32 = arith.constant 0 : i32
    %c0_i32_0 = arith.constant 0 : i32
    %c0_i32_1 = arith.constant 0 : i32
    return %c0_i32, %c0_i32_0 : i32, i32
  }
  func.func @transform_2(%arg0: i32) -> (i32, i32) {
    %c0_i32 = arith.constant 0 : i32
    %c0_i32_0 = arith.constant 0 : i32
    %c0_i32_1 = arith.constant 0 : i32
    return %c0_i32, %c0_i32_0 : i32, i32
  }
  func.func @transform_3(%arg0: i32) -> (i32, i32, i32) {
    %c0_i32 = arith.constant 0 : i32
    %c0_i32_0 = arith.constant 0 : i32
    %c0_i32_1 = arith.constant 0 : i32
    %c0_i32_2 = arith.constant 0 : i32
    return %c0_i32, %c0_i32_0, %c0_i32_1 : i32, i32, i32
  }
  func.func @transform_4(%arg0: i32) -> (i32, i32) {
    %c0_i32 = arith.constant 0 : i32
    %c0_i32_0 = arith.constant 0 : i32
    %c0_i32_1 = arith.constant 0 : i32
    return %c0_i32, %c0_i32_0 : i32, i32
  }
  func.func @transform_5(%arg0: i32) -> (i32, i32, i32) {
    %c0_i32 = arith.constant 0 : i32
    %c0_i32_0 = arith.constant 0 : i32
    %c0_i32_1 = arith.constant 0 : i32
    %c0_i32_2 = arith.constant 0 : i32
    return %c0_i32, %c0_i32_0, %c0_i32_1 : i32, i32, i32
  }
  func.func @transform_6(%arg0: i32) -> (i32, i32) {
    %c0_i32 = arith.constant 0 : i32
    %c0_i32_0 = arith.constant 0 : i32
    %c0_i32_1 = arith.constant 0 : i32
    return %c0_i32, %c0_i32_0 : i32, i32
  }
  func.func @transform_7(%arg0: i32) -> (i32, i32, i32) {
    %c0_i32 = arith.constant 0 : i32
    %c0_i32_0 = arith.constant 0 : i32
    %c0_i32_1 = arith.constant 0 : i32
    return %arg0, %c0_i32, %c0_i32_0 : i32, i32, i32
  }
}

</mosaic_0001>

<bundles_post_ra>
// kernel: srcnn_forward.1
= control target key start
LH: loop header
LB: loop body
LE: loop exit
PB: predicated region body
PF: predicated region fallthrough
CT: control target
= control target key end

     0   :  { %s5448_s26 = smov 0   ;;  %s7456_s0 = inlined_call_operand.vmem [shape: bf16[2,256,81], index: 0, kind: input, shape index: {}]   ;;  %s7457_s1 = inlined_call_operand.vmem [shape: bf16[81,64], index: 1, kind: input, shape index: {}]   ;;  %s7458_s2 = inlined_call_operand.vmem [shape: f32[1,64], index: 2, kind: input, shape index: {}]   ;;  %s7459_s3 = inlined_call_operand.vmem [shape: bf16[5,320,32], index: 3, kind: input, shape index: {}]   ;;  %s7460_s4 = inlined_call_operand.vmem [shape: f32[1,32], index: 4, kind: input, shape index: {}]   ;;  %s7461_s5 = inlined_call_operand.vmem [shape: bf16[5,160,8], index: 5, kind: input, shape index: {}]   ;;  %s7462_s6 = inlined_call_operand.<no memory space> [shape: f32[1,1], index: 6, kind: input, shape index: {}]   ;;  %s7463_s7 = inlined_call_operand.vmem [shape: f32[2,256,1], index: 7, kind: output, shape index: {}]  }
   0x1   :  { %v12_v0 = vstv %s7462_s6 }
   0x2   :  { %13 = vst [vmem:[#allocation4] sm:$0x1] %v12_v0 }
   0x3 LB: > { %s3461_s27 = sadd.s32 4294967295, %s5132_s26   ;;  %p3465_p0 = scmp.ge.s32.totalorder %s5132_s26, 1  ;;  %s5132_s26 = sphi %s5448_s26, %s19_s26  }
   0x4   : > { %p239_p1 = scmp.lt.s32.totalorder %s5132_s26, 3 }
   0x6   : > { %p240_p2 = pnand %p3465_p0, %p239_p1 }
   0x8   : > { %243 = sbr.rel (%p240_p2) target bundleno = 1165 (0x48d), region = 48 }
   0xd   : > { %v4410_v1 = vld [vmem:[%s7457_s1 + $0x28] ss:$0 sps:$4 sm:$0x11]   ;;  %vm494_vm0 = vcmask 1040384   ;;  %v5398_v2 = vmov 0   ;;  %v4411_v5 = vld [vmem:[%s7457_s1 + $0x20] sm:$0xff]  }
   0xe   : > { %v496_v3 = vsel %vm494_vm0, 65535, %v5398_v2  ;;  %p271_p3 = scmp.lt.s32.totalorder %s3461_s27, 1  ;;  %v4412_v6 = vld [vmem:[%s7457_s1 + $0x18] sm:$0xff]   ;;  %vm445_vm1 = vcmask 662528   ;;  %v4413_v9 = vld [vmem:[%s7457_s1 + $0x10] sm:$0xff]   ;;  %v4414_v10 = vld [vmem:[%s7457_s1 + $0x8] sm:$0xff]  }
   0xf   : > { %v498_v4 = vand.u32 %v4410_v1, %v496_v3  ;;  %v4415_v11 = vld [vmem:[%s7457_s1] sm:$0xff]   ;;  %vm693_vm2 = vcmask 523264   ;;  %v7464_v26 = vmov 0.0   ;;  %vm696_vm3 = vcmask 519168  }
  0x10   : > { %s7622_s27 = smov (!%p271_p3, %s3461_s27), 1  ;;  %704 = vst.msk [vmem:[#allocation2 + $0x48] sm:$0xff] %vm693_vm2, %v7464_v26  ;;  %705 = vst.msk [vmem:[#allocation2 + $0x50] sm:$0xff] %vm693_vm2, %v7464_v26  ;;  %v5639_v27 = vld [vmem:[%s7458_s2] ss:$0 sm:$0xff] }
  0x11   : > { %3735 = vmatprep.subr.bf16.mxu0 %v498_v4  ;;  %3819 = vmatprep.subr.bf16.mxu1 %v498_v4  ;;  %s3577_s10 = sshll.u32 %s7622_s27, 7  ;;  %s3578_s11 = sshll.u32 %s7622_s27, 8  ;;  %694 = vst.msk [vmem:[#allocation2] sm:$0xff] %vm693_vm2, %v7464_v26  ;;  %695 = vst.msk [vmem:[#allocation2 + $0x8] sm:$0xff] %vm693_vm2, %v7464_v26 }
  0x12   : > { %3736 = vmatpush3.bf16.msra.mxu0 %v498_v4  ;;  %3825 = vmatpush3.bf16.msra.mxu1 %v498_v4  ;;  %s5468_s14 = scalar_lea.vmem %s7456_s0, %s3577_s10  ;;  %s5473_s17 = scalar_lea.vmem %s7463_s7, %s3578_s11  ;;  %698 = vst.msk [vmem:[#allocation2 + $0x18] sm:$0xff] %vm693_vm2, %v7464_v26  ;;  %699 = vst.msk [vmem:[#allocation2 + $0x20] sm:$0xff] %vm693_vm2, %v7464_v26 }
  0x13   : > { %3737 = vmatprep.subr.bf16.mxu0 %v4411_v5  ;;  %3820 = vmatprep.subr.bf16.mxu1 %v4411_v5  ;;  %v4416_v7 = vld [vmem:[%s5468_s14] sm:$0xff]   ;;  %v4418_v12 = vld [vmem:[%s5468_s14 + $0x8] sm:$0xff]   ;;  %v4420_v14 = vld [vmem:[%s5468_s14 + $0x10] sm:$0xff]   ;;  %701 = vst.msk [vmem:[#allocation2 + $0x30] sm:$0xff] %vm693_vm2, %v7464_v26  ;;  %s5769_s27 = smov 0  }
  0x14   : > { %v4417_v8 = vld [vmem:[%s5468_s14 + $0x40] sm:$0xff]   ;;  %3747 = vmatprep.mubr.msk.bf16.mxu0 %vm445_vm1, %v4416_v7  ;;  %v4419_v13 = vld [vmem:[%s5468_s14 + $0x48] sm:$0xff]   ;;  %v4421_v15 = vld [vmem:[%s5468_s14 + $0x50] sm:$0xff]   ;;  %702 = vst.msk [vmem:[#allocation2 + $0x38] sm:$0xff] %vm693_vm2, %v7464_v26 }
  0x15   : > { %3763 = vmatprep.mubr.msk.bf16.mxu1 %vm445_vm1, %v4417_v8  ;;  %v4422_v16 = vld [vmem:[%s5468_s14 + $0x18] sm:$0xff]   ;;  %v4424_v18 = vld [vmem:[%s5468_s14 + $0x20] sm:$0xff]   ;;  %v4426_v20 = vld [vmem:[%s5468_s14 + $0x28] sm:$0xff]   ;;  %707 = vst.msk [vmem:[#allocation2 + $0x60] sm:$0xff] %vm693_vm2, %v7464_v26 }
  0x16   : > { %3738 = vmatpush3.bf16.msra.mxu0 %v4411_v5  ;;  %3826 = vmatpush3.bf16.msra.mxu1 %v4411_v5  ;;  %v4423_v17 = vld [vmem:[%s5468_s14 + $0x58] sm:$0xff]   ;;  %v4425_v19 = vld [vmem:[%s5468_s14 + $0x60] sm:$0xff]   ;;  %v4427_v21 = vld [vmem:[%s5468_s14 + $0x68] sm:$0xff]   ;;  %708 = vst.msk [vmem:[#allocation2 + $0x68] sm:$0xff] %vm693_vm2, %v7464_v26 }
  0x17   : > { %3739 = vmatprep.subr.bf16.mxu0 %v4412_v6  ;;  %3821 = vmatprep.subr.bf16.mxu1 %v4412_v6  ;;  %v4428_v22 = vld [vmem:[%s5468_s14 + $0x30] sm:$0xff]   ;;  %v4430_v24 = vld [vmem:[%s5468_s14 + $0x38] sm:$0xff]   ;;  %710 = vst.msk [vmem:[#allocation2 + $0x78] sm:$0xff] %vm693_vm2, %v7464_v26  ;;  %711 = vst.msk [vmem:[#allocation2 + $0x80] sm:$0xff] %vm693_vm2, %v7464_v26 }
  0x18   : > { %v4429_v23 = vld [vmem:[%s5468_s14 + $0x70] sm:$0xff]   ;;  %v4431_v25 = vld [vmem:[%s5468_s14 + $0x78] sm:$0xff]   ;;  %713 = vst.msk [vmem:[#allocation2 + $0x90] sm:$0xff] %vm693_vm2, %v7464_v26  ;;  %714 = vst.msk [vmem:[#allocation2 + $0x98] sm:$0xff] %vm693_vm2, %v7464_v26 }
  0x19   : > { %716 = vst.msk [vmem:[#allocation2 + $0xa8] sm:$0xff] %vm693_vm2, %v7464_v26  ;;  %717 = vst.msk [vmem:[#allocation2 + $0xb0] sm:$0xff] %vm693_vm2, %v7464_v26 }
  0x1a   : > { %3740 = vmatpush3.bf16.msra.mxu0 %v4412_v6  ;;  %3827 = vmatpush3.bf16.msra.mxu1 %v4412_v6  ;;  %719 = vst.msk [vmem:[#allocation2 + $0xc0] sm:$0xff] %vm693_vm2, %v7464_v26  ;;  %720 = vst.msk [vmem:[#allocation2 + $0xc8] sm:$0xff] %vm693_vm2, %v7464_v26 }
  0x1b   : > { %3741 = vmatprep.subr.bf16.mxu0 %v4413_v9  ;;  %3822 = vmatprep.subr.bf16.mxu1 %v4413_v9  ;;  %722 = vst.msk [vmem:[#allocation2 + $0xd8] sm:$0xff] %vm693_vm2, %v7464_v26  ;;  %723 = vst.msk [vmem:[#allocation2 + $0xe0] sm:$0xff] %vm693_vm2, %v7464_v26 }
  0x1c   : > { %725 = vst.msk [vmem:[#allocation2 + $0xf0] sm:$0xff] %vm693_vm2, %v7464_v26  ;;  %726 = vst.msk [vmem:[#allocation2 + $0xf8] sm:$0xff] %vm693_vm2, %v7464_v26 }
  0x1d   : > { %728 = vst.msk [vmem:[#allocation2 + $0x108] sm:$0xff] %vm693_vm2, %v7464_v26  ;;  %729 = vst.msk [vmem:[#allocation2 + $0x110] sm:$0xff] %vm693_vm2, %v7464_v26 }
  0x1e   : > { %3742 = vmatpush3.bf16.msra.mxu0 %v4413_v9  ;;  %3828 = vmatpush3.bf16.msra.mxu1 %v4413_v9  ;;  %731 = vst.msk [vmem:[#allocation2 + $0x120] sm:$0xff] %vm693_vm2, %v7464_v26  ;;  %732 = vst.msk [vmem:[#allocation2 + $0x128] sm:$0xff] %vm693_vm2, %v7464_v26 }
  0x1f   : > { %3743 = vmatprep.subr.bf16.mxu0 %v4414_v10  ;;  %3823 = vmatprep.subr.bf16.mxu1 %v4414_v10  ;;  %734 = vst.msk [vmem:[#allocation2 + $0x138] sm:$0xff] %vm693_vm2, %v7464_v26  ;;  %735 = vst.msk [vmem:[#allocation2 + $0x140] sm:$0xff] %vm693_vm2, %v7464_v26 }
  0x20   : > { %737 = vst.msk [vmem:[#allocation2 + $0x150] sm:$0xff] %vm693_vm2, %v7464_v26  ;;  %738 = vst.msk [vmem:[#allocation2 + $0x158] sm:$0xff] %vm693_vm2, %v7464_v26 }
  0x21   : > { %740 = vst.msk [vmem:[#allocation2 + $0x168] sm:$0xff] %vm693_vm2, %v7464_v26  ;;  %741 = vst.msk [vmem:[#allocation2 + $0x170] sm:$0xff] %vm693_vm2, %v7464_v26 }
  0x22   : > { %3744 = vmatpush3.bf16.msra.mxu0 %v4414_v10  ;;  %3829 = vmatpush3.bf16.msra.mxu1 %v4414_v10  ;;  %743 = vst.msk [vmem:[#allocation2 + $0x180] sm:$0xff] %vm693_vm2, %v7464_v26  ;;  %744 = vst.msk [vmem:[#allocation2 + $0x188] sm:$0xff] %vm693_vm2, %v7464_v26 }
  0x23   : > { %3745 = vmatprep.subr.bf16.mxu0 %v4415_v11  ;;  %3824 = vmatprep.subr.bf16.mxu1 %v4415_v11  ;;  %746 = vst.msk [vmem:[#allocation2 + $0x198] sm:$0xff] %vm693_vm2, %v7464_v26  ;;  %747 = vst.msk [vmem:[#allocation2 + $0x1a0] sm:$0xff] %vm693_vm2, %v7464_v26 }
  0x24   : > { %749 = vst.msk [vmem:[#allocation2 + $0x1b0] sm:$0xff] %vm693_vm2, %v7464_v26  ;;  %750 = vst.msk [vmem:[#allocation2 + $0x1b8] sm:$0xff] %vm693_vm2, %v7464_v26 }
  0x25   : > { %752 = vst.msk [vmem:[#allocation2 + $0x1c8] sm:$0xff] %vm693_vm2, %v7464_v26  ;;  %753 = vst.msk [vmem:[#allocation2 + $0x1d0] sm:$0xff] %vm693_vm2, %v7464_v26 }
  0x26   : > { %3746 = vmatpush3.bf16.msra.mxu0 %v4415_v11  ;;  %3830 = vmatpush3.bf16.msra.mxu1 %v4415_v11  ;;  %697 = vst.msk [vmem:[#allocation2 + $0x10] sm:$0xf] %vm696_vm3, %v7464_v26  ;;  %700 = vst.msk [vmem:[#allocation2 + $0x28] sm:$0xf] %vm696_vm3, %v7464_v26 }
  0x27   : > { %706 = vst.msk [vmem:[#allocation2 + $0x58] sm:$0xf] %vm696_vm3, %v7464_v26  ;;  %751 = vst.msk [vmem:[#allocation2 + $0x1c0] sm:$0xf] %vm696_vm3, %v7464_v26 }
  0x28   : > { %754 = vst.msk [vmem:[#allocation2 + $0x1d8] sm:$0xf] %vm696_vm3, %v7464_v26  ;;  %703 = vst.msk [vmem:[#allocation2 + $0x40] sm:$0xf] %vm696_vm3, %v7464_v26 }
  0x29   : > { %3748 = vmatmul.mubr.msk.bf16.vlgmr.msra.gmra.mxu0 %vm445_vm1, %v4418_v12  ;;  %3764 = vmatmul.mubr.msk.bf16.vlgmr.msra.gmra.mxu1 %vm445_vm1, %v4419_v13  ;;  %709 = vst.msk [vmem:[#allocation2 + $0x70] sm:$0xf] %vm696_vm3, %v7464_v26  ;;  %712 = vst.msk [vmem:[#allocation2 + $0x88] sm:$0xf] %vm696_vm3, %v7464_v26 }
  0x2a   : > { %3751 = vmatprep.mubr.msk.bf16.mxu0 %vm445_vm1, %v4420_v14  ;;  %3767 = vmatprep.mubr.msk.bf16.mxu1 %vm445_vm1, %v4421_v15  ;;  %715 = vst.msk [vmem:[#allocation2 + $0xa0] sm:$0xf] %vm696_vm3, %v7464_v26  ;;  %718 = vst.msk [vmem:[#allocation2 + $0xb8] sm:$0xf] %vm696_vm3, %v7464_v26 }
  0x2b   : > { %721 = vst.msk [vmem:[#allocation2 + $0xd0] sm:$0xf] %vm696_vm3, %v7464_v26  ;;  %724 = vst.msk [vmem:[#allocation2 + $0xe8] sm:$0xf] %vm696_vm3, %v7464_v26 }
  0x2c   : > { %727 = vst.msk [vmem:[#allocation2 + $0x100] sm:$0xf] %vm696_vm3, %v7464_v26  ;;  %730 = vst.msk [vmem:[#allocation2 + $0x118] sm:$0xf] %vm696_vm3, %v7464_v26 }
  0x2d   : > { %733 = vst.msk [vmem:[#allocation2 + $0x130] sm:$0xf] %vm696_vm3, %v7464_v26  ;;  %736 = vst.msk [vmem:[#allocation2 + $0x148] sm:$0xf] %vm696_vm3, %v7464_v26 }
  0x2e   : > { %739 = vst.msk [vmem:[#allocation2 + $0x160] sm:$0xf] %vm696_vm3, %v7464_v26  ;;  %742 = vst.msk [vmem:[#allocation2 + $0x178] sm:$0xf] %vm696_vm3, %v7464_v26 }
  0x2f   : > { %745 = vst.msk [vmem:[#allocation2 + $0x190] sm:$0xf] %vm696_vm3, %v7464_v26  ;;  %748 = vst.msk [vmem:[#allocation2 + $0x1a8] sm:$0xf] %vm696_vm3, %v7464_v26 }
  0x31   : > { %3752 = vmatmul.mubr.msk.bf16.gmra.mxu0 %vm445_vm1, %v4422_v16  ;;  %3768 = vmatmul.mubr.msk.bf16.gmra.mxu1 %vm445_vm1, %v4423_v17 }
  0x32   : > { %3755 = vmatprep.mubr.msk.bf16.mxu0 %vm445_vm1, %v4424_v18  ;;  %3771 = vmatprep.mubr.msk.bf16.mxu1 %vm445_vm1, %v4425_v19 }
  0x39   : > { %3756 = vmatmul.mubr.msk.bf16.gmra.mxu0 %vm445_vm1, %v4426_v20  ;;  %3772 = vmatmul.mubr.msk.bf16.gmra.mxu1 %vm445_vm1, %v4427_v21 }
  0x3a   : > { %3759 = vmatprep.mubr.msk.bf16.mxu0 %vm445_vm1, %v4428_v22  ;;  %3775 = vmatprep.mubr.msk.bf16.mxu1 %vm445_vm1, %v4429_v23 }
  0x41   : > { %3760 = vmatmul.mubr.msk.bf16.gmra.mxu0 %vm445_vm1, %v4430_v24  ;;  %3776 = vmatmul.mubr.msk.bf16.gmra.mxu1 %vm445_vm1, %v4431_v25 }
  0xe9   : > { %v3749_v28 = vpop.f32.mrf.mxu0  ;;  %v3765_v29 = vpop.f32.mrf.mxu1 }
  0xea   : > { %v543_v30 = vadd.f32 %v3749_v28, %v5639_v27  ;;  %v607_v31 = vadd.f32 %v3765_v29, %v5639_v27 }
  0xeb   : > { %v534_v32 = vpop.f32.mrf.mxu0  ;;  %v598_v33 = vpop.f32.mrf.mxu1 }
  0xec   : > { %v663_v34 = vmax.f32 %v543_v30, 0.0  ;;  %v679_v35 = vmax.f32 %v607_v31, 0.0  ;;  %v535_v36 = vadd.f32 %v5639_v27, %v534_v32  ;;  %v599_v37 = vadd.f32 %v5639_v27, %v598_v33 }
  0xed   : > { %v3750_v38 = vpop.f32.mrf.mxu0  ;;  %v3766_v39 = vpop.f32.mrf.mxu1 }
  0xee   : > { %758 = vst.msk [vmem:[#allocation2 + $0x4a] sm:$0xff] %vm693_vm2, %v663_v34  ;;  %774 = vst.msk [vmem:[#allocation2 + $0x10a] sm:$0xff] %vm693_vm2, %v679_v35  ;;  %v661_v40 = vmax.f32 %v535_v36, 0.0  ;;  %v677_v41 = vmax.f32 %v599_v37, 0.0  ;;  %v546_v42 = vadd.f32 %v3750_v38, %v5639_v27  ;;  %v610_v43 = vadd.f32 %v3766_v39, %v5639_v27 }
  0xef   : > { %v537_v44 = vpop.f32.mrf.mxu0  ;;  %v601_v45 = vpop.f32.mrf.mxu1 }
  0xf0   : > { %756 = vst.msk [vmem:[#allocation2 + $0x32] sm:$0xff] %vm693_vm2, %v661_v40  ;;  %772 = vst.msk [vmem:[#allocation2 + $0xf2] sm:$0xff] %vm693_vm2, %v677_v41  ;;  %v664_v46 = vmax.f32 %v546_v42, 0.0  ;;  %v680_v47 = vmax.f32 %v610_v43, 0.0  ;;  %v538_v48 = vadd.f32 %v5639_v27, %v537_v44  ;;  %v602_v49 = vadd.f32 %v5639_v27, %v601_v45 }
  0xf1   : > { %v3753_v50 = vpop.f32.mrf.mxu0  ;;  %v3769_v51 = vpop.f32.mrf.mxu1 }
  0xf2   : > { %759 = vst.msk [vmem:[#allocation2 + $0x52] sm:$0xff] %vm693_vm2, %v664_v46  ;;  %775 = vst.msk [vmem:[#allocation2 + $0x112] sm:$0xff] %vm693_vm2, %v680_v47  ;;  %v662_v52 = vmax.f32 %v538_v48, 0.0  ;;  %v678_v53 = vmax.f32 %v602_v49, 0.0  ;;  %v559_v54 = vadd.f32 %v3753_v50, %v5639_v27  ;;  %v623_v55 = vadd.f32 %v3769_v51, %v5639_v27 }
  0xf3   : > { %v550_v56 = vpop.f32.mrf.mxu0  ;;  %v614_v57 = vpop.f32.mrf.mxu1 }
  0xf4   : > { %757 = vst.msk [vmem:[#allocation2 + $0x3a] sm:$0xff] %vm693_vm2, %v662_v52  ;;  %773 = vst.msk [vmem:[#allocation2 + $0xfa] sm:$0xff] %vm693_vm2, %v678_v53  ;;  %v667_v58 = vmax.f32 %v559_v54, 0.0  ;;  %v683_v59 = vmax.f32 %v623_v55, 0.0  ;;  %v551_v60 = vadd.f32 %v5639_v27, %v550_v56  ;;  %v615_v61 = vadd.f32 %v5639_v27, %v614_v57 }
  0xf5   : > { %v3754_v62 = vpop.f32.mrf.mxu0  ;;  %v3770_v63 = vpop.f32.mrf.mxu1 }
  0xf6   : > { %762 = vst.msk [vmem:[#allocation2 + $0x7a] sm:$0xff] %vm693_vm2, %v667_v58  ;;  %778 = vst.msk [vmem:[#allocation2 + $0x13a] sm:$0xff] %vm693_vm2, %v683_v59  ;;  %v665_v0 = vmax.f32 %v551_v60, 0.0  ;;  %v681_v1 = vmax.f32 %v615_v61, 0.0  ;;  %v562_v2 = vadd.f32 %v3754_v62, %v5639_v27  ;;  %v626_v3 = vadd.f32 %v3770_v63, %v5639_v27 }
  0xf7   : > { %v553_v4 = vpop.f32.mrf.mxu0  ;;  %v617_v5 = vpop.f32.mrf.mxu1  ;;  %v5705_v62 = vmov 0.0   ;;  %v5707_v63 = vmov 0.0  }
  0xf8   : > { %760 = vst.msk [vmem:[#allocation2 + $0x62] sm:$0xff] %vm693_vm2, %v665_v0  ;;  %776 = vst.msk [vmem:[#allocation2 + $0x122] sm:$0xff] %vm693_vm2, %v681_v1  ;;  %v668_v6 = vmax.f32 %v562_v2, 0.0  ;;  %v684_v7 = vmax.f32 %v626_v3, 0.0  ;;  %v554_v8 = vadd.f32 %v5639_v27, %v553_v4  ;;  %v618_v9 = vadd.f32 %v5639_v27, %v617_v5 }
  0xf9   : > { %v3757_v10 = vpop.f32.mrf.mxu0  ;;  %v3773_v11 = vpop.f32.mrf.mxu1  ;;  %v5709_v0 = vmov 0.0   ;;  %v5711_v1 = vmov 0.0   ;;  %v5713_v2 = vmov 0.0   ;;  %v5717_v3 = vmov 0.0  }
  0xfa   : > { %763 = vst.msk [vmem:[#allocation2 + $0x82] sm:$0xff] %vm693_vm2, %v668_v6  ;;  %779 = vst.msk [vmem:[#allocation2 + $0x142] sm:$0xff] %vm693_vm2, %v684_v7  ;;  %v666_v12 = vmax.f32 %v554_v8, 0.0  ;;  %v682_v13 = vmax.f32 %v618_v9, 0.0  ;;  %v575_v14 = vadd.f32 %v3757_v10, %v5639_v27  ;;  %v639_v15 = vadd.f32 %v3773_v11, %v5639_v27 }
  0xfb   : > { %v566_v16 = vpop.f32.mrf.mxu0  ;;  %v630_v17 = vpop.f32.mrf.mxu1  ;;  %v5719_v4 = vmov 0.0   ;;  %v5721_v5 = vmov 0.0   ;;  %v5723_v6 = vmov 0.0   ;;  %v5725_v7 = vmov 0.0  }
  0xfc   : > { %761 = vst.msk [vmem:[#allocation2 + $0x6a] sm:$0xff] %vm693_vm2, %v666_v12  ;;  %777 = vst.msk [vmem:[#allocation2 + $0x12a] sm:$0xff] %vm693_vm2, %v682_v13  ;;  %v671_v18 = vmax.f32 %v575_v14, 0.0  ;;  %v687_v19 = vmax.f32 %v639_v15, 0.0  ;;  %v567_v20 = vadd.f32 %v5639_v27, %v566_v16  ;;  %v631_v21 = vadd.f32 %v5639_v27, %v630_v17 }
  0xfd   : > { %v3758_v22 = vpop.f32.mrf.mxu0  ;;  %v3774_v23 = vpop.f32.mrf.mxu1  ;;  %v5727_v8 = vmov 0.0   ;;  %v5729_v9 = vmov 0.0   ;;  %v5731_v10 = vmov 0.0   ;;  %v5733_v11 = vmov 0.0  }
  0xfe   : > { %766 = vst.msk [vmem:[#allocation2 + $0xaa] sm:$0xff] %vm693_vm2, %v671_v18  ;;  %782 = vst.msk [vmem:[#allocation2 + $0x16a] sm:$0xff] %vm693_vm2, %v687_v19  ;;  %v669_v24 = vmax.f32 %v567_v20, 0.0  ;;  %v685_v25 = vmax.f32 %v631_v21, 0.0  ;;  %v578_v28 = vadd.f32 %v3758_v22, %v5639_v27  ;;  %v642_v29 = vadd.f32 %v3774_v23, %v5639_v27 }
  0xff   : > { %v569_v30 = vpop.f32.mrf.mxu0  ;;  %v633_v31 = vpop.f32.mrf.mxu1  ;;  %v5735_v12 = vmov 0.0   ;;  %v5737_v13 = vmov 0.0   ;;  %v5739_v14 = vmov 0.0   ;;  %v5741_v15 = vmov 0.0  }
 0x100   : > { %764 = vst.msk [vmem:[#allocation2 + $0x92] sm:$0xff] %vm693_vm2, %v669_v24  ;;  %780 = vst.msk [vmem:[#allocation2 + $0x152] sm:$0xff] %vm693_vm2, %v685_v25  ;;  %v672_v32 = vmax.f32 %v578_v28, 0.0  ;;  %v688_v33 = vmax.f32 %v642_v29, 0.0  ;;  %v570_v34 = vadd.f32 %v5639_v27, %v569_v30  ;;  %v634_v35 = vadd.f32 %v5639_v27, %v633_v31 }
 0x101   : > { %v3761_v36 = vpop.f32.mrf.mxu0  ;;  %v3777_v37 = vpop.f32.mrf.mxu1  ;;  %v5743_v16 = vmov 0.0   ;;  %v5745_v17 = vmov 0.0   ;;  %v5747_v18 = vmov 0.0   ;;  %v5749_v19 = vmov 0.0  }
 0x102   : > { %767 = vst.msk [vmem:[#allocation2 + $0xb2] sm:$0xff] %vm693_vm2, %v672_v32  ;;  %783 = vst.msk [vmem:[#allocation2 + $0x172] sm:$0xff] %vm693_vm2, %v688_v33  ;;  %v670_v38 = vmax.f32 %v570_v34, 0.0  ;;  %v686_v39 = vmax.f32 %v634_v35, 0.0  ;;  %v591_v40 = vadd.f32 %v3761_v36, %v5639_v27  ;;  %v655_v41 = vadd.f32 %v3777_v37, %v5639_v27 }
 0x103   : > { %v582_v42 = vpop.f32.mrf.mxu0  ;;  %v646_v43 = vpop.f32.mrf.mxu1  ;;  %v5751_v20 = vmov 0.0   ;;  %v5753_v21 = vmov 0.0   ;;  %v5755_v22 = vmov 0.0   ;;  %v5757_v23 = vmov 0.0  }
 0x104   : > { %765 = vst.msk [vmem:[#allocation2 + $0x9a] sm:$0xff] %vm693_vm2, %v670_v38  ;;  %781 = vst.msk [vmem:[#allocation2 + $0x15a] sm:$0xff] %vm693_vm2, %v686_v39  ;;  %v675_v44 = vmax.f32 %v591_v40, 0.0  ;;  %v691_v45 = vmax.f32 %v655_v41, 0.0  ;;  %v583_v46 = vadd.f32 %v5639_v27, %v582_v42  ;;  %v647_v47 = vadd.f32 %v5639_v27, %v646_v43 }
 0x105   : > { %v3762_v48 = vpop.f32.mrf.mxu0  ;;  %v3778_v49 = vpop.f32.mrf.mxu1  ;;  %v5759_v24 = vmov 0.0   ;;  %v5761_v25 = vmov 0.0   ;;  %v5763_v28 = vmov 0.0   ;;  %v5765_v29 = vmov 0.0  }
 0x106   : > { %770 = vst.msk [vmem:[#allocation2 + $0xda] sm:$0xff] %vm693_vm2, %v675_v44  ;;  %786 = vst.msk [vmem:[#allocation2 + $0x19a] sm:$0xff] %vm693_vm2, %v691_v45  ;;  %v673_v50 = vmax.f32 %v583_v46, 0.0  ;;  %v689_v51 = vmax.f32 %v647_v47, 0.0  ;;  %v594_v52 = vadd.f32 %v3762_v48, %v5639_v27  ;;  %v658_v53 = vadd.f32 %v3778_v49, %v5639_v27 }
 0x107   : > { %v585_v54 = vpop.f32.mrf.mxu0  ;;  %v649_v55 = vpop.f32.mrf.mxu1  ;;  %v5767_v30 = vmov 0.0  }
 0x108   : > { %768 = vst.msk [vmem:[#allocation2 + $0xc2] sm:$0xff] %vm693_vm2, %v673_v50  ;;  %784 = vst.msk [vmem:[#allocation2 + $0x182] sm:$0xff] %vm693_vm2, %v689_v51  ;;  %v676_v56 = vmax.f32 %v594_v52, 0.0  ;;  %v692_v57 = vmax.f32 %v658_v53, 0.0  ;;  %v586_v58 = vadd.f32 %v5639_v27, %v585_v54  ;;  %v650_v59 = vadd.f32 %v5639_v27, %v649_v55 }
 0x109   : > { %v5715_v27 = vmov 0.0  }
 0x10a   : > { %771 = vst.msk [vmem:[#allocation2 + $0xe2] sm:$0xff] %vm693_vm2, %v676_v56  ;;  %787 = vst.msk [vmem:[#allocation2 + $0x1a2] sm:$0xff] %vm693_vm2, %v692_v57  ;;  %v674_v60 = vmax.f32 %v586_v58, 0.0  ;;  %v690_v61 = vmax.f32 %v650_v59, 0.0 }
 0x10c   : > { %769 = vst.msk [vmem:[#allocation2 + $0xca] sm:$0xff] %vm693_vm2, %v674_v60  ;;  %785 = vst.msk [vmem:[#allocation2 + $0x18a] sm:$0xff] %vm693_vm2, %v690_v61 }
 0x10d LB: >> { %7471 = vst [vmem:[#allocation5_spill] sm:$0xff] %v5168_v5  ;;  %s826_s28 = smul.u32 24, %s5264_s27  ;;  %s5400_s6 = smov 64   ;;  %s5264_s27 = sphi %s5769_s27, %s7538_s27   ;;  %v5260_v30 = vphi %v5767_v30, %v7537_v30   ;;  %v5256_v29 = vphi %v5765_v29, %v7536_v29   ;;  %v5252_v28 = vphi %v5763_v28, %v7535_v28   ;;  %v5248_v25 = vphi %v5761_v25, %v7534_v25   ;;  %v5244_v24 = vphi %v5759_v24, %v7533_v24   ;;  %v5240_v23 = vphi %v5757_v23, %v7532_v23   ;;  %v5236_v22 = vphi %v5755_v22, %v7531_v22   ;;  %v5232_v21 = vphi %v5753_v21, %v7530_v21   ;;  %v5228_v20 = vphi %v5751_v20, %v7529_v20   ;;  %v5224_v19 = vphi %v5749_v19, %v7528_v19   ;;  %v5220_v18 = vphi %v5747_v18, %v7527_v18   ;;  %v5216_v17 = vphi %v5745_v17, %v7526_v17   ;;  %v5212_v16 = vphi %v5743_v16, %v7525_v16   ;;  %v5208_v15 = vphi %v5741_v15, %v7524_v15   ;;  %v5204_v14 = vphi %v5739_v14, %v7523_v14   ;;  %v5200_v13 = vphi %v5737_v13, %v7522_v13   ;;  %v5196_v12 = vphi %v5735_v12, %v7521_v12   ;;  %v5192_v11 = vphi %v5733_v11, %v7520_v11   ;;  %v5188_v10 = vphi %v5731_v10, %v7519_v10   ;;  %v5184_v9 = vphi %v5729_v9, %v7518_v9   ;;  %v5180_v8 = vphi %v5727_v8, %v7517_v8   ;;  %v5176_v7 = vphi %v5725_v7, %v7516_v7   ;;  %v5172_v6 = vphi %v5723_v6, %v7515_v6   ;;  %v5168_v5 = vphi %v5721_v5, %v7514_v5   ;;  %v5164_v4 = vphi %v5719_v4, %v7513_v4   ;;  %v5160_v3 = vphi %v5717_v3, %v7512_v3   ;;  %v5156_v27 = vphi %v5715_v27, %v7511_v27   ;;  %v5152_v2 = vphi %v5713_v2, %v7510_v2   ;;  %v5148_v1 = vphi %v5711_v1, %v7509_v1   ;;  %v5144_v0 = vphi %v5709_v0, %v7508_v0   ;;  %v5140_v63 = vphi %v5707_v63, %v7507_v63   ;;  %v5136_v62 = vphi %v5705_v62, %v7506_v62  }
 0x10e   : >> { %s3579_s30 = smul.u32 160, %s5264_s27  ;;  %s793_s11 = sadd.s32 1, %s5264_s27  }
 0x10f   : >> { %s5871_s29 = scalar_lea.vmem [#allocation2], %s826_s28  ;;  %p6301_p4 = scmp.ge.s32.totalorder %s793_s11, 5  }
 0x110   : >> { %s5909_s10 = scalar_lea.vmem %s7459_s3, %s3579_s30  ;;  %s7538_s27 = smov %s793_s11  ;;  %vm1992_vm4 = vcmask (%p6301_p4), 261120   ;;  %vm1995_vm5 = vcmask (%p6301_p4), 257024  }
 0x111   : > { %s6692_s15 = smov (%p6301_p4), 0  }
 0x113   : >> { %v948_v31 = vld [vmem:[%s5871_s29 + $0x123] sm:$0xff]  ;;  %v949_v32 = vld [vmem:[%s5871_s29 + $0x12b] sm:$0xff]  ;;  %v862_v43 = vld [vmem:[%s5871_s29 + $0x19] sm:$0xff] }
 0x114   : >> { %v924_v33 = vld [vmem:[%s5871_s29 + $0x3] sm:$0xff]  ;;  %v4442_v34 = vpack.i.bf16 %v949_v32, %v948_v31  ;;  %v925_v35 = vld [vmem:[%s5871_s29 + $0xb] sm:$0xff]  ;;  %v926_v45 = vld [vmem:[%s5871_s29 + $0x1b] sm:$0xff] }
 0x115   : >> { %v884_v36 = vld [vmem:[%s5871_s29 + $0x121] sm:$0xff]  ;;  %v885_v37 = vld [vmem:[%s5871_s29 + $0x129] sm:$0xff]  ;;  %v4432_v38 = vpack.i.bf16 %v925_v35, %v924_v33  ;;  %v886_v49 = vld [vmem:[%s5871_s29 + $0x139] sm:$0xff] }
 0x116   : >> { %v860_v39 = vld [vmem:[%s5871_s29 + $0x1] sm:$0xff]  ;;  %v861_v40 = vld [vmem:[%s5871_s29 + $0x9] sm:$0xff]  ;;  %4443 = vrot.lane.b32.xlu1 %v4442_v34, %s5400_s6  ;;  %v4447_v41 = vpack.i.bf16 %v885_v37, %v884_v36  ;;  %v864_v55 = vld [vmem:[%s5871_s29 + $0x31] sm:$0xff] }
 0x117   : >> { %4433 = vrot.lane.b32.xlu0 %v4432_v38, %s5400_s6  ;;  %v4437_v42 = vpack.i.bf16 %v861_v40, %v860_v39  ;;  %v863_v44 = vld [vmem:[%s5871_s29 + $0x21] sm:$0xff]  ;;  %v865_v56 = vld [vmem:[%s5871_s29 + $0x39] sm:$0xff]  ;;  %v888_v61 = vld [vmem:[%s5871_s29 + $0x151] sm:$0xff] }
 0x118   : >> { %v927_v46 = vld [vmem:[%s5871_s29 + $0x23] sm:$0xff]  ;;  %v4457_v47 = vpack.i.bf16 %v863_v44, %v862_v43  ;;  %v950_v51 = vld [vmem:[%s5871_s29 + $0x13b] sm:$0xff]  ;;  %v928_v57 = vld [vmem:[%s5871_s29 + $0x33] sm:$0xff]  ;;  %v4477_v59 = vpack.i.bf16 %v865_v56, %v864_v55 }
 0x119   : >> { %v4452_v48 = vpack.i.bf16 %v927_v46, %v926_v45  ;;  %v887_v50 = vld [vmem:[%s5871_s29 + $0x141] sm:$0xff]  ;;  %v889_v31 = vld [vmem:[%s5871_s29 + $0x159] sm:$0xff]  ;;  %v930_v35 = vld [vmem:[%s5871_s29 + $0x4b] sm:$0xff] }
 0x11a   : >> { %4448 = vrot.lane.b32.xlu1 %v4447_v41, %s5400_s6  ;;  %v951_v52 = vld [vmem:[%s5871_s29 + $0x143] sm:$0xff]  ;;  %v4467_v53 = vpack.i.bf16 %v887_v50, %v886_v49  ;;  %v929_v58 = vld [vmem:[%s5871_s29 + $0x3b] sm:$0xff]  ;;  %v952_v32 = vld [vmem:[%s5871_s29 + $0x153] sm:$0xff]  ;;  %v4487_v34 = vpack.i.bf16 %v889_v31, %v888_v61 }
 0x11b   : >> { %4438 = vrot.lane.b32.xlu0 %v4437_v42, %s5400_s6  ;;  %v4462_v54 = vpack.i.bf16 %v951_v52, %v950_v51  ;;  %v4472_v60 = vpack.i.bf16 %v929_v58, %v928_v57  ;;  %v953_v33 = vld [vmem:[%s5871_s29 + $0x15b] sm:$0xff]  ;;  %v866_v37 = vld [vmem:[%s5871_s29 + $0x49] sm:$0xff]  ;;  %v867_v38 = vld [vmem:[%s5871_s29 + $0x51] sm:$0xff] }
 0x11c   : >> { %v4482_v36 = vpack.i.bf16 %v953_v33, %v952_v32  ;;  %v931_v39 = vld [vmem:[%s5871_s29 + $0x53] sm:$0xff]  ;;  %v890_v41 = vld [vmem:[%s5871_s29 + $0x169] sm:$0xff]  ;;  %v4497_v43 = vpack.i.bf16 %v867_v38, %v866_v37  ;;  %v4598_v58 = vld [vmem:[%s5909_s10 + $0x60] sm:$0xff]  }
 0x11d   : >> { %v4592_v40 = vld [vmem:[%s5909_s10 + $0x78] sm:$0xff]   ;;  %v954_v44 = vld [vmem:[%s5871_s29 + $0x16b] sm:$0xff]  ;;  %v932_v52 = vld [vmem:[%s5871_s29 + $0x63] sm:$0xff] }
 0x11e   : >> { %4458 = vrot.lane.b32.xlu1 %v4457_v47, %s5400_s6  ;;  %v891_v42 = vld [vmem:[%s5871_s29 + $0x171] sm:$0xff]  ;;  %3603 = vmatprep.subr.bf16.mxu0 %v4592_v40  ;;  %v4492_v47 = vpack.i.bf16 %v931_v39, %v930_v35  ;;  %v4596_v50 = vld [vmem:[%s5909_s10 + $0x68] sm:$0xff]   ;;  %v870_v31 = vld [vmem:[%s5871_s29 + $0x79] sm:$0xff] }
 0x11f   : >> { %4453 = vrot.lane.b32.xlu0 %v4452_v48, %s5400_s6  ;;  %v955_v45 = vld [vmem:[%s5871_s29 + $0x173] sm:$0xff]  ;;  %3831 = vmatprep.subr.bf16.mxu1 %v4592_v40  ;;  %v4507_v51 = vpack.i.bf16 %v891_v42, %v890_v41  ;;  %v869_v56 = vld [vmem:[%s5871_s29 + $0x69] sm:$0xff]  ;;  %v871_v33 = vld [vmem:[%s5871_s29 + $0x81] sm:$0xff] }
 0x120   : >> { %v4593_v46 = vld [vmem:[%s5909_s10 + $0x38] sm:$0xff]   ;;  %v4594_v48 = vld [vmem:[%s5909_s10 + $0x70] sm:$0xff]   ;;  %v4502_v55 = vpack.i.bf16 %v955_v45, %v954_v44  ;;  %v4597_v57 = vld [vmem:[%s5909_s10 + $0x28] sm:$0xff]  }
 0x121   : >> { %3604 = vmatpush3.bf16.msra.mxu0 %v4593_v46  ;;  %3839 = vmatpush3.bf16.msra.mxu1 %v4593_v46  ;;  %v4595_v49 = vld [vmem:[%s5909_s10 + $0x30] sm:$0xff]   ;;  %v935_v61 = vld [vmem:[%s5871_s29 + $0x83] sm:$0xff]  ;;  %v4600_v35 = vld [vmem:[%s5909_s10 + $0x58] sm:$0xff]  }
 0x122   : >> { %4468 = vrot.lane.b32.xlu1 %v4467_v53, %s5400_s6  ;;  %3605 = vmatprep.subr.bf16.mxu0 %v4594_v48  ;;  %v933_v53 = vld [vmem:[%s5871_s29 + $0x6b] sm:$0xff]  ;;  %v936_v37 = vld [vmem:[%s5871_s29 + $0x93] sm:$0xff]  ;;  %v937_v41 = vld [vmem:[%s5871_s29 + $0x9b] sm:$0xff] }
 0x123   : >> { %4463 = vrot.lane.b32.xlu0 %v4462_v54, %s5400_s6  ;;  %3832 = vmatprep.subr.bf16.mxu1 %v4594_v48  ;;  %v868_v54 = vld [vmem:[%s5871_s29 + $0x61] sm:$0xff]  ;;  %v4512_v32 = vpack.i.bf16 %v933_v53, %v932_v52  ;;  %v872_v39 = vld [vmem:[%s5871_s29 + $0x91] sm:$0xff]  ;;  %v873_v40 = vld [vmem:[%s5871_s29 + $0x99] sm:$0xff]  ;;  %v4532_v46 = vpack.i.bf16 %v937_v41, %v936_v37 }
 0x124   : >> { %v4601_v42 = vld [vmem:[%s5909_s10 + $0x18] sm:$0xff]   ;;  %v4537_v44 = vpack.i.bf16 %v873_v40, %v872_v39  ;;  %v938_v45 = vld [vmem:[%s5871_s29 + $0xab] sm:$0xff]  ;;  %v940_v53 = vld [vmem:[%s5871_s29 + $0xc3] sm:$0xff] }
 0x125   : >> { %3606 = vmatpush3.bf16.msra.mxu0 %v4595_v49  ;;  %3840 = vmatpush3.bf16.msra.mxu1 %v4595_v49  ;;  %v874_v48 = vld [vmem:[%s5871_s29 + $0xa9] sm:$0xff]  ;;  %v875_v49 = vld [vmem:[%s5871_s29 + $0xb1] sm:$0xff]  ;;  %v881_v40 = vld [vmem:[%s5871_s29 + $0xf9] sm:$0xff] }
 0x126   : >> { %4478 = vrot.lane.b32.xlu1 %v4477_v59, %s5400_s6  ;;  %3607 = vmatprep.subr.bf16.mxu0 %v4596_v50  ;;  %v4517_v59 = vpack.i.bf16 %v869_v56, %v868_v54  ;;  %v4547_v52 = vpack.i.bf16 %v875_v49, %v874_v48  ;;  %v876_v56 = vld [vmem:[%s5871_s29 + $0xc1] sm:$0xff]  ;;  %v880_v39 = vld [vmem:[%s5871_s29 + $0xf1] sm:$0xff] }
 0x127   : >> { %4473 = vrot.lane.b32.xlu0 %v4472_v60, %s5400_s6  ;;  %3833 = vmatprep.subr.bf16.mxu1 %v4596_v50  ;;  %v934_v60 = vld [vmem:[%s5871_s29 + $0x7b] sm:$0xff]  ;;  %v4603_v50 = vld [vmem:[%s5909_s10 + $0x10] sm:$0xff]  }
 0x128   : >> { %v4522_v38 = vpack.i.bf16 %v935_v61, %v934_v60  ;;  %v942_v61 = vld [vmem:[%s5871_s29 + $0xdb] sm:$0xff]  ;;  %v944_v41 = vld [vmem:[%s5871_s29 + $0xf3] sm:$0xff] }
 0x129   : >> { %3608 = vmatpush3.bf16.msra.mxu0 %v4597_v57  ;;  %3841 = vmatpush3.bf16.msra.mxu1 %v4597_v57  ;;  %v877_v57 = vld [vmem:[%s5871_s29 + $0xc9] sm:$0xff]  ;;  %v947_v48 = vld [vmem:[%s5871_s29 + $0x113] sm:$0xff] }
 0x12a   : >> { %4488 = vrot.lane.b32.xlu1 %v4487_v34, %s5400_s6  ;;  %v4599_v34 = vld [vmem:[%s5909_s10 + $0x20] sm:$0xff]   ;;  %3609 = vmatprep.subr.bf16.mxu0 %v4598_v58  ;;  %v4557_v60 = vpack.i.bf16 %v877_v57, %v876_v56 }
 0x12b   : >> { %4483 = vrot.lane.b32.xlu0 %v4482_v36, %s5400_s6  ;;  %3834 = vmatprep.subr.bf16.mxu1 %v4598_v58  ;;  %v4527_v36 = vpack.i.bf16 %v871_v33, %v870_v31  ;;  %v4605_v58 = vld [vmem:[%s5909_s10 + $0x8] sm:$0xff]  }
 0x12c   : >> { %v879_v33 = vld [vmem:[%s5871_s29 + $0xe1] sm:$0xff] }
 0x12d   : >> { %3610 = vmatpush3.bf16.msra.mxu0 %v4599_v34  ;;  %3842 = vmatpush3.bf16.msra.mxu1 %v4599_v34  ;;  %v943_v34 = vld [vmem:[%s5871_s29 + $0xe3] sm:$0xff] }
 0x12e   : >> { %4498 = vrot.lane.b32.xlu1 %v4497_v43, %s5400_s6  ;;  %3611 = vmatprep.subr.bf16.mxu0 %v4600_v35  ;;  %v4602_v43 = vld [vmem:[%s5909_s10 + $0x50] sm:$0xff]   ;;  %v892_v57 = vld [vmem:[%s5871_s29 + $0x2] sm:$0xff] }
 0x12f   : >> { %4493 = vrot.lane.b32.xlu0 %v4492_v47, %s5400_s6  ;;  %3835 = vmatprep.subr.bf16.mxu1 %v4600_v35  ;;  %v939_v47 = vld [vmem:[%s5871_s29 + $0xb3] sm:$0xff]  ;;  %v4607_v35 = vld [vmem:[%s5909_s10] sm:$0xff]  }
 0x130   : >> { %v4542_v54 = vpack.i.bf16 %v939_v47, %v938_v45  ;;  %v882_v45 = vld [vmem:[%s5871_s29 + $0x109] sm:$0xff] }
 0x131   : >> { %3612 = vmatpush3.bf16.msra.mxu0 %v4601_v42  ;;  %3843 = vmatpush3.bf16.msra.mxu1 %v4601_v42  ;;  %v945_v42 = vld [vmem:[%s5871_s29 + $0xfb] sm:$0xff]  ;;  %v946_v47 = vld [vmem:[%s5871_s29 + $0x10b] sm:$0xff] }
 0x132   : >> { %4508 = vrot.lane.b32.xlu1 %v4507_v51, %s5400_s6  ;;  %3613 = vmatprep.subr.bf16.mxu0 %v4602_v43  ;;  %v4604_v51 = vld [vmem:[%s5909_s10 + $0x48] sm:$0xff]  }
 0x133   : >> { %4503 = vrot.lane.b32.xlu0 %v4502_v55, %s5400_s6  ;;  %3836 = vmatprep.subr.bf16.mxu1 %v4602_v43  ;;  %v941_v55 = vld [vmem:[%s5871_s29 + $0xcb] sm:$0xff]  ;;  %v4577_v43 = vpack.i.bf16 %v881_v40, %v880_v39 }
 0x134   : >> { %v4552_v31 = vpack.i.bf16 %v941_v55, %v940_v53  ;;  %v917_v53 = vld [vmem:[%s5871_s29 + $0x12a] sm:$0xff] }
 0x135   : >> { %3614 = vmatpush3.bf16.msra.mxu0 %v4603_v50  ;;  %3844 = vmatpush3.bf16.msra.mxu1 %v4603_v50  ;;  %v4582_v50 = vpack.i.bf16 %v947_v48, %v946_v47 }
 0x136   : >> { %4518 = vrot.lane.b32.xlu1 %v4517_v59, %s5400_s6  ;;  %3615 = vmatprep.subr.bf16.mxu0 %v4604_v51  ;;  %v4606_v59 = vld [vmem:[%s5909_s10 + $0x40] sm:$0xff]  }
 0x137   : >> { %4513 = vrot.lane.b32.xlu0 %v4512_v32, %s5400_s6  ;;  %3837 = vmatprep.subr.bf16.mxu1 %v4604_v51  ;;  %v878_v32 = vld [vmem:[%s5871_s29 + $0xd9] sm:$0xff] }
 0x138   : >> { %v4567_v37 = vpack.i.bf16 %v879_v33, %v878_v32  ;;  %v852_v33 = vld [vmem:[%s5871_s29 + $0x120] sm:$0xff] }
 0x139   : >> { %3616 = vmatpush3.bf16.msra.mxu0 %v4605_v58  ;;  %3845 = vmatpush3.bf16.msra.mxu1 %v4605_v58  ;;  %v893_v58 = vld [vmem:[%s5871_s29 + $0xa] sm:$0xff] }
 0x13a   : >> { %4528 = vrot.lane.b32.xlu1 %v4527_v36, %s5400_s6  ;;  %3617 = vmatprep.subr.bf16.mxu0 %v4606_v59  ;;  %v5976_v36 = vld [vmem:[%s5909_s10 + $0x98] sm:$0xff]  }
 0x13b   : >> { %4523 = vrot.lane.b32.xlu0 %v4522_v38, %s5400_s6  ;;  %3838 = vmatprep.subr.bf16.mxu1 %v4606_v59  ;;  %v4562_v38 = vpack.i.bf16 %v943_v34, %v942_v61  ;;  %v853_v34 = vld [vmem:[%s5871_s29 + $0x128] sm:$0xff] }
 0x13d   : >> { %3618 = vmatpush3.bf16.msra.mxu0 %v4607_v35  ;;  %3846 = vmatpush3.bf16.msra.mxu1 %v4607_v35 }
 0x13e   : >> { %4538 = vrot.lane.b32.xlu1 %v4537_v44, %s5400_s6  ;;  %3779 = vmatprep.subr.bf16.mxu1 %v5976_v36  ;;  %v4572_v44 = vpack.i.bf16 %v945_v42, %v944_v41  ;;  %v828_v42 = vld [vmem:[%s5871_s29] sm:$0xff] }
 0x13f   : >> { %4533 = vrot.lane.b32.xlu0 %v4532_v46, %s5400_s6  ;;  %v883_v46 = vld [vmem:[%s5871_s29 + $0x111] sm:$0xff] }
 0x140   : >> { %v4587_v49 = vpack.i.bf16 %v883_v46, %v882_v45 }
 0x142   : >> { %4548 = vrot.lane.b32.xlu1 %v4547_v52, %s5400_s6  ;;  %v916_v52 = vld [vmem:[%s5871_s29 + $0x122] sm:$0xff] }
 0x143   : >> { %4543 = vrot.lane.b32.xlu0 %v4542_v54, %s5400_s6 }
 0x146   : >> { %4558 = vrot.lane.b32.xlu1 %v4557_v60, %s5400_s6 }
 0x147   : >> { %4553 = vrot.lane.b32.xlu0 %v4552_v31, %s5400_s6 }
 0x14a   : >> { %4568 = vrot.lane.b32.xlu1 %v4567_v37, %s5400_s6 }
 0x14b   : >> { %4563 = vrot.lane.b32.xlu0 %v4562_v38, %s5400_s6 }
 0x14e   : >> { %4578 = vrot.lane.b32.xlu1 %v4577_v43, %s5400_s6  ;;  %v829_v43 = vld [vmem:[%s5871_s29 + $0x8] sm:$0xff] }
 0x14f   : >> { %4573 = vrot.lane.b32.xlu0 %v4572_v44, %s5400_s6 }
 0x152   : >> { %4588 = vrot.lane.b32.xlu1 %v4587_v49, %s5400_s6 }
 0x153   : >> { %4583 = vrot.lane.b32.xlu0 %v4582_v50, %s5400_s6 }
 0x188   : >> { %v4444_v51 = vpop.permute.xlu1 %4443 }
 0x189   : >> { %v4446_v54 = vunpack.i.h.bf16 %v4444_v51  ;;  %v4445_v55 = vunpack.i.l.bf16 %v4444_v51  ;;  %v4434_v56 = vpop.permute.xlu0 %4433 }
 0x18a   : >> { %v4436_v59 = vunpack.i.h.bf16 %v4434_v56  ;;  %v4435_v60 = vunpack.i.l.bf16 %v4434_v56 }
 0x18b   : >> { %v1300_v61 = vsel %vm693_vm2, %v916_v52, %v4445_v55  ;;  %v1301_v31 = vsel %vm693_vm2, %v917_v53, %v4446_v54  ;;  %v4609_v53 = vld [vmem:[%s5909_s10 + $0x90] sm:$0xff]   ;;  %v894_v54 = vld [vmem:[%s5871_s29 + $0x1a] sm:$0xff]  ;;  %v895_v55 = vld [vmem:[%s5871_s29 + $0x22] sm:$0xff] }
 0x18c   : >> { %v4449_v32 = vpop.permute.xlu1 %4448  ;;  %v1276_v35 = vsel %vm693_vm2, %v892_v57, %v4435_v60  ;;  %v1277_v37 = vsel %vm693_vm2, %v893_v58, %v4436_v59  ;;  %v1345_v38 = vpack.c.bf16 %v1301_v31, %v1300_v61  ;;  %v830_v31 = vld [vmem:[%s5871_s29 + $0x18] sm:$0xff] }
 0x18d   : >> { %v4451_v39 = vunpack.i.h.bf16 %v4449_v32  ;;  %v4450_v40 = vunpack.i.l.bf16 %v4449_v32  ;;  %v4439_v41 = vpop.permute.xlu0 %4438  ;;  %v1309_v44 = vpack.c.bf16 %v1277_v37, %v1276_v35  ;;  %v831_v32 = vld [vmem:[%s5871_s29 + $0x20] sm:$0xff]  ;;  %v854_v37 = vld [vmem:[%s5871_s29 + $0x138] sm:$0xff] }
 0x18e   : >> { %v4441_v45 = vunpack.i.h.bf16 %v4439_v41  ;;  %v4440_v46 = vunpack.i.l.bf16 %v4439_v41  ;;  %1695 = vmatprep.mubr.bf16.mxu1 %v1345_v38  ;;  %v855_v38 = vld [vmem:[%s5871_s29 + $0x140] sm:$0xff] }
 0x18f   : >> { %v1268_v47 = vsel %vm693_vm2, %v852_v33, %v4450_v40  ;;  %v1269_v48 = vsel %vm693_vm2, %v853_v34, %v4451_v39  ;;  %1599 = vmatprep.mubr.bf16.mxu0 %v1309_v44  ;;  %v4610_v39 = vld [vmem:[%s5909_s10 + $0x88] sm:$0xff]   ;;  %v918_v40 = vld [vmem:[%s5871_s29 + $0x13a] sm:$0xff] }
 0x190   : >> { %v1244_v49 = vsel %vm693_vm2, %v828_v42, %v4440_v46  ;;  %v1245_v50 = vsel %vm693_vm2, %v829_v43, %v4441_v45  ;;  %v4459_v51 = vpop.permute.xlu1 %4458  ;;  %v1344_v52 = vpack.c.bf16 %v1269_v48, %v1268_v47  ;;  %v919_v41 = vld [vmem:[%s5871_s29 + $0x142] sm:$0xff] }
 0x191   : >> { %v4454_v56 = vpop.permute.xlu0 %4453  ;;  %v1308_v57 = vpack.c.bf16 %v1245_v50, %v1244_v49  ;;  %v4461_v60 = vunpack.i.h.bf16 %v4459_v51  ;;  %v4460_v61 = vunpack.i.l.bf16 %v4459_v51 }
 0x192   : >> { %v4456_v58 = vunpack.i.h.bf16 %v4454_v56  ;;  %v4455_v59 = vunpack.i.l.bf16 %v4454_v56  ;;  %1696 = vmatmul.mubr.bf16.vlgmr.msra.gmra.mxu1 %v1344_v52  ;;  %v896_v56 = vld [vmem:[%s5871_s29 + $0x32] sm:$0xff] }
 0x193   : >> { %1600 = vmatmul.mubr.bf16.vlgmr.msra.gmra.mxu0 %v1308_v57  ;;  %3780 = vmatpush3.bf16.msra.mxu1 %v5976_v36  ;;  %v1246_v46 = vsel %vm693_vm2, %v830_v31, %v4460_v61  ;;  %v1247_v36 = vsel %vm693_vm2, %v831_v32, %v4461_v60  ;;  %v897_v57 = vld [vmem:[%s5871_s29 + $0x3a] sm:$0xff] }
 0x194   : >> { %v1279_v33 = vsel %vm693_vm2, %v895_v55, %v4456_v58  ;;  %v1278_v34 = vsel %vm693_vm2, %v894_v54, %v4455_v59  ;;  %v4469_v35 = vpop.permute.xlu1 %4468  ;;  %3781 = vmatprep.subr.bf16.mxu1 %v4609_v53  ;;  %v1311_v59 = vpack.c.bf16 %v1247_v36, %v1246_v46 }
 0x195   : >> { %v4464_v42 = vpop.permute.xlu0 %4463  ;;  %v4471_v43 = vunpack.i.h.bf16 %v4469_v35  ;;  %v4470_v44 = vunpack.i.l.bf16 %v4469_v35  ;;  %v1312_v45 = vpack.c.bf16 %v1279_v33, %v1278_v34  ;;  %v4611_v33 = vld [vmem:[%s5909_s10 + $0x80] sm:$0xff]   ;;  %v832_v34 = vld [vmem:[%s5871_s29 + $0x30] sm:$0xff]  ;;  %v833_v35 = vld [vmem:[%s5871_s29 + $0x38] sm:$0xff] }
 0x196   : >> { %v4466_v47 = vunpack.i.h.bf16 %v4464_v42  ;;  %v4465_v48 = vunpack.i.l.bf16 %v4464_v42  ;;  %v857_v42 = vld [vmem:[%s5871_s29 + $0x158] sm:$0xff] }
 0x197   : >> { %v1270_v49 = vsel %vm693_vm2, %v854_v37, %v4470_v44  ;;  %v1271_v50 = vsel %vm693_vm2, %v855_v38, %v4471_v43  ;;  %1607 = vmatprep.mubr.bf16.mxu0 %v1312_v45  ;;  %3782 = vmatpush3.bf16.msra.mxu1 %v4609_v53  ;;  %v920_v43 = vld [vmem:[%s5871_s29 + $0x152] sm:$0xff]  ;;  %v921_v44 = vld [vmem:[%s5871_s29 + $0x15a] sm:$0xff] }
 0x198   : >> { %v1303_v51 = vsel %vm693_vm2, %v919_v41, %v4466_v47  ;;  %v1302_v52 = vsel %vm693_vm2, %v918_v40, %v4465_v48  ;;  %v4479_v54 = vpop.permute.xlu1 %4478  ;;  %v1347_v55 = vpack.c.bf16 %v1271_v50, %v1270_v49  ;;  %3783 = vmatprep.subr.bf16.mxu1 %v4610_v39  ;;  %v856_v41 = vld [vmem:[%s5871_s29 + $0x150] sm:$0xff] }
 0x199   : >> { %v4474_v58 = vpop.permute.xlu0 %4473  ;;  %v1348_v60 = vpack.c.bf16 %v1303_v51, %v1302_v52  ;;  %v4481_v31 = vunpack.i.h.bf16 %v4479_v54  ;;  %v4480_v32 = vunpack.i.l.bf16 %v4479_v54 }
 0x19a   : >> { %v4476_v61 = vunpack.i.h.bf16 %v4474_v58  ;;  %v4475_v53 = vunpack.i.l.bf16 %v4474_v58  ;;  %v898_v58 = vld [vmem:[%s5871_s29 + $0x4a] sm:$0xff] }
 0x19b   : >> { %1608 = vmatmul.mubr.bf16.gmra.mxu0 %v1311_v59  ;;  %1703 = vmatprep.mubr.bf16.mxu1 %v1348_v60  ;;  %v1248_v48 = vsel %vm693_vm2, %v832_v34, %v4480_v32  ;;  %v1249_v49 = vsel %vm693_vm2, %v833_v35, %v4481_v31  ;;  %v899_v59 = vld [vmem:[%s5871_s29 + $0x52] sm:$0xff] }
 0x19c   : >> { %v1281_v37 = vsel %vm693_vm2, %v897_v57, %v4476_v61  ;;  %v1280_v38 = vsel %vm693_vm2, %v896_v56, %v4475_v53  ;;  %1704 = vmatmul.mubr.bf16.gmra.mxu1 %v1347_v55  ;;  %v4489_v40 = vpop.permute.xlu1 %4488  ;;  %v1314_v61 = vpack.c.bf16 %v1249_v49, %v1248_v48  ;;  %v956_v49 = vld [vmem:[%s5871_s29 + $0x4] sm:$0xff] }
 0x19d   : >> { %v4484_v45 = vpop.permute.xlu0 %4483  ;;  %v4491_v46 = vunpack.i.h.bf16 %v4489_v40  ;;  %v4490_v36 = vunpack.i.l.bf16 %v4489_v40  ;;  %v1315_v47 = vpack.c.bf16 %v1281_v37, %v1280_v38  ;;  %3784 = vmatpush3.bf16.msra.mxu1 %v4610_v39  ;;  %v834_v37 = vld [vmem:[%s5871_s29 + $0x48] sm:$0xff]  ;;  %v835_v38 = vld [vmem:[%s5871_s29 + $0x50] sm:$0xff] }
 0x19e   : >> { %v4486_v50 = vunpack.i.h.bf16 %v4484_v45  ;;  %v4485_v51 = vunpack.i.l.bf16 %v4484_v45  ;;  %3785 = vmatprep.subr.bf16.mxu1 %v4611_v33  ;;  %v923_v45 = vld [vmem:[%s5871_s29 + $0x172] sm:$0xff] }
 0x19f   : >> { %v1272_v52 = vsel %vm693_vm2, %v856_v41, %v4490_v36  ;;  %v1273_v54 = vsel %vm693_vm2, %v857_v42, %v4491_v46  ;;  %1615 = vmatprep.mubr.bf16.mxu0 %v1315_v47  ;;  %v922_v42 = vld [vmem:[%s5871_s29 + $0x16a] sm:$0xff] }
 0x1a0   : >> { %v1305_v55 = vsel %vm693_vm2, %v921_v44, %v4486_v50  ;;  %v1304_v56 = vsel %vm693_vm2, %v920_v43, %v4485_v51  ;;  %v4499_v57 = vpop.permute.xlu1 %4498  ;;  %v1350_v39 = vpack.c.bf16 %v1273_v54, %v1272_v52  ;;  %v858_v44 = vld [vmem:[%s5871_s29 + $0x168] sm:$0xff] }
 0x1a1   : >> { %v4494_v60 = vpop.permute.xlu0 %4493  ;;  %v1351_v53 = vpack.c.bf16 %v1305_v55, %v1304_v56  ;;  %3786 = vmatpush3.bf16.msra.mxu1 %v4611_v33  ;;  %v4501_v34 = vunpack.i.h.bf16 %v4499_v57  ;;  %v4500_v35 = vunpack.i.l.bf16 %v4499_v57  ;;  %v859_v33 = vld [vmem:[%s5871_s29 + $0x170] sm:$0xff] }
 0x1a2   : >> { %v4496_v31 = vunpack.i.h.bf16 %v4494_v60  ;;  %v4495_v32 = vunpack.i.l.bf16 %v4494_v60  ;;  %v957_v50 = vld [vmem:[%s5871_s29 + $0xc] sm:$0xff] }
 0x1a3   : >> { %1616 = vmatmul.mubr.bf16.gmra.mxu0 %v1314_v61  ;;  %1711 = vmatprep.mubr.bf16.mxu1 %v1351_v53  ;;  %v1250_v51 = vsel %vm693_vm2, %v834_v37, %v4500_v35  ;;  %v1251_v52 = vsel %vm693_vm2, %v835_v38, %v4501_v34  ;;  %v1310_v53 = vpack.c.bf16 %v957_v50, %v956_v49  ;;  %v901_v34 = vld [vmem:[%s5871_s29 + $0x6a] sm:$0xff]  ;;  %v902_v49 = vld [vmem:[%s5871_s29 + $0x7a] sm:$0xff]  ;;  %v903_v50 = vld [vmem:[%s5871_s29 + $0x82] sm:$0xff] }
 0x1a4   : >> { %v1283_v40 = vsel %vm693_vm2, %v899_v59, %v4496_v31  ;;  %v1282_v41 = vsel %vm693_vm2, %v898_v58, %v4495_v32  ;;  %1712 = vmatmul.mubr.bf16.gmra.mxu1 %v1350_v39  ;;  %v4509_v43 = vpop.permute.xlu1 %4508  ;;  %v900_v59 = vld [vmem:[%s5871_s29 + $0x62] sm:$0xff]  ;;  %v1317_v31 = vpack.c.bf16 %v1251_v52, %v1250_v51 }
 0x1a5   : >> { %v4504_v46 = vpop.permute.xlu0 %4503  ;;  %v4511_v36 = vunpack.i.h.bf16 %v4509_v43  ;;  %v4510_v47 = vunpack.i.l.bf16 %v4509_v43  ;;  %v1318_v48 = vpack.c.bf16 %v1283_v40, %v1282_v41  ;;  %v836_v40 = vld [vmem:[%s5871_s29 + $0x60] sm:$0xff]  ;;  %v837_v41 = vld [vmem:[%s5871_s29 + $0x68] sm:$0xff] }
 0x1a6   : >> { %v4506_v54 = vunpack.i.h.bf16 %v4504_v46  ;;  %v4505_v55 = vunpack.i.l.bf16 %v4504_v46 }
 0x1a7   : >> { %v1274_v56 = vsel %vm693_vm2, %v858_v44, %v4510_v47  ;;  %v1275_v57 = vsel %vm693_vm2, %v859_v33, %v4511_v36  ;;  %1623 = vmatprep.mubr.bf16.mxu0 %v1318_v48  ;;  %v958_v36 = vld [vmem:[%s5871_s29 + $0x1c] sm:$0xff]  ;;  %v959_v47 = vld [vmem:[%s5871_s29 + $0x24] sm:$0xff] }
 0x1a8   : >> { %v1307_v39 = vsel %vm693_vm2, %v923_v45, %v4506_v54  ;;  %v1306_v58 = vsel %vm693_vm2, %v922_v42, %v4505_v55  ;;  %v1353_v60 = vpack.c.bf16 %v1275_v57, %v1274_v56  ;;  %v4519_v61 = vpop.permute.xlu1 %4518  ;;  %v960_v56 = vld [vmem:[%s5871_s29 + $0x34] sm:$0xff]  ;;  %v961_v57 = vld [vmem:[%s5871_s29 + $0x3c] sm:$0xff] }
 0x1a9   : >> { %v1354_v32 = vpack.c.bf16 %v1307_v39, %v1306_v58  ;;  %v4514_v35 = vpop.permute.xlu0 %4513  ;;  %v4521_v37 = vunpack.i.h.bf16 %v4519_v61  ;;  %v4520_v38 = vunpack.i.l.bf16 %v4519_v61  ;;  %v1313_v58 = vpack.c.bf16 %v959_v47, %v958_v36  ;;  %v963_v36 = vld [vmem:[%s5871_s29 + $0x54] sm:$0xff] }
 0x1aa   : >> { %v4516_v43 = vunpack.i.h.bf16 %v4514_v35  ;;  %v4515_v44 = vunpack.i.l.bf16 %v4514_v35  ;;  %v1316_v35 = vpack.c.bf16 %v961_v57, %v960_v56  ;;  %v840_v57 = vld [vmem:[%s5871_s29 + $0x90] sm:$0xff] }
 0x1ab   : >> { %1624 = vmatmul.mubr.bf16.gmra.mxu0 %v1317_v31  ;;  %1719 = vmatprep.mubr.bf16.mxu1 %v1354_v32  ;;  %v1252_v45 = vsel %vm693_vm2, %v836_v40, %v4520_v38  ;;  %v1253_v46 = vsel %vm693_vm2, %v837_v41, %v4521_v37  ;;  %v838_v31 = vld [vmem:[%s5871_s29 + $0x78] sm:$0xff]  ;;  %v839_v32 = vld [vmem:[%s5871_s29 + $0x80] sm:$0xff] }
 0x1ac   : >> { %v1285_v42 = vsel %vm693_vm2, %v901_v34, %v4516_v43  ;;  %v1284_v33 = vsel %vm693_vm2, %v900_v59, %v4515_v44  ;;  %1720 = vmatmul.mubr.bf16.gmra.mxu1 %v1353_v60  ;;  %v4529_v52 = vpop.permute.xlu1 %4528  ;;  %v1320_v39 = vpack.c.bf16 %v1253_v46, %v1252_v45  ;;  %v904_v38 = vld [vmem:[%s5871_s29 + $0x92] sm:$0xff]  ;;  %v905_v40 = vld [vmem:[%s5871_s29 + $0x9a] sm:$0xff] }
 0x1ad   : >> { %v1321_v48 = vpack.c.bf16 %v1285_v42, %v1284_v33  ;;  %3787 = vmatprep.mubr.msk.bf16.mxu1 %vm693_vm2, %v1310_v53  ;;  %v4524_v51 = vpop.permute.xlu0 %4523  ;;  %v4531_v61 = vunpack.i.h.bf16 %v4529_v52  ;;  %v4530_v53 = vunpack.i.l.bf16 %v4529_v52  ;;  %v962_v46 = vld [vmem:[%s5871_s29 + $0x4c] sm:$0xff] }
 0x1ae   : >> { %v4526_v54 = vunpack.i.h.bf16 %v4524_v51  ;;  %v4525_v55 = vunpack.i.l.bf16 %v4524_v51  ;;  %v1319_v52 = vpack.c.bf16 %v963_v36, %v962_v46 }
 0x1af   : >> { %1631 = vmatprep.mubr.bf16.mxu0 %v1321_v48  ;;  %v1254_v44 = vsel %vm693_vm2, %v838_v31, %v4530_v53  ;;  %v1255_v42 = vsel %vm693_vm2, %v839_v32, %v4531_v61  ;;  %v964_v48 = vld [vmem:[%s5871_s29 + $0x64] sm:$0xff]  ;;  %v907_v53 = vld [vmem:[%s5871_s29 + $0xb2] sm:$0xff] }
 0x1b0   : >> { %v1287_v59 = vsel %vm693_vm2, %v903_v50, %v4526_v54  ;;  %v1286_v60 = vsel %vm693_vm2, %v902_v49, %v4525_v55  ;;  %v4539_v47 = vpop.permute.xlu1 %4538  ;;  %v965_v49 = vld [vmem:[%s5871_s29 + $0x6c] sm:$0xff]  ;;  %v1323_v51 = vpack.c.bf16 %v1255_v42, %v1254_v44 }
 0x1b1   : >> { %v1324_v34 = vpack.c.bf16 %v1287_v59, %v1286_v60  ;;  %v4534_v37 = vpop.permute.xlu0 %4533  ;;  %v4541_v54 = vunpack.i.h.bf16 %v4539_v47  ;;  %v4540_v55 = vunpack.i.l.bf16 %v4539_v47  ;;  %v906_v61 = vld [vmem:[%s5871_s29 + $0xaa] sm:$0xff] }
 0x1b2   : >> { %v4536_v41 = vunpack.i.h.bf16 %v4534_v37  ;;  %v4535_v43 = vunpack.i.l.bf16 %v4534_v37  ;;  %v966_v37 = vld [vmem:[%s5871_s29 + $0x7c] sm:$0xff]  ;;  %v842_v47 = vld [vmem:[%s5871_s29 + $0xa8] sm:$0xff] }
 0x1b3   : >> { %1632 = vmatmul.mubr.bf16.gmra.mxu0 %v1320_v39  ;;  %v841_v39 = vld [vmem:[%s5871_s29 + $0x98] sm:$0xff]  ;;  %v1256_v31 = vsel %vm693_vm2, %v840_v57, %v4540_v55 }
 0x1b4   : >> { %3788 = vmatmul.mubr.msk.bf16.vlgmr.msra.gmra.mxu1 %vm693_vm2, %v1313_v58  ;;  %1639 = vmatprep.mubr.bf16.mxu0 %v1324_v34  ;;  %v1289_v33 = vsel %vm693_vm2, %v905_v40, %v4536_v41  ;;  %v1288_v45 = vsel %vm693_vm2, %v904_v38, %v4535_v43  ;;  %v1322_v58 = vpack.c.bf16 %v965_v49, %v964_v48  ;;  %v967_v38 = vld [vmem:[%s5871_s29 + $0x84] sm:$0xff]  ;;  %v4549_v40 = vpop.permute.xlu1 %4548  ;;  %v968_v41 = vld [vmem:[%s5871_s29 + $0x94] sm:$0xff]  ;;  %v969_v43 = vld [vmem:[%s5871_s29 + $0x9c] sm:$0xff] }
 0x1b5   : >> { %3791 = vmatprep.mubr.msk.bf16.mxu1 %vm693_vm2, %v1316_v35  ;;  %v4544_v50 = vpop.permute.xlu0 %4543  ;;  %v1327_v56 = vpack.c.bf16 %v1289_v33, %v1288_v45  ;;  %v1257_v32 = vsel %vm693_vm2, %v841_v39, %v4541_v54  ;;  %v1325_v33 = vpack.c.bf16 %v967_v38, %v966_v37  ;;  %v4551_v45 = vunpack.i.h.bf16 %v4549_v40  ;;  %v843_v48 = vld [vmem:[%s5871_s29 + $0xb0] sm:$0xff] }
 0x1b6   : >> { %v4546_v59 = vunpack.i.h.bf16 %v4544_v50  ;;  %v4545_v60 = vunpack.i.l.bf16 %v4544_v50  ;;  %v1326_v42 = vpack.c.bf16 %v1257_v32, %v1256_v31  ;;  %v4550_v46 = vunpack.i.l.bf16 %v4549_v40  ;;  %v909_v54 = vld [vmem:[%s5871_s29 + $0xca] sm:$0xff]  ;;  %v844_v40 = vld [vmem:[%s5871_s29 + $0xc0] sm:$0xff] }
 0x1b7   : >> { %v1328_v49 = vpack.c.bf16 %v969_v43, %v968_v41  ;;  %v845_v41 = vld [vmem:[%s5871_s29 + $0xc8] sm:$0xff] }
 0x1b8   : >> { %v1291_v34 = vsel %vm693_vm2, %v907_v53, %v4546_v59  ;;  %v1290_v35 = vsel %vm693_vm2, %v906_v61, %v4545_v60  ;;  %v1258_v55 = vsel %vm693_vm2, %v842_v47, %v4550_v46  ;;  %v971_v59 = vld [vmem:[%s5871_s29 + $0xb4] sm:$0xff]  ;;  %v4559_v60 = vpop.permute.xlu1 %4558  ;;  %v972_v61 = vld [vmem:[%s5871_s29 + $0xc4] sm:$0xff]  ;;  %v973_v53 = vld [vmem:[%s5871_s29 + $0xcc] sm:$0xff] }
 0x1b9   : >> { %v4554_v44 = vpop.permute.xlu0 %4553  ;;  %v1330_v36 = vpack.c.bf16 %v1291_v34, %v1290_v35  ;;  %v4561_v35 = vunpack.i.h.bf16 %v4559_v60  ;;  %v4560_v37 = vunpack.i.l.bf16 %v4559_v60  ;;  %v1334_v43 = vpack.c.bf16 %v973_v53, %v972_v61  ;;  %v846_v60 = vld [vmem:[%s5871_s29 + $0xd8] sm:$0xff]  ;;  %v847_v61 = vld [vmem:[%s5871_s29 + $0xe0] sm:$0xff] }
 0x1ba   : >> { %v4556_v50 = vunpack.i.h.bf16 %v4554_v44 }
 0x1bb   : >> { %1640 = vmatmul.mubr.bf16.gmra.mxu0 %v1323_v51  ;;  %v4555_v51 = vunpack.i.l.bf16 %v4554_v44  ;;  %v1260_v46 = vsel %vm693_vm2, %v844_v40, %v4560_v37 }
 0x1bc   : >> { %3792 = vmatmul.mubr.msk.bf16.gmra.mxu1 %vm693_vm2, %v1319_v52  ;;  %1647 = vmatprep.mubr.bf16.mxu0 %v1327_v56  ;;  %v908_v52 = vld [vmem:[%s5871_s29 + $0xc2] sm:$0xff]  ;;  %v1259_v56 = vsel %vm693_vm2, %v843_v48, %v4551_v45  ;;  %v1293_v57 = vsel %vm693_vm2, %v909_v54, %v4556_v50 }
 0x1bd   : >> { %3795 = vmatprep.mubr.msk.bf16.mxu1 %vm693_vm2, %v1322_v58  ;;  %v1292_v39 = vsel %vm693_vm2, %v908_v52, %v4555_v51  ;;  %v970_v58 = vld [vmem:[%s5871_s29 + $0xac] sm:$0xff]  ;;  %v4564_v31 = vpop.permute.xlu0 %4563  ;;  %v1329_v32 = vpack.c.bf16 %v1259_v56, %v1258_v55  ;;  %v911_v45 = vld [vmem:[%s5871_s29 + $0xe2] sm:$0xff]  ;;  %v4569_v51 = vpop.permute.xlu1 %4568  ;;  %v976_v52 = vld [vmem:[%s5871_s29 + $0xf4] sm:$0xff] }
 0x1be   : >> { %v1331_v34 = vpack.c.bf16 %v971_v59, %v970_v58  ;;  %v1333_v38 = vpack.c.bf16 %v1293_v57, %v1292_v39  ;;  %v4566_v44 = vunpack.i.h.bf16 %v4564_v31  ;;  %v975_v50 = vld [vmem:[%s5871_s29 + $0xe4] sm:$0xff]  ;;  %v977_v54 = vld [vmem:[%s5871_s29 + $0xfc] sm:$0xff]  ;;  %v4571_v39 = vunpack.i.h.bf16 %v4569_v51 }
 0x1bf   : >> { %v4570_v58 = vunpack.i.l.bf16 %v4569_v51  ;;  %v1340_v53 = vpack.c.bf16 %v977_v54, %v976_v52  ;;  %v848_v51 = vld [vmem:[%s5871_s29 + $0xf0] sm:$0xff]  ;;  %v849_v52 = vld [vmem:[%s5871_s29 + $0xf8] sm:$0xff] }
 0x1c0   : >> { %v1295_v47 = vsel %vm693_vm2, %v911_v45, %v4566_v44  ;;  %v979_v44 = vld [vmem:[%s5871_s29 + $0x114] sm:$0xff]  ;;  %v981_v45 = vld [vmem:[%s5871_s29 + $0x12c] sm:$0xff] }
 0x1c1   : >> { %v4574_v55 = vpop.permute.xlu0 %4573  ;;  %v1262_v37 = vsel %vm693_vm2, %v846_v60, %v4570_v58 }
 0x1c3   : >> { %1648 = vmatmul.mubr.bf16.gmra.mxu0 %v1326_v42  ;;  %v4565_v42 = vunpack.i.l.bf16 %v4564_v31  ;;  %v4576_v31 = vunpack.i.h.bf16 %v4574_v55 }
 0x1c4   : >> { %3796 = vmatmul.mubr.msk.bf16.gmra.mxu1 %vm693_vm2, %v1325_v33  ;;  %1655 = vmatprep.mubr.bf16.mxu0 %v1330_v36  ;;  %v910_v33 = vld [vmem:[%s5871_s29 + $0xda] sm:$0xff]  ;;  %v1261_v36 = vsel %vm693_vm2, %v845_v41, %v4561_v35 }
 0x1c5   : >> { %3799 = vmatprep.mubr.msk.bf16.mxu1 %vm693_vm2, %v1328_v49  ;;  %v1294_v48 = vsel %vm693_vm2, %v910_v33, %v4565_v42  ;;  %v974_v49 = vld [vmem:[%s5871_s29 + $0xdc] sm:$0xff]  ;;  %v1332_v56 = vpack.c.bf16 %v1261_v36, %v1260_v46  ;;  %v4579_v42 = vpop.permute.xlu1 %4578  ;;  %v980_v33 = vld [vmem:[%s5871_s29 + $0x124] sm:$0xff]  ;;  %v4584_v46 = vpop.permute.xlu0 %4583 }
 0x1c6   : >> { %v1337_v57 = vpack.c.bf16 %v975_v50, %v974_v49  ;;  %v1336_v59 = vpack.c.bf16 %v1295_v47, %v1294_v48  ;;  %v913_v35 = vld [vmem:[%s5871_s29 + $0xfa] sm:$0xff]  ;;  %v4581_v48 = vunpack.i.h.bf16 %v4579_v42  ;;  %v4580_v49 = vunpack.i.l.bf16 %v4579_v42  ;;  %v851_v42 = vld [vmem:[%s5871_s29 + $0x110] sm:$0xff] }
 0x1c7   : >> { %v1297_v40 = vsel %vm693_vm2, %v913_v35, %v4576_v31  ;;  %v1346_v54 = vpack.c.bf16 %v981_v45, %v980_v33  ;;  %v983_v31 = vld [vmem:[%s5871_s29 + $0x144] sm:$0xff]  ;;  %v985_v35 = vld [vmem:[%s5871_s29 + $0x15c] sm:$0xff] }
 0x1c8   : >> { %v1264_v58 = vsel %vm693_vm2, %v848_v51, %v4580_v49 }
 0x1cb   : >> { %1656 = vmatmul.mubr.bf16.gmra.mxu0 %v1329_v32  ;;  %v4575_v32 = vunpack.i.l.bf16 %v4574_v55  ;;  %v4586_v55 = vunpack.i.h.bf16 %v4584_v46 }
 0x1cc   : >> { %3800 = vmatmul.mubr.msk.bf16.gmra.mxu1 %vm693_vm2, %v1331_v34  ;;  %1663 = vmatprep.mubr.bf16.mxu0 %v1333_v38  ;;  %v912_v34 = vld [vmem:[%s5871_s29 + $0xf2] sm:$0xff]  ;;  %v1263_v38 = vsel %vm693_vm2, %v847_v61, %v4571_v39 }
 0x1cd   : >> { %3803 = vmatprep.mubr.msk.bf16.mxu1 %vm693_vm2, %v1334_v43  ;;  %v1296_v41 = vsel %vm693_vm2, %v912_v34, %v4575_v32  ;;  %v978_v43 = vld [vmem:[%s5871_s29 + $0x10c] sm:$0xff]  ;;  %v1335_v36 = vpack.c.bf16 %v1263_v38, %v1262_v37  ;;  %v4589_v32 = vpop.permute.xlu1 %4588  ;;  %v984_v34 = vld [vmem:[%s5871_s29 + $0x154] sm:$0xff] }
 0x1ce   : >> { %v1343_v47 = vpack.c.bf16 %v979_v44, %v978_v43  ;;  %v1339_v50 = vpack.c.bf16 %v1297_v40, %v1296_v41  ;;  %v915_v39 = vld [vmem:[%s5871_s29 + $0x112] sm:$0xff]  ;;  %v4591_v41 = vunpack.i.h.bf16 %v4589_v32  ;;  %v4590_v43 = vunpack.i.l.bf16 %v4589_v32  ;;  %v850_v44 = vld [vmem:[%s5871_s29 + $0x108] sm:$0xff] }
 0x1cf   : >> { %v1299_v60 = vsel %vm693_vm2, %v915_v39, %v4586_v55  ;;  %v1352_v33 = vpack.c.bf16 %v985_v35, %v984_v34 }
 0x1d0   : >> { %v1266_v45 = vsel %vm693_vm2, %v850_v44, %v4590_v43 }
 0x1d3   : >> { %1664 = vmatmul.mubr.bf16.gmra.mxu0 %v1332_v56  ;;  %v4585_v56 = vunpack.i.l.bf16 %v4584_v46  ;;  %v1267_v46 = vsel %vm693_vm2, %v851_v42, %v4591_v41 }
 0x1d4   : >> { %3804 = vmatmul.mubr.msk.bf16.gmra.mxu1 %vm693_vm2, %v1337_v57  ;;  %1671 = vmatprep.mubr.bf16.mxu0 %v1336_v59  ;;  %v914_v57 = vld [vmem:[%s5871_s29 + $0x10a] sm:$0xff]  ;;  %v1265_v59 = vsel %vm693_vm2, %v849_v52, %v4581_v48  ;;  %v1341_v48 = vpack.c.bf16 %v1267_v46, %v1266_v45 }
 0x1d5   : >> { %3807 = vmatprep.mubr.msk.bf16.mxu1 %vm693_vm2, %v1340_v53  ;;  %v1298_v61 = vsel %vm693_vm2, %v914_v57, %v4585_v56  ;;  %v982_v53 = vld [vmem:[%s5871_s29 + $0x13c] sm:$0xff]  ;;  %v1338_v37 = vpack.c.bf16 %v1265_v59, %v1264_v58 }
 0x1d6   : >> { %v1342_v38 = vpack.c.bf16 %v1299_v60, %v1298_v61  ;;  %v1349_v40 = vpack.c.bf16 %v983_v31, %v982_v53 }
 0x1db   : >> { %1672 = vmatmul.mubr.bf16.gmra.mxu0 %v1335_v36  ;;  %v986_v36 = vld [vmem:[%s5871_s29 + $0x16c] sm:$0xff] }
 0x1dc   : >> { %3808 = vmatmul.mubr.msk.bf16.gmra.mxu1 %vm693_vm2, %v1343_v47  ;;  %1679 = vmatprep.mubr.bf16.mxu0 %v1339_v50  ;;  %v987_v47 = vld [vmem:[%s5871_s29 + $0x174] sm:$0xff] }
 0x1dd   : >> { %3811 = vmatprep.mubr.msk.bf16.mxu1 %vm693_vm2, %v1346_v54  ;;  %v1355_v49 = vpack.c.bf16 %v987_v47, %v986_v36 }
 0x1e3   : >> { %1680 = vmatmul.mubr.bf16.gmra.mxu0 %v1338_v37 }
 0x1e4   : >> { %3812 = vmatmul.mubr.msk.bf16.gmra.mxu1 %vm693_vm2, %v1349_v40  ;;  %1687 = vmatprep.mubr.bf16.mxu0 %v1342_v38 }
 0x1e5   : >> { %3815 = vmatprep.mubr.msk.bf16.mxu1 %vm693_vm2, %v1352_v33 }
 0x1eb   : >> { %1688 = vmatmul.mubr.bf16.gmra.mxu0 %v1341_v48 }
 0x1ec   : >> { %3816 = vmatmul.mubr.msk.bf16.gmra.mxu1 %vm693_vm2, %v1355_v49 }
 0x252   : >> { %v3691_v50 = vpop.f32.mrf.mxu1 }
 0x253   : >> { %v3619_v51 = vpop.f32.mrf.mxu0 }
 0x254   : >> { %v3692_v52 = vpop.f32.mrf.mxu1 }
 0x255   : >> { %v3620_v54 = vpop.f32.mrf.mxu0  ;;  %v6175_v55 = vadd.f32 %v3692_v52, %v3691_v50 }
 0x256   : >> { %v3621_v56 = vadd.f32 %v3620_v54, %v3619_v51  ;;  %v3694_v57 = vpop.f32.mrf.mxu1 }
 0x257   : >> { %v3622_v39 = vpop.f32.mrf.mxu0 }
 0x258   : >> { %v3695_v58 = vpop.f32.mrf.mxu1 }
 0x259   : >> { %v3623_v59 = vpop.f32.mrf.mxu0  ;;  %v6177_v60 = vadd.f32 %v3695_v58, %v3694_v57 }
 0x25a   : >> { %v3624_v61 = vadd.f32 %v3623_v59, %v3622_v39 }
 0x25b   : >> { %v3625_v53 = vpop.f32.mrf.mxu0 }
 0x25c   : >> { %v3697_v31 = vpop.f32.mrf.mxu1 }
 0x25d   : >> { %v3626_v32 = vpop.f32.mrf.mxu0 }
 0x25e   : >> { %v3627_v34 = vadd.f32 %v3626_v32, %v3625_v53  ;;  %v3698_v35 = vpop.f32.mrf.mxu1 }
 0x25f   : >> { %v6179_v37 = vadd.f32 %v3698_v35, %v3697_v31  ;;  %v3628_v38 = vpop.f32.mrf.mxu0 }
 0x260   : >> { %v3700_v40 = vpop.f32.mrf.mxu1 }
 0x261   : >> { %v3629_v41 = vpop.f32.mrf.mxu0 }
 0x262   : >> { %v3630_v43 = vadd.f32 %v3629_v41, %v3628_v38  ;;  %v3701_v44 = vpop.f32.mrf.mxu1 }
 0x263   : >> { %v6181_v42 = vadd.f32 %v3701_v44, %v3700_v40  ;;  %v3631_v33 = vpop.f32.mrf.mxu0 }
 0x264   : >> { %v3703_v45 = vpop.f32.mrf.mxu1 }
 0x265   : >> { %v3632_v46 = vpop.f32.mrf.mxu0 }
 0x266   : >> { %v3633_v36 = vadd.f32 %v3632_v46, %v3631_v33  ;;  %v3704_v47 = vpop.f32.mrf.mxu1 }
 0x267   : >> { %v6183_v48 = vadd.f32 %v3704_v47, %v3703_v45  ;;  %v3634_v49 = vpop.f32.mrf.mxu0 }
 0x268   : >> { %v3706_v50 = vpop.f32.mrf.mxu1 }
 0x269   : >> { %v3635_v51 = vpop.f32.mrf.mxu0 }
 0x26a   : >> { %v3636_v52 = vadd.f32 %v3635_v51, %v3634_v49  ;;  %v3707_v54 = vpop.f32.mrf.mxu1 }
 0x26b   : >> { %v6185_v57 = vadd.f32 %v3707_v54, %v3706_v50  ;;  %v3637_v39 = vpop.f32.mrf.mxu0 }
 0x26c   : >> { %v3709_v58 = vpop.f32.mrf.mxu1 }
 0x26d   : >> { %v3638_v59 = vpop.f32.mrf.mxu0 }
 0x26e   : >> { %v3639_v53 = vadd.f32 %v3638_v59, %v3637_v39  ;;  %v3710_v31 = vpop.f32.mrf.mxu1 }
 0x26f   : >> { %v6187_v32 = vadd.f32 %v3710_v31, %v3709_v58  ;;  %v3640_v35 = vpop.f32.mrf.mxu0 }
 0x270   : >> { %v6189_v38 = vpop.f32.mrf.mxu1 }
 0x271   : >> { %v3641_v40 = vpop.f32.mrf.mxu0 }
 0x272   : >> { %v3642_v41 = vadd.f32 %v3641_v40, %v3640_v35  ;;  %v6191_v44 = vpop.f32.mrf.mxu1 }
 0x273   : >> { %v3643_v33 = vpop.f32.mrf.mxu0 }
 0x274   : >> { %v3789_v45 = vpop.f32.mrf.mxu1 }
 0x275   : >> { %v1771_v46 = vadd.f32 %v3789_v45, %v3627_v34  ;;  %v3644_v47 = vpop.f32.mrf.mxu0 }
 0x276   : >> { %v1762_v49 = vpop.f32.mrf.mxu1  ;;  %v3645_v58 = vadd.f32 %v3644_v47, %v3643_v33 }
 0x277   : >> { %v6194_v28 = vadd.f32 %v5252_v28, %v1771_v46   ;;  %v1763_v51 = vadd.f32 %v3621_v56, %v1762_v49  ;;  %v3646_v54 = vpop.f32.mrf.mxu0 }
 0x278   : >> { %v3790_v39 = vpop.f32.mrf.mxu1 }
 0x279   : >> { %7472 = vst [vmem:[#allocation6_spill] sm:$0xff] %v6194_v28  ;;  %v6197_v30 = vadd.f32 %v5260_v30, %v1763_v51   ;;  %v1774_v59 = vadd.f32 %v3790_v39, %v3630_v43  ;;  %v3647_v31 = vpop.f32.mrf.mxu0 }
 0x27a   : >> { %v1765_v26 = vpop.f32.mrf.mxu1 }
 0x27b   : >> { %7473 = vst [vmem:[#allocation7_spill] sm:$0xff] %v6197_v30  ;;  %v6200_v25 = vadd.f32 %v5248_v25, %v1774_v59   ;;  %v1766_v40 = vadd.f32 %v3624_v61, %v1765_v26  ;;  %v3649_v5 = vpop.f32.mrf.mxu0 }
 0x27c   : >> { %v3793_v34 = vpop.f32.mrf.mxu1 }
 0x27d   : >> { %7474 = vst [vmem:[#allocation8_spill] sm:$0xff] %v6200_v25  ;;  %v6203_v29 = vadd.f32 %v5256_v29, %v1766_v40   ;;  %v1787_v46 = vadd.f32 %v3793_v34, %v3639_v53  ;;  %v3650_v28 = vpop.f32.mrf.mxu0 }
 0x27e   : >> { %v1778_v56 = vpop.f32.mrf.mxu1  ;;  %v3651_v61 = vadd.f32 %v3650_v28, %v3649_v5  ;;  %v3648_v28 = vadd.f32 %v3647_v31, %v3646_v54 }
 0x27f   : >> { %7475 = vst [vmem:[#allocation9_spill] sm:$0xff] %v6203_v29  ;;  %v6206_v22 = vadd.f32 %v5236_v22, %v1787_v46   ;;  %v1779_v51 = vadd.f32 %v3633_v36, %v1778_v56  ;;  %v3652_v30 = vpop.f32.mrf.mxu0 }
 0x280   : >> { %v3794_v43 = vpop.f32.mrf.mxu1 }
 0x281   : >> { %v7476_v49 = vmov %v6206_v22  ;;  %v6209_v24 = vadd.f32 %v5244_v24, %v1779_v51   ;;  %v1790_v59 = vadd.f32 %v3794_v43, %v3642_v41  ;;  %v3653_v25 = vpop.f32.mrf.mxu0 }
 0x282   : >> { %v1781_v26 = vpop.f32.mrf.mxu1  ;;  %v3654_v45 = vadd.f32 %v3653_v25, %v3652_v30 }
 0x283   : >> { %v7477_v39 = vmov %v6209_v24  ;;  %v6212_v21 = vadd.f32 %v5232_v21, %v1790_v59   ;;  %v1782_v29 = vadd.f32 %v3636_v52, %v1781_v26  ;;  %v3655_v53 = vpop.f32.mrf.mxu0 }
 0x284   : >> { %v3797_v34 = vpop.f32.mrf.mxu1 }
 0x285   : >> { %v7478_v40 = vmov %v6212_v21  ;;  %v6215_v23 = vadd.f32 %v5240_v23, %v1782_v29   ;;  %v1803_v22 = vadd.f32 %v3797_v34, %v3651_v61  ;;  %v3656_v36 = vpop.f32.mrf.mxu0 }
 0x286   : >> { %v1794_v56 = vpop.f32.mrf.mxu1  ;;  %v3657_v30 = vadd.f32 %v3656_v36, %v3655_v53 }
 0x287   : >> { %v7479_v46 = vmov %v6215_v23  ;;  %v6218_v18 = vadd.f32 %v5220_v18, %v1803_v22   ;;  %v1795_v24 = vadd.f32 %v3645_v58, %v1794_v56  ;;  %v3658_v51 = vpop.f32.mrf.mxu0 }
 0x288   : >> { %v3798_v5 = vpop.f32.mrf.mxu1 }
 0x289   : >> { %v7480_v41 = vmov %v6218_v18  ;;  %v6221_v20 = vadd.f32 %v5228_v20, %v1795_v24   ;;  %v1806_v21 = vadd.f32 %v3798_v5, %v3654_v45  ;;  %v3659_v43 = vpop.f32.mrf.mxu0 }
 0x28a   : >> { %v1797_v33 = vpop.f32.mrf.mxu1  ;;  %v3660_v45 = vadd.f32 %v3659_v43, %v3658_v51 }
 0x28b   : >> { %v7481_v52 = vmov %v6221_v20  ;;  %v6224_v17 = vadd.f32 %v5216_v17, %v1806_v21   ;;  %v1798_v23 = vadd.f32 %v3648_v28, %v1797_v33  ;;  %v3661_v59 = vpop.f32.mrf.mxu0 }
 0x28c   : >> { %v3801_v26 = vpop.f32.mrf.mxu1 }
 0x28d   : >> { %v7482_v47 = vmov %v6224_v17  ;;  %v6227_v19 = vadd.f32 %v5224_v19, %v1798_v23   ;;  %v3662_v18 = vpop.f32.mrf.mxu0 }
 0x28e   : >> { %v3663_v58 = vadd.f32 %v3662_v18, %v3661_v59  ;;  %v1810_v25 = vpop.f32.mrf.mxu1 }
 0x28f   : >> { %v7483_v61 = vmov %v6227_v19  ;;  %v1811_v54 = vadd.f32 %v3657_v30, %v1810_v25  ;;  %v3664_v31 = vpop.f32.mrf.mxu0 }
 0x290   : >> { %v1819_v29 = vadd.f32 %v3801_v26, %v3663_v58  ;;  %v3802_v20 = vpop.f32.mrf.mxu1 }
 0x291   : >> { %v6230_v16 = vadd.f32 %v5212_v16, %v1811_v54   ;;  %v3665_v22 = vpop.f32.mrf.mxu0 }
 0x292   : >> { %v6233_v14 = vadd.f32 %v5204_v14, %v1819_v29   ;;  %v3666_v17 = vadd.f32 %v3665_v22, %v3664_v31  ;;  %v1813_v53 = vpop.f32.mrf.mxu1 }
 0x293   : >> { %v7484_v34 = vmov %v6230_v16  ;;  %v1814_v36 = vadd.f32 %v3660_v45, %v1813_v53  ;;  %v3667_v24 = vpop.f32.mrf.mxu0 }
 0x294   : >> { %v7485_v56 = vmov %v6233_v14  ;;  %v1822_v19 = vadd.f32 %v3802_v20, %v3666_v17  ;;  %v3805_v5 = vpop.f32.mrf.mxu1 }
 0x295   : >> { %v6236_v15 = vadd.f32 %v5208_v15, %v1814_v36   ;;  %v3668_v28 = vpop.f32.mrf.mxu0 }
 0x296   : >> { %v6239_v13 = vadd.f32 %v5200_v13, %v1822_v19   ;;  %v3669_v21 = vadd.f32 %v3668_v28, %v3667_v24  ;;  %v1826_v43 = vpop.f32.mrf.mxu1 }
 0x297   : >> { %v7486_v33 = vmov %v6236_v15  ;;  %v3670_v16 = vpop.f32.mrf.mxu0 }
 0x298   : >> { %v7487_v51 = vmov %v6239_v13  ;;  %v1827_v23 = vadd.f32 %v3669_v21, %v1826_v43  ;;  %v3806_v59 = vpop.f32.mrf.mxu1 }
 0x299   : >> { %v3671_v26 = vpop.f32.mrf.mxu0 }
 0x29a   : >> { %v6242_v12 = vadd.f32 %v5196_v12, %v1827_v23   ;;  %v3672_v14 = vadd.f32 %v3671_v26, %v3670_v16  ;;  %v1829_v30 = vpop.f32.mrf.mxu1 }
 0x29b   : >> { %v3673_v18 = vpop.f32.mrf.mxu0 }
 0x29c   : >> { %v7488_v58 = vmov %v6242_v12  ;;  %v1830_v25 = vadd.f32 %v3672_v14, %v1829_v30  ;;  %v3809_v54 = vpop.f32.mrf.mxu1 }
 0x29d   : >> { %v3674_v31 = vpop.f32.mrf.mxu0 }
 0x29e   : >> { %v6245_v11 = vadd.f32 %v5192_v11, %v1830_v25   ;;  %v3675_v15 = vadd.f32 %v3674_v31, %v3673_v18  ;;  %v1842_v13 = vpop.f32.mrf.mxu1 }
 0x29f   : >> { %v3676_v29 = vpop.f32.mrf.mxu0 }
 0x2a0   : >> { %v7489_v45 = vmov %v6245_v11  ;;  %v1835_v20 = vadd.f32 %v3805_v5, %v3675_v15  ;;  %v3810_v22 = vpop.f32.mrf.mxu1 }
 0x2a1   : >> { %v3677_v17 = vpop.f32.mrf.mxu0 }
 0x2a2   : >> { %v6248_v10 = vadd.f32 %v5188_v10, %v1835_v20   ;;  %v3678_v36 = vadd.f32 %v3677_v17, %v3676_v29  ;;  %v1845_v12 = vpop.f32.mrf.mxu1  ;;  %v3714_v29 = vadd.f32 %v6191_v44, %v6189_v38 }
 0x2a3   : >> { %v3679_v24 = vpop.f32.mrf.mxu0 }
 0x2a4   : >> { %v7490_v53 = vmov %v6248_v10  ;;  %v1838_v19 = vadd.f32 %v3806_v59, %v3678_v36  ;;  %v3813_v28 = vpop.f32.mrf.mxu1 }
 0x2a5   : >> { %v1867_v21 = vadd.f32 %v3813_v28, %v6179_v37  ;;  %v3680_v43 = vpop.f32.mrf.mxu0  ;;  %v7535_v28 = vld [vmem:[#allocation6_spill] sm:$0xff] }
 0x2a6   : >> { %v6252_v9 = vadd.f32 %v5184_v9, %v1838_v19   ;;  %v3681_v11 = vadd.f32 %v3680_v43, %v3679_v24  ;;  %v1858_v16 = vpop.f32.mrf.mxu1 }
 0x2a7   : >> { %v6255_v27 = vadd.f32 %v5156_v27, %v1867_v21   ;;  %v1859_v5 = vadd.f32 %v6175_v55, %v1858_v16  ;;  %v3682_v23 = vpop.f32.mrf.mxu0  ;;  %v7525_v16 = vmov %v7484_v34  ;;  %v7530_v21 = vmov %v7478_v40 }
 0x2a8   : >> { %v7491_v26 = vmov %v6252_v9  ;;  %v1843_v10 = vadd.f32 %v3681_v11, %v1842_v13  ;;  %v3814_v14 = vpop.f32.mrf.mxu1  ;;  %v7520_v11 = vmov %v7489_v45  ;;  %v7543_v21 = vld [vmem:[#allocation8_spill] sm:$0xff] (%p6301_p4) }
 0x2a9   : >> { %v7492_v31 = vmov %v6255_v27  ;;  %v6259_v4 = vadd.f32 %v5164_v4, %v1859_v5   ;;  %v1870_v30 = vadd.f32 %v3814_v14, %v6181_v42  ;;  %v3683_v37 = vpop.f32.mrf.mxu0  ;;  %v7523_v14 = vmov %v7485_v56 }
 0x2aa   : >> { %v6263_v8 = vadd.f32 %v5180_v8, %v1843_v10   ;;  %v3684_v9 = vadd.f32 %v3683_v37, %v3682_v23  ;;  %v1861_v18 = vpop.f32.mrf.mxu1  ;;  %v7519_v10 = vmov %v7490_v53  ;;  %v7532_v23 = vmov %v7479_v46 }
 0x2ab   : >> { %v7493_v59 = vmov %v6259_v4  ;;  %v6266_v2 = vadd.f32 %v5152_v2, %v1870_v30   ;;  %v1862_v27 = vadd.f32 %v6177_v60, %v1861_v18  ;;  %v3685_v55 = vpop.f32.mrf.mxu0  ;;  %v7527_v18 = vmov %v7480_v41  ;;  %v7537_v30 = vld [vmem:[#allocation7_spill] sm:$0xff] }
 0x2ac   : >> { %v7494_v36 = vmov %v6263_v8  ;;  %v1846_v25 = vadd.f32 %v3684_v9, %v1845_v12  ;;  %v3817_v15 = vpop.f32.mrf.mxu1  ;;  %v7518_v9 = vmov %v7491_v26 }
 0x2ad   : >> { %v7495_v43 = vmov %v6266_v2  ;;  %v6270_v3 = vadd.f32 %v5160_v3, %v1862_v27   ;;  %v1883_v4 = vadd.f32 %v3817_v15, %v6187_v32  ;;  %v3686_v42 = vpop.f32.mrf.mxu0  ;;  %v7511_v27 = vmov %v7492_v31 }
 0x2ae   : >> { %v6274_v7 = vadd.f32 %v5176_v7, %v1846_v25   ;;  %v3687_v8 = vadd.f32 %v3686_v42, %v3685_v55  ;;  %v1874_v13 = vpop.f32.mrf.mxu1  ;;  %v7524_v15 = vmov %v7486_v33  ;;  %v7534_v25 = vld [vmem:[#allocation8_spill] sm:$0xff]  ;;  %v7539_v42 = vmov (%p6301_p4), 0.0  }
 0x2af   : >> { %v7496_v50 = vmov %v6270_v3  ;;  %v6279_v63 = vadd.f32 %v5140_v63, %v1883_v4   ;;  %v1875_v2 = vadd.f32 %v6183_v48, %v1874_v13  ;;  %v3688_v20 = vpop.f32.mrf.mxu0  ;;  %v7513_v4 = vmov %v7493_v59  ;;  %2000 = vst.msk [vmem:[#allocation3 + $0x30] sm:$0xff] (%p6301_p4), %vm1992_vm4, %v7539_v42  ;;  %1993 = vst.msk [vmem:[#allocation3] sm:$0xff] (%p6301_p4), %vm1992_vm4, %v7539_v42 }
 0x2b0   : >> { %v7497_v35 = vmov %v6274_v7  ;;  %v1851_v17 = vadd.f32 %v3809_v54, %v3687_v8  ;;  %v3818_v12 = vpop.f32.mrf.mxu1  ;;  %v7503_v54 = vld [vmem:[#allocation5_spill] sm:$0xff]  ;;  %v7517_v8 = vmov %v7494_v36  ;;  %v7522_v13 = vmov %v7487_v51  ;;  %1994 = vst.msk [vmem:[#allocation3 + $0x8] sm:$0xff] (%p6301_p4), %vm1992_vm4, %v7539_v42  ;;  %1997 = vst.msk [vmem:[#allocation3 + $0x18] sm:$0xff] (%p6301_p4), %vm1992_vm4, %v7539_v42 }
 0x2b1   : >> { %v7498_v60 = vmov %v6279_v63  ;;  %v6283_v1 = vadd.f32 %v5148_v1, %v1875_v2   ;;  %v1886_v3 = vadd.f32 %v3818_v12, %v3714_v29  ;;  %v3689_v24 = vpop.f32.mrf.mxu0  ;;  %v7510_v2 = vmov %v7495_v43  ;;  %v7536_v29 = vld [vmem:[#allocation9_spill] sm:$0xff]  ;;  %1998 = vst.msk [vmem:[#allocation3 + $0x20] sm:$0xff] (%p6301_p4), %vm1992_vm4, %v7539_v42  ;;  %2001 = vst.msk [vmem:[#allocation3 + $0x38] sm:$0xff] (%p6301_p4), %vm1992_vm4, %v7539_v42 }
 0x2b2   : >> { %v6286_v6 = vadd.f32 %v5172_v6, %v1851_v17   ;;  %v3690_v7 = vadd.f32 %v3689_v24, %v3688_v20  ;;  %v1877_v19 = vpop.f32.mrf.mxu1  ;;  %v7521_v12 = vmov %v7488_v58  ;;  %v7526_v17 = vmov %v7482_v47  ;;  %2003 = vst.msk [vmem:[#allocation3 + $0x48] sm:$0xff] (%p6301_p4), %vm1992_vm4, %v7539_v42  ;;  %2004 = vst.msk [vmem:[#allocation3 + $0x50] sm:$0xff] (%p6301_p4), %vm1992_vm4, %v7539_v42 }
 0x2b3   : >> { %v7499_v32 = vmov %v6283_v1  ;;  %v6289_v62 = vadd.f32 %v5136_v62, %v1886_v3   ;;  %v1878_v63 = vadd.f32 %v6185_v57, %v1877_v19  ;;  %v7512_v3 = vmov %v7496_v50  ;;  %v6410_v57 = vld [vmem:[%s7460_s4] ss:$0 sm:$0xff] (%p6301_p4)  ;;  %2006 = vst.msk [vmem:[#allocation3 + $0x60] sm:$0xff] (%p6301_p4), %vm1992_vm4, %v7539_v42  ;;  %2007 = vst.msk [vmem:[#allocation3 + $0x68] sm:$0xff] (%p6301_p4), %vm1992_vm4, %v7539_v42 }
 0x2b4   : >> { %v7500_v37 = vmov %v6286_v6  ;;  %v1854_v44 = vadd.f32 %v3810_v22, %v3690_v7  ;;  %v7509_v1 = vmov %v7499_v32  ;;  %v7516_v7 = vmov %v7497_v35  ;;  %2009 = vst.msk [vmem:[#allocation3 + $0x78] sm:$0xff] (%p6301_p4), %vm1992_vm4, %v7539_v42  ;;  %2010 = vst.msk [vmem:[#allocation3 + $0x80] sm:$0xff] (%p6301_p4), %vm1992_vm4, %v7539_v42 }
 0x2b5   : >> { %v7501_v38 = vmov %v6289_v62  ;;  %v6293_v0 = vadd.f32 %v5144_v0, %v1878_v63   ;;  %v7507_v63 = vmov %v7498_v60  ;;  %v7515_v6 = vmov %v7500_v37  ;;  %792 = sbr.rel (!%p6301_p4) target bundleno = 269 (0x10d), region = 98  ;;  %2012 = vst.msk [vmem:[#allocation3 + $0x90] sm:$0xff] (%p6301_p4), %vm1992_vm4, %v7539_v42  ;;  %2013 = vst.msk [vmem:[#allocation3 + $0x98] sm:$0xff] (%p6301_p4), %vm1992_vm4, %v7539_v42  ;;  %v7541_v1 = vld [vmem:[#allocation9_spill] sm:$0xff] (%p6301_p4) }
 0x2b6   : >> { %v6296_v5 = vadd.f32 %v7503_v54, %v1854_v44   ;;  %v7506_v62 = vmov %v7501_v38  ;;  %v7528_v19 = vmov %v7483_v61  ;;  %v7529_v20 = vmov %v7481_v52  ;;  %2015 = vst.msk [vmem:[#allocation3 + $0xa8] sm:$0xff] (%p6301_p4), %vm1992_vm4, %v7539_v42  ;;  %2016 = vst.msk [vmem:[#allocation3 + $0xb0] sm:$0xff] (%p6301_p4), %vm1992_vm4, %v7539_v42 }
 0x2b7   : >> { %v7502_v48 = vmov %v6293_v0  ;;  %v7531_v22 = vmov %v7476_v49  ;;  %v7533_v24 = vmov %v7477_v39  ;;  %2018 = vst.msk [vmem:[#allocation3 + $0xc0] sm:$0xff] (%p6301_p4), %vm1992_vm4, %v7539_v42  ;;  %2019 = vst.msk [vmem:[#allocation3 + $0xc8] sm:$0xff] (%p6301_p4), %vm1992_vm4, %v7539_v42  ;;  %v7540_v62 = vld [vmem:[#allocation7_spill] sm:$0xff] (%p6301_p4)  ;;  %v1929_v6 = vadd.f32 (%p6301_p4), %v6410_v57, %v7541_v1 }
 0x2b8   : >> { %v7504_v55 = vmov %v6296_v5  ;;  %v7508_v0 = vmov %v7502_v48  ;;  %2021 = vst.msk [vmem:[#allocation3 + $0xd8] sm:$0xff] (%p6301_p4), %vm1992_vm4, %v7539_v42  ;;  %2022 = vst.msk [vmem:[#allocation3 + $0xe0] sm:$0xff] (%p6301_p4), %vm1992_vm4, %v7539_v42  ;;  %v7542_v22 = vld [vmem:[#allocation6_spill] sm:$0xff] (%p6301_p4)  ;;  %v1931_v11 = vadd.f32 (%p6301_p4), %v6410_v57, %v7543_v21  ;;  %v1932_v16 = vadd.f32 (%p6301_p4), %v6410_v57, %v7477_v39 }
 0x2b9   : >> { %v7514_v5 = vmov %v7504_v55  ;;  %2024 = vst.msk [vmem:[#allocation3 + $0xf0] sm:$0xff] (%p6301_p4), %vm1992_vm4, %v7539_v42  ;;  %2025 = vst.msk [vmem:[#allocation3 + $0xf8] sm:$0xff] (%p6301_p4), %vm1992_vm4, %v7539_v42  ;;  %v1928_v0 = vadd.f32 (%p6301_p4), %v6410_v57, %v7540_v62  ;;  %v1930_v28 = vadd.f32 (%p6301_p4), %v6410_v57, %v7542_v22  ;;  %v1934_v23 = vadd.f32 (%p6301_p4), %v6410_v57, %v7476_v49 }
 0x2ba   : > { %2027 = vst.msk [vmem:[#allocation3 + $0x108] sm:$0xff] %vm1992_vm4, %v7539_v42  ;;  %2028 = vst.msk [vmem:[#allocation3 + $0x110] sm:$0xff] %vm1992_vm4, %v7539_v42  ;;  %v1933_v5 = vadd.f32 %v6410_v57, %v7479_v46  ;;  %v1935_v10 = vadd.f32 %v6410_v57, %v7478_v40  ;;  %v1961_v30 = vmax.f32 %v1929_v6, 0.0  ;;  %v1963_v18 = vmax.f32 %v1931_v11, 0.0 }
 0x2bb   : > { %2030 = vst.msk [vmem:[#allocation3 + $0x120] sm:$0xff] %vm1992_vm4, %v7539_v42  ;;  %2031 = vst.msk [vmem:[#allocation3 + $0x128] sm:$0xff] %vm1992_vm4, %v7539_v42  ;;  %v1960_v14 = vmax.f32 %v1928_v0, 0.0  ;;  %v1962_v9 = vmax.f32 %v1930_v28, 0.0  ;;  %v1964_v27 = vmax.f32 %v1932_v16, 0.0  ;;  %v1966_v15 = vmax.f32 %v1934_v23, 0.0 }
 0x2bc   : > { %2033 = vst.msk [vmem:[#allocation3 + $0x138] sm:$0xff] %vm1992_vm4, %v7539_v42  ;;  %2034 = vst.msk [vmem:[#allocation3 + $0x140] sm:$0xff] %vm1992_vm4, %v7539_v42  ;;  %v1965_v25 = vmax.f32 %v1933_v5, 0.0  ;;  %v1967_v4 = vmax.f32 %v1935_v10, 0.0  ;;  %v1936_v49 = vadd.f32 %v6410_v57, %v7481_v52  ;;  %v1937_v39 = vadd.f32 %v6410_v57, %v7483_v61 }
 0x2bd   : > { %2036 = vst.msk [vmem:[#allocation3 + $0x150] sm:$0xff] %vm1992_vm4, %v7539_v42  ;;  %2037 = vst.msk [vmem:[#allocation3 + $0x158] sm:$0xff] %vm1992_vm4, %v7539_v42  ;;  %v1938_v40 = vadd.f32 %v6410_v57, %v7480_v41  ;;  %v1939_v46 = vadd.f32 %v6410_v57, %v7482_v47  ;;  %v1940_v52 = vadd.f32 %v6410_v57, %v7484_v34  ;;  %v6638_v5 = vmov 0.0  }
 0x2be   : > { %2039 = vst.msk [vmem:[#allocation3 + $0x168] sm:$0xff] %vm1992_vm4, %v7539_v42  ;;  %2040 = vst.msk [vmem:[#allocation3 + $0x170] sm:$0xff] %vm1992_vm4, %v7539_v42  ;;  %v1941_v61 = vadd.f32 %v6410_v57, %v7486_v33  ;;  %v1942_v41 = vadd.f32 %v6410_v57, %v7485_v56  ;;  %v1943_v47 = vadd.f32 %v6410_v57, %v7487_v51  ;;  %v1968_v8 = vmax.f32 %v1936_v49, 0.0 }
 0x2bf   : > { %2042 = vst.msk [vmem:[#allocation3 + $0x180] sm:$0xff] %vm1992_vm4, %v7539_v42  ;;  %2043 = vst.msk [vmem:[#allocation3 + $0x188] sm:$0xff] %vm1992_vm4, %v7539_v42  ;;  %v1969_v13 = vmax.f32 %v1937_v39, 0.0  ;;  %v1970_v29 = vmax.f32 %v1938_v40, 0.0  ;;  %v1971_v2 = vmax.f32 %v1939_v46, 0.0  ;;  %v1972_v20 = vmax.f32 %v1940_v52, 0.0 }
 0x2c0   : > { %2045 = vst.msk [vmem:[#allocation3 + $0x198] sm:$0xff] %vm1992_vm4, %v7539_v42  ;;  %2046 = vst.msk [vmem:[#allocation3 + $0x1a0] sm:$0xff] %vm1992_vm4, %v7539_v42  ;;  %v1973_v17 = vmax.f32 %v1941_v61, 0.0  ;;  %v1974_v12 = vmax.f32 %v1942_v41, 0.0  ;;  %v1975_v3 = vmax.f32 %v1943_v47, 0.0  ;;  %v1944_v34 = vadd.f32 %v6410_v57, %v7488_v58 }
 0x2c1   : > { %2048 = vst.msk [vmem:[#allocation3 + $0x1b0] sm:$0xff] %vm1992_vm4, %v7539_v42  ;;  %2049 = vst.msk [vmem:[#allocation3 + $0x1b8] sm:$0xff] %vm1992_vm4, %v7539_v42  ;;  %v1945_v56 = vadd.f32 %v6410_v57, %v7489_v45  ;;  %v1946_v33 = vadd.f32 %v6410_v57, %v7490_v53  ;;  %v1947_v51 = vadd.f32 %v6410_v57, %v7491_v26  ;;  %v6640_v23 = vmov 0.0  }
 0x2c2   : > { %2051 = vst.msk [vmem:[#allocation3 + $0x1c8] sm:$0xff] %vm1992_vm4, %v7539_v42  ;;  %2052 = vst.msk [vmem:[#allocation3 + $0x1d0] sm:$0xff] %vm1992_vm4, %v7539_v42  ;;  %v1948_v58 = vadd.f32 %v6410_v57, %v7494_v36  ;;  %v1949_v45 = vadd.f32 %v6410_v57, %v7497_v35  ;;  %v1950_v53 = vadd.f32 %v6410_v57, %v7500_v37  ;;  %v1976_v24 = vmax.f32 %v1944_v34, 0.0 }
 0x2c3   : > { %2002 = vst.msk [vmem:[#allocation3 + $0x40] sm:$0xf] %vm1995_vm5, %v7539_v42  ;;  %1996 = vst.msk [vmem:[#allocation3 + $0x10] sm:$0xf] %vm1995_vm5, %v7539_v42  ;;  %v1951_v26 = vadd.f32 %v6410_v57, %v7504_v55  ;;  %v1977_v7 = vmax.f32 %v1945_v56, 0.0  ;;  %v1978_v19 = vmax.f32 %v1946_v33, 0.0  ;;  %v1952_v35 = vadd.f32 %v6410_v57, %v7493_v59 }
 0x2c4   : > { %1999 = vst.msk [vmem:[#allocation3 + $0x28] sm:$0xf] %vm1995_vm5, %v7539_v42  ;;  %2005 = vst.msk [vmem:[#allocation3 + $0x58] sm:$0xf] %vm1995_vm5, %v7539_v42  ;;  %v1979_v63 = vmax.f32 %v1947_v51, 0.0  ;;  %v1980_v44 = vmax.f32 %v1948_v58, 0.0  ;;  %v1953_v36 = vadd.f32 %v6410_v57, %v7496_v50  ;;  %v1954_v37 = vadd.f32 %v6410_v57, %v7492_v31 }
 0x2c5   : > { %2008 = vst.msk [vmem:[#allocation3 + $0x70] sm:$0xf] %vm1995_vm5, %v7539_v42  ;;  %2011 = vst.msk [vmem:[#allocation3 + $0x88] sm:$0xf] %vm1995_vm5, %v7539_v42  ;;  %v1981_v54 = vmax.f32 %v1949_v45, 0.0  ;;  %v1983_v62 = vmax.f32 %v1951_v26, 0.0  ;;  %v1955_v55 = vadd.f32 %v6410_v57, %v7495_v43  ;;  %v1956_v59 = vadd.f32 %v6410_v57, %v7499_v32 }
 0x2c6   : > { %2014 = vst.msk [vmem:[#allocation3 + $0xa0] sm:$0xf] %vm1995_vm5, %v7539_v42  ;;  %2017 = vst.msk [vmem:[#allocation3 + $0xb8] sm:$0xf] %vm1995_vm5, %v7539_v42  ;;  %v1957_v50 = vadd.f32 %v6410_v57, %v7502_v48  ;;  %v1958_v31 = vadd.f32 %v6410_v57, %v7498_v60  ;;  %v1959_v43 = vadd.f32 %v6410_v57, %v7501_v38  ;;  %v1984_v0 = vmax.f32 %v1952_v35, 0.0 }
 0x2c7   : > { %2020 = vst.msk [vmem:[#allocation3 + $0xd0] sm:$0xf] %vm1995_vm5, %v7539_v42  ;;  %2023 = vst.msk [vmem:[#allocation3 + $0xe8] sm:$0xf] %vm1995_vm5, %v7539_v42  ;;  %v1985_v1 = vmax.f32 %v1953_v36, 0.0  ;;  %v1986_v6 = vmax.f32 %v1954_v37, 0.0 }
 0x2c8   : > { %2026 = vst.msk [vmem:[#allocation3 + $0x100] sm:$0xf] %vm1995_vm5, %v7539_v42  ;;  %2029 = vst.msk [vmem:[#allocation3 + $0x118] sm:$0xf] %vm1995_vm5, %v7539_v42  ;;  %v1987_v22 = vmax.f32 %v1955_v55, 0.0  ;;  %v1988_v28 = vmax.f32 %v1956_v59, 0.0 }
 0x2c9   : > { %2032 = vst.msk [vmem:[#allocation3 + $0x130] sm:$0xf] %vm1995_vm5, %v7539_v42  ;;  %2035 = vst.msk [vmem:[#allocation3 + $0x148] sm:$0xf] %vm1995_vm5, %v7539_v42  ;;  %v1989_v21 = vmax.f32 %v1957_v50, 0.0  ;;  %v1990_v11 = vmax.f32 %v1958_v31, 0.0 }
 0x2ca   : > { %2038 = vst.msk [vmem:[#allocation3 + $0x160] sm:$0xf] %vm1995_vm5, %v7539_v42  ;;  %2041 = vst.msk [vmem:[#allocation3 + $0x178] sm:$0xf] %vm1995_vm5, %v7539_v42  ;;  %v1991_v16 = vmax.f32 %v1959_v43, 0.0  ;;  %v6628_v60 = vmov 0.0  }
 0x2cb   : > { %2044 = vst.msk [vmem:[#allocation3 + $0x190] sm:$0xf] %vm1995_vm5, %v7539_v42  ;;  %2047 = vst.msk [vmem:[#allocation3 + $0x1a8] sm:$0xf] %vm1995_vm5, %v7539_v42  ;;  %v6630_v32 = vmov 0.0   ;;  %v6632_v38 = vmov 0.0  }
 0x2cc   : > { %2050 = vst.msk [vmem:[#allocation3 + $0x1c0] sm:$0xf] %vm1995_vm5, %v7539_v42  ;;  %2053 = vst.msk [vmem:[#allocation3 + $0x1d8] sm:$0xf] %vm1995_vm5, %v7539_v42  ;;  %v1982_v42 = vmax.f32 %v1950_v53, 0.0  ;;  %v6634_v48 = vmov 0.0  }
 0x2cd   : > { %2055 = vst.msk [vmem:[#allocation3 + $0x32] sm:$0xff] %vm1992_vm4, %v1960_v14  ;;  %2056 = vst.msk [vmem:[#allocation3 + $0x3a] sm:$0xff] %vm1992_vm4, %v1961_v30  ;;  %v6636_v57 = vmov 0.0   ;;  %v6642_v10 = vmov 0.0   ;;  %v6644_v14 = vmov 0.0   ;;  %v6646_v30 = vmov 0.0  }
 0x2ce   : > { %2057 = vst.msk [vmem:[#allocation3 + $0x4a] sm:$0xff] %vm1992_vm4, %v1962_v9  ;;  %2058 = vst.msk [vmem:[#allocation3 + $0x52] sm:$0xff] %vm1992_vm4, %v1963_v18  ;;  %v6648_v9 = vmov 0.0   ;;  %v6650_v18 = vmov 0.0   ;;  %v6660_v49 = vmov 0.0   ;;  %v6662_v39 = vmov 0.0  }
 0x2cf   : > { %2059 = vst.msk [vmem:[#allocation3 + $0x62] sm:$0xff] %vm1992_vm4, %v1964_v27  ;;  %2060 = vst.msk [vmem:[#allocation3 + $0x6a] sm:$0xff] %vm1992_vm4, %v1965_v25  ;;  %v6652_v27 = vmov 0.0   ;;  %v6654_v25 = vmov 0.0   ;;  %v6664_v40 = vmov 0.0   ;;  %v6666_v46 = vmov 0.0  }
 0x2d0   : > { %2061 = vst.msk [vmem:[#allocation3 + $0x7a] sm:$0xff] %vm1992_vm4, %v1966_v15  ;;  %2062 = vst.msk [vmem:[#allocation3 + $0x82] sm:$0xff] %vm1992_vm4, %v1967_v4  ;;  %v6656_v15 = vmov 0.0   ;;  %v6658_v4 = vmov 0.0   ;;  %v6668_v52 = vmov 0.0   ;;  %v6670_v61 = vmov 0.0  }
 0x2d1   : > { %2063 = vst.msk [vmem:[#allocation3 + $0x92] sm:$0xff] %vm1992_vm4, %v1968_v8  ;;  %2064 = vst.msk [vmem:[#allocation3 + $0x9a] sm:$0xff] %vm1992_vm4, %v1969_v13  ;;  %v6672_v41 = vmov 0.0   ;;  %v6674_v47 = vmov 0.0   ;;  %v6676_v8 = vmov 0.0   ;;  %v6678_v13 = vmov 0.0  }
 0x2d2   : > { %2065 = vst.msk [vmem:[#allocation3 + $0xaa] sm:$0xff] %vm1992_vm4, %v1970_v29  ;;  %2066 = vst.msk [vmem:[#allocation3 + $0xb2] sm:$0xff] %vm1992_vm4, %v1971_v2  ;;  %v6680_v29 = vmov 0.0   ;;  %v6682_v2 = vmov 0.0  }
 0x2d3   : > { %2067 = vst.msk [vmem:[#allocation3 + $0xc2] sm:$0xff] %vm1992_vm4, %v1972_v20  ;;  %2068 = vst.msk [vmem:[#allocation3 + $0xca] sm:$0xff] %vm1992_vm4, %v1973_v17  ;;  %v6684_v20 = vmov 0.0   ;;  %v6686_v17 = vmov 0.0  }
 0x2d4   : > { %2069 = vst.msk [vmem:[#allocation3 + $0xda] sm:$0xff] %vm1992_vm4, %v1974_v12  ;;  %2070 = vst.msk [vmem:[#allocation3 + $0xe2] sm:$0xff] %vm1992_vm4, %v1975_v3  ;;  %v6688_v12 = vmov 0.0   ;;  %v6690_v3 = vmov 0.0  }
 0x2d5   : > { %2071 = vst.msk [vmem:[#allocation3 + $0xf2] sm:$0xff] %vm1992_vm4, %v1976_v24  ;;  %2072 = vst.msk [vmem:[#allocation3 + $0xfa] sm:$0xff] %vm1992_vm4, %v1977_v7 }
 0x2d6   : > { %2073 = vst.msk [vmem:[#allocation3 + $0x10a] sm:$0xff] %vm1992_vm4, %v1978_v19  ;;  %2074 = vst.msk [vmem:[#allocation3 + $0x112] sm:$0xff] %vm1992_vm4, %v1979_v63 }
 0x2d7   : > { %2075 = vst.msk [vmem:[#allocation3 + $0x122] sm:$0xff] %vm1992_vm4, %v1980_v44  ;;  %2076 = vst.msk [vmem:[#allocation3 + $0x12a] sm:$0xff] %vm1992_vm4, %v1981_v54 }
 0x2d8   : > { %2077 = vst.msk [vmem:[#allocation3 + $0x13a] sm:$0xff] %vm1992_vm4, %v1982_v42  ;;  %2078 = vst.msk [vmem:[#allocation3 + $0x142] sm:$0xff] %vm1992_vm4, %v1983_v62 }
 0x2d9   : > { %2079 = vst.msk [vmem:[#allocation3 + $0x152] sm:$0xff] %vm1992_vm4, %v1984_v0  ;;  %2080 = vst.msk [vmem:[#allocation3 + $0x15a] sm:$0xff] %vm1992_vm4, %v1985_v1 }
 0x2da   : > { %2081 = vst.msk [vmem:[#allocation3 + $0x16a] sm:$0xff] %vm1992_vm4, %v1986_v6  ;;  %2082 = vst.msk [vmem:[#allocation3 + $0x172] sm:$0xff] %vm1992_vm4, %v1987_v22 }
 0x2db   : > { %2083 = vst.msk [vmem:[#allocation3 + $0x182] sm:$0xff] %vm1992_vm4, %v1988_v28  ;;  %2084 = vst.msk [vmem:[#allocation3 + $0x18a] sm:$0xff] %vm1992_vm4, %v1989_v21 }
 0x2dc   : > { %2085 = vst.msk [vmem:[#allocation3 + $0x19a] sm:$0xff] %vm1992_vm4, %v1990_v11  ;;  %2086 = vst.msk [vmem:[#allocation3 + $0x1a2] sm:$0xff] %vm1992_vm4, %v1991_v16 }
 0x2dd LB: >> { %v5401_v34 = vmov 0   ;;  %s2125_s16 = smul.u32 24, %s5396_s15  ;;  %s5402_s19 = smov 64   ;;  %vm2735_vm6 = vcmask 785408   ;;  %s5396_s15 = sphi %s6692_s15, %s7615_s15   ;;  %v5392_v3 = vphi %v6690_v3, %v7614_v3   ;;  %v5388_v12 = vphi %v6688_v12, %v7613_v12   ;;  %v5384_v17 = vphi %v6686_v17, %v7612_v17   ;;  %v5380_v20 = vphi %v6684_v20, %v7611_v20   ;;  %v5376_v2 = vphi %v6682_v2, %v7610_v2   ;;  %v5372_v29 = vphi %v6680_v29, %v7609_v29   ;;  %v5368_v13 = vphi %v6678_v13, %v7608_v13   ;;  %v5364_v8 = vphi %v6676_v8, %v7607_v8   ;;  %v5360_v47 = vphi %v6674_v47, %v7606_v47   ;;  %v5356_v41 = vphi %v6672_v41, %v7605_v41   ;;  %v5352_v61 = vphi %v6670_v61, %v7604_v61   ;;  %v5348_v52 = vphi %v6668_v52, %v7603_v52   ;;  %v5344_v46 = vphi %v6666_v46, %v7602_v46   ;;  %v5340_v40 = vphi %v6664_v40, %v7601_v40   ;;  %v5336_v39 = vphi %v6662_v39, %v7600_v39   ;;  %v5332_v49 = vphi %v6660_v49, %v7599_v49   ;;  %v5328_v4 = vphi %v6658_v4, %v7598_v4   ;;  %v5324_v15 = vphi %v6656_v15, %v7597_v15   ;;  %v5320_v25 = vphi %v6654_v25, %v7596_v25   ;;  %v5316_v27 = vphi %v6652_v27, %v7595_v27   ;;  %v5312_v18 = vphi %v6650_v18, %v7594_v18   ;;  %v5308_v9 = vphi %v6648_v9, %v7593_v9   ;;  %v5304_v30 = vphi %v6646_v30, %v7592_v30   ;;  %v5300_v14 = vphi %v6644_v14, %v7591_v14   ;;  %v5296_v10 = vphi %v6642_v10, %v7590_v10   ;;  %v5292_v23 = vphi %v6640_v23, %v7589_v23   ;;  %v5288_v5 = vphi %v6638_v5, %v7588_v5   ;;  %v5284_v57 = vphi %v6636_v57, %v7587_v57   ;;  %v5280_v48 = vphi %v6634_v48, %v7586_v48   ;;  %v5276_v38 = vphi %v6632_v38, %v7585_v38   ;;  %v5272_v32 = vphi %v6630_v32, %v7584_v32   ;;  %v5268_v60 = vphi %v6628_v60, %v7582_v60  }
 0x2de   : >> { %2931 = vmatprep.subr.bf16.mxu0 %v5401_v34  ;;  %3847 = vmatprep.subr.bf16.mxu1 %v5401_v34  ;;  %s5403_s20 = smov 32   ;;  %s5404_s21 = smov 96  }
 0x2df   : >> { %s6796_s18 = scalar_lea.vmem [#allocation3], %s2125_s16  ;;  %s3580_s22 = smul.u32 80, %s5396_s15 }
 0x2e0   : >> { %s2092_s27 = sadd.s32 1, %s5396_s15  }
 0x2e1   : >> { %s6850_s25 = scalar_lea.vmem %s7461_s5, %s3580_s22  ;;  %p7251_p5 = scmp.ge.s32.totalorder %s2092_s27, 5  }
 0x2e2   : >> { %s7615_s15 = smov %s2092_s27  ;;  %vm3163_vm7 = vcmask (%p7251_p5), 7168  }
 0x2e3   : >> { %v2191_v56 = vld [vmem:[%s6796_s18 + $0x2] sm:$0xff]  ;;  %v2192_v33 = vld [vmem:[%s6796_s18 + $0xa] sm:$0xff]  ;;  %v2177_v55 = vld [vmem:[%s6796_s18 + $0xd9] sm:$0xff] }
 0x2e4   : >> { %v2159_v51 = vld [vmem:[%s6796_s18 + $0x1] sm:$0xff]  ;;  %v4622_v58 = vpack.i.bf16 %v2192_v33, %v2191_v56  ;;  %v2160_v45 = vld [vmem:[%s6796_s18 + $0x9] sm:$0xff]  ;;  %v2161_v50 = vld [vmem:[%s6796_s18 + $0x19] sm:$0xff] }
 0x2e5   : >> { %v2207_v53 = vld [vmem:[%s6796_s18 + $0xc2] sm:$0xff]  ;;  %v2208_v26 = vld [vmem:[%s6796_s18 + $0xca] sm:$0xff]  ;;  %v4612_v24 = vpack.i.bf16 %v2160_v45, %v2159_v51  ;;  %v2209_v1 = vld [vmem:[%s6796_s18 + $0xda] sm:$0xff] }
 0x2e6   : >> { %v2175_v7 = vld [vmem:[%s6796_s18 + $0xc1] sm:$0xff]  ;;  %v2176_v19 = vld [vmem:[%s6796_s18 + $0xc9] sm:$0xff]  ;;  %4623 = vrot.lane.b32.xlu1 %v4622_v58, %s5402_s19  ;;  %v4627_v63 = vpack.i.bf16 %v2208_v26, %v2207_v53  ;;  %v2179_v53 = vld [vmem:[%s6796_s18 + $0xf1] sm:$0xff] }
 0x2e7   : >> { %4613 = vrot.lane.b32.xlu0 %v4612_v24, %s5403_s20  ;;  %v4617_v44 = vpack.i.bf16 %v2176_v19, %v2175_v7  ;;  %v2239_v54 = vld [vmem:[%s6796_s18 + $0xc3] sm:$0xff]  ;;  %v2240_v42 = vld [vmem:[%s6796_s18 + $0xcb] sm:$0xff]  ;;  %v2193_v22 = vld [vmem:[%s6796_s18 + $0x1a] sm:$0xff] }
 0x2e8   : >> { %v2223_v62 = vld [vmem:[%s6796_s18 + $0x3] sm:$0xff]  ;;  %v2224_v35 = vld [vmem:[%s6796_s18 + $0xb] sm:$0xff]  ;;  %v4637_v36 = vpack.i.bf16 %v2240_v42, %v2239_v54  ;;  %v2241_v16 = vld [vmem:[%s6796_s18 + $0xdb] sm:$0xff] }
 0x2e9   : >> { %v4632_v37 = vpack.i.bf16 %v2224_v35, %v2223_v62  ;;  %v2178_v59 = vld [vmem:[%s6796_s18 + $0xe1] sm:$0xff]  ;;  %v2180_v26 = vld [vmem:[%s6796_s18 + $0xf9] sm:$0xff]  ;;  %v2163_v24 = vld [vmem:[%s6796_s18 + $0x31] sm:$0xff] }
 0x2ea   : >> { %4628 = vrot.lane.b32.xlu1 %v4627_v63, %s5402_s19  ;;  %v2162_v31 = vld [vmem:[%s6796_s18 + $0x21] sm:$0xff]  ;;  %v4647_v43 = vpack.i.bf16 %v2178_v59, %v2177_v55  ;;  %v2164_v7 = vld [vmem:[%s6796_s18 + $0x39] sm:$0xff]  ;;  %v4677_v19 = vpack.i.bf16 %v2180_v26, %v2179_v53  ;;  %v2245_v26 = vld [vmem:[%s6796_s18 + $0x10b] sm:$0xff] }
 0x2eb   : >> { %4618 = vrot.lane.b32.xlu0 %v4617_v44, %s5403_s20  ;;  %v4642_v0 = vpack.i.bf16 %v2162_v31, %v2161_v50  ;;  %v2210_v6 = vld [vmem:[%s6796_s18 + $0xe2] sm:$0xff]  ;;  %v4672_v63 = vpack.i.bf16 %v2164_v7, %v2163_v24  ;;  %v2211_v44 = vld [vmem:[%s6796_s18 + $0xf2] sm:$0xff]  ;;  %v2212_v54 = vld [vmem:[%s6796_s18 + $0xfa] sm:$0xff] }
 0x2ec   : >> { %v2194_v28 = vld [vmem:[%s6796_s18 + $0x22] sm:$0xff]  ;;  %v4657_v21 = vpack.i.bf16 %v2210_v6, %v2209_v1  ;;  %v2195_v42 = vld [vmem:[%s6796_s18 + $0x32] sm:$0xff]  ;;  %v2196_v62 = vld [vmem:[%s6796_s18 + $0x3a] sm:$0xff]  ;;  %v4687_v35 = vpack.i.bf16 %v2212_v54, %v2211_v44 }
 0x2ed   : >> { %v4652_v11 = vpack.i.bf16 %v2194_v28, %v2193_v22  ;;  %v2242_v56 = vld [vmem:[%s6796_s18 + $0xe3] sm:$0xff]  ;;  %v2225_v33 = vld [vmem:[%s6796_s18 + $0x1b] sm:$0xff]  ;;  %v2227_v59 = vld [vmem:[%s6796_s18 + $0x33] sm:$0xff] }
 0x2ee   : >> { %4638 = vrot.lane.b32.xlu1 %v4637_v36, %s5404_s21  ;;  %v2226_v51 = vld [vmem:[%s6796_s18 + $0x23] sm:$0xff]  ;;  %v4667_v58 = vpack.i.bf16 %v2242_v56, %v2241_v16  ;;  %v4682_v36 = vpack.i.bf16 %v2196_v62, %v2195_v42  ;;  %v2244_v55 = vld [vmem:[%s6796_s18 + $0xfb] sm:$0xff]  ;;  %v2182_v6 = vld [vmem:[%s6796_s18 + $0x111] sm:$0xff] }
 0x2ef   : >> { %4633 = vrot.lane.b32.xlu0 %v4632_v37, %s5404_s21  ;;  %v4662_v45 = vpack.i.bf16 %v2226_v51, %v2225_v33  ;;  %v2243_v37 = vld [vmem:[%s6796_s18 + $0xf3] sm:$0xff]  ;;  %v2228_v50 = vld [vmem:[%s6796_s18 + $0x3b] sm:$0xff]  ;;  %v2165_v22 = vld [vmem:[%s6796_s18 + $0x49] sm:$0xff] }
 0x2f0   : >> { %v4697_v31 = vpack.i.bf16 %v2244_v55, %v2243_v37  ;;  %v4692_v1 = vpack.i.bf16 %v2228_v50, %v2227_v59  ;;  %v2166_v28 = vld [vmem:[%s6796_s18 + $0x51] sm:$0xff]  ;;  %v4855_v44 = vld [vmem:[%s6850_s25 + $0x20] sm:$0xff]   ;;  %v2184_v62 = vld [vmem:[%s6796_s18 + $0x129] sm:$0xff] }
 0x2f1   : >> { %v2214_v16 = vld [vmem:[%s6796_s18 + $0x112] sm:$0xff]  ;;  %v2197_v33 = vld [vmem:[%s6796_s18 + $0x4a] sm:$0xff]  ;;  %v4702_v51 = vpack.i.bf16 %v2166_v28, %v2165_v22  ;;  %v2183_v42 = vld [vmem:[%s6796_s18 + $0x121] sm:$0xff] }
 0x2f2   : >> { %4648 = vrot.lane.b32.xlu1 %v4647_v43, %s5403_s20  ;;  %v2181_v43 = vld [vmem:[%s6796_s18 + $0x109] sm:$0xff]  ;;  %v2246_v24 = vld [vmem:[%s6796_s18 + $0x113] sm:$0xff] }
 0x2f3   : >> { %4643 = vrot.lane.b32.xlu0 %v4642_v0, %s5403_s20  ;;  %v4852_v0 = vld [vmem:[%s6850_s25 + $0x38] sm:$0xff]   ;;  %v4707_v56 = vpack.i.bf16 %v2182_v6, %v2181_v43  ;;  %v4727_v54 = vpack.i.bf16 %v2246_v24, %v2245_v26  ;;  %v2168_v37 = vld [vmem:[%s6796_s18 + $0x69] sm:$0xff] }
 0x2f4   : >> { %2932 = vmatpush1.bf16.msra.mxu0 %v4852_v0  ;;  %3857 = vmatpush1.bf16.msra.mxu1 %v4852_v0  ;;  %v4856_v55 = vld [vmem:[%s6850_s25 + $0x18] sm:$0xff]   ;;  %v2255_v59 = vld [vmem:[%s6796_s18 + $0x4] sm:$0xff]  ;;  %v2256_v50 = vld [vmem:[%s6796_s18 + $0xc] sm:$0xff] }
 0x2f5   : >> { %2933 = vmatprep.subr.bf16.mxu0 %v5401_v34  ;;  %3848 = vmatprep.subr.bf16.mxu1 %v5401_v34  ;;  %v2272_v43 = vld [vmem:[%s6796_s18 + $0xcc] sm:$0xff]  ;;  %v2769_v0 = vpack.c.bf16 %v2256_v50, %v2255_v59  ;;  %v2215_v28 = vld [vmem:[%s6796_s18 + $0x122] sm:$0xff]  ;;  %v2201_v59 = vld [vmem:[%s6796_s18 + $0x7a] sm:$0xff] }
 0x2f6   : >> { %4658 = vrot.lane.b32.xlu1 %v4657_v21, %s5402_s19  ;;  %v4853_v21 = vld [vmem:[%s6850_s25 + $0x30] sm:$0xff]   ;;  %v4858_v24 = vld [vmem:[%s6850_s25 + $0x8] sm:$0xff]  }
 0x2f7   : >> { %4653 = vrot.lane.b32.xlu0 %v4652_v11, %s5402_s19  ;;  %v2213_v11 = vld [vmem:[%s6796_s18 + $0x10a] sm:$0xff]  ;;  %3558 = vmatprep.mubr.msk.bf16.mxu0 %vm1992_vm4, %v2769_v0  ;;  %v2202_v50 = vld [vmem:[%s6796_s18 + $0x82] sm:$0xff] }
 0x2f8   : >> { %2934 = vmatpush1.bf16.msra.mxu0 %v4853_v21  ;;  %3858 = vmatpush1.bf16.msra.mxu1 %v4853_v21  ;;  %v4717_v53 = vpack.i.bf16 %v2214_v16, %v2213_v11  ;;  %v2216_v21 = vld [vmem:[%s6796_s18 + $0x12a] sm:$0xff]  ;;  %v2199_v11 = vld [vmem:[%s6796_s18 + $0x62] sm:$0xff]  ;;  %v4772_v0 = vpack.i.bf16 %v2202_v50, %v2201_v59 }
 0x2f9   : >> { %2935 = vmatprep.subr.bf16.mxu0 %v5401_v34  ;;  %3849 = vmatprep.subr.bf16.mxu1 %v5401_v34  ;;  %v2200_v16 = vld [vmem:[%s6796_s18 + $0x6a] sm:$0xff] }
 0x2fa   : >> { %4668 = vrot.lane.b32.xlu1 %v4667_v58, %s5404_s21  ;;  %v2198_v58 = vld [vmem:[%s6796_s18 + $0x52] sm:$0xff]  ;;  %v2173_v59 = vld [vmem:[%s6796_s18 + $0xa9] sm:$0xff] }
 0x2fb   : >> { %4663 = vrot.lane.b32.xlu0 %v4662_v45, %s5404_s21  ;;  %v4854_v45 = vld [vmem:[%s6850_s25 + $0x28] sm:$0xff]   ;;  %v4712_v7 = vpack.i.bf16 %v2198_v58, %v2197_v33  ;;  %v4747_v33 = vpack.i.bf16 %v2216_v21, %v2215_v28  ;;  %v4861_v21 = vld [vmem:[%s6850_s25 + $0x40] sm:$0xff]   ;;  %v2174_v50 = vld [vmem:[%s6796_s18 + $0xb1] sm:$0xff] }
 0x2fc   : >> { %2936 = vmatpush1.bf16.msra.mxu0 %v4854_v45  ;;  %3859 = vmatpush1.bf16.msra.mxu1 %v4854_v45  ;;  %v2247_v58 = vld [vmem:[%s6796_s18 + $0x123] sm:$0xff]  ;;  %v2248_v45 = vld [vmem:[%s6796_s18 + $0x12b] sm:$0xff] }
 0x2fd   : >> { %2937 = vmatprep.subr.bf16.mxu0 %v5401_v34  ;;  %3850 = vmatprep.subr.bf16.mxu1 %v5401_v34  ;;  %v2232_v26 = vld [vmem:[%s6796_s18 + $0x6b] sm:$0xff]  ;;  %v2234_v28 = vld [vmem:[%s6796_s18 + $0x83] sm:$0xff] }
 0x2fe   : >> { %4678 = vrot.lane.b32.xlu1 %v4677_v19, %s5403_s20  ;;  %v2229_v19 = vld [vmem:[%s6796_s18 + $0x4b] sm:$0xff] }
 0x2ff   : >> { %4673 = vrot.lane.b32.xlu0 %v4672_v63, %s5403_s20  ;;  %v2230_v63 = vld [vmem:[%s6796_s18 + $0x53] sm:$0xff] }
 0x300   : >> { %2938 = vmatpush1.bf16.msra.mxu0 %v4855_v44  ;;  %3860 = vmatpush1.bf16.msra.mxu1 %v4855_v44  ;;  %v2186_v44 = vld [vmem:[%s6796_s18 + $0x141] sm:$0xff] }
 0x301   : >> { %2939 = vmatprep.subr.bf16.mxu0 %v5401_v34  ;;  %3851 = vmatprep.subr.bf16.mxu1 %v5401_v34 }
 0x302   : >> { %4688 = vrot.lane.b32.xlu1 %v4687_v35, %s5402_s19  ;;  %v2167_v35 = vld [vmem:[%s6796_s18 + $0x61] sm:$0xff] }
 0x303   : >> { %4683 = vrot.lane.b32.xlu0 %v4682_v36, %s5402_s19  ;;  %v4722_v36 = vpack.i.bf16 %v2230_v63, %v2229_v19  ;;  %v4732_v22 = vpack.i.bf16 %v2168_v37, %v2167_v35  ;;  %v2185_v63 = vld [vmem:[%s6796_s18 + $0x139] sm:$0xff] }
 0x304   : >> { %2940 = vmatpush1.bf16.msra.mxu0 %v4856_v55  ;;  %3861 = vmatpush1.bf16.msra.mxu1 %v4856_v55  ;;  %v4767_v35 = vpack.i.bf16 %v2186_v44, %v2185_v63  ;;  %v2217_v37 = vld [vmem:[%s6796_s18 + $0x13a] sm:$0xff]  ;;  %v2218_v55 = vld [vmem:[%s6796_s18 + $0x142] sm:$0xff] }
 0x305   : >> { %2941 = vmatprep.subr.bf16.mxu0 %v5401_v34  ;;  %3852 = vmatprep.subr.bf16.mxu1 %v5401_v34  ;;  %v2251_v44 = vld [vmem:[%s6796_s18 + $0x153] sm:$0xff] }
 0x306   : >> { %4698 = vrot.lane.b32.xlu1 %v4697_v31, %s5404_s21  ;;  %v2271_v31 = vld [vmem:[%s6796_s18 + $0xc4] sm:$0xff] }
 0x307   : >> { %4693 = vrot.lane.b32.xlu0 %v4692_v1, %s5404_s21  ;;  %v4737_v1 = vpack.i.bf16 %v2184_v62, %v2183_v42  ;;  %v2785_v6 = vpack.c.bf16 %v2272_v43, %v2271_v31  ;;  %v2170_v42 = vld [vmem:[%s6796_s18 + $0x81] sm:$0xff]  ;;  %v4777_v43 = vpack.i.bf16 %v2218_v55, %v2217_v37  ;;  %v2189_v37 = vld [vmem:[%s6796_s18 + $0x169] sm:$0xff]  ;;  %v2190_v55 = vld [vmem:[%s6796_s18 + $0x171] sm:$0xff] }
 0x308   : >> { %v4859_v62 = vld [vmem:[%s6850_s25] sm:$0xff]   ;;  %v4860_v31 = vld [vmem:[%s6850_s25 + $0x48] sm:$0xff]  }
 0x309   : >> { %3566 = vmatprep.mubr.msk.bf16.mxu1 %vm1992_vm4, %v2785_v6  ;;  %v2250_v6 = vld [vmem:[%s6796_s18 + $0x143] sm:$0xff] }
 0x30a   : >> { %4708 = vrot.lane.b32.xlu1 %v4707_v56, %s5403_s20  ;;  %v4857_v56 = vld [vmem:[%s6850_s25 + $0x10] sm:$0xff]  }
 0x30b   : >> { %4703 = vrot.lane.b32.xlu0 %v4702_v51, %s5403_s20  ;;  %v4742_v51 = vpack.i.bf16 %v2200_v16, %v2199_v11  ;;  %2942 = vmatpush1.bf16.msra.mxu0 %v4857_v56 }
 0x30c   : >> { %3862 = vmatpush1.bf16.msra.mxu1 %v4857_v56  ;;  %2943 = vmatprep.subr.bf16.mxu0 %v5401_v34  ;;  %v2187_v56 = vld [vmem:[%s6796_s18 + $0x151] sm:$0xff] }
 0x30d   : >> { %3853 = vmatprep.subr.bf16.mxu1 %v5401_v34 }
 0x30e   : >> { %4718 = vrot.lane.b32.xlu1 %v4717_v53, %s5402_s19  ;;  %v2231_v53 = vld [vmem:[%s6796_s18 + $0x63] sm:$0xff] }
 0x30f   : >> { %4713 = vrot.lane.b32.xlu0 %v4712_v7, %s5402_s19  ;;  %v4757_v7 = vpack.i.bf16 %v2248_v45, %v2247_v58  ;;  %v4752_v19 = vpack.i.bf16 %v2232_v26, %v2231_v53  ;;  %2944 = vmatpush1.bf16.msra.mxu0 %v4858_v24  ;;  %v2172_v58 = vld [vmem:[%s6796_s18 + $0x99] sm:$0xff] }
 0x310   : >> { %3863 = vmatpush1.bf16.msra.mxu1 %v4858_v24  ;;  %2945 = vmatprep.subr.bf16.mxu0 %v5401_v34  ;;  %v2219_v53 = vld [vmem:[%s6796_s18 + $0x152] sm:$0xff]  ;;  %v2220_v26 = vld [vmem:[%s6796_s18 + $0x15a] sm:$0xff] }
 0x311   : >> { %3854 = vmatprep.subr.bf16.mxu1 %v5401_v34  ;;  %v2203_v24 = vld [vmem:[%s6796_s18 + $0x92] sm:$0xff] }
 0x312   : >> { %4728 = vrot.lane.b32.xlu1 %v4727_v54, %s5404_s21  ;;  %v2169_v54 = vld [vmem:[%s6796_s18 + $0x79] sm:$0xff] }
 0x313   : >> { %4723 = vrot.lane.b32.xlu0 %v4722_v36, %s5404_s21  ;;  %v4762_v36 = vpack.i.bf16 %v2170_v42, %v2169_v54  ;;  %2946 = vmatpush1.bf16.msra.mxu0 %v4859_v62  ;;  %v2252_v54 = vld [vmem:[%s6796_s18 + $0x15b] sm:$0xff]  ;;  %v2235_v42 = vld [vmem:[%s6796_s18 + $0x93] sm:$0xff] }
 0x314   : >> { %3864 = vmatpush1.bf16.msra.mxu1 %v4859_v62  ;;  %2959 = vmatprep.subr.bf16.mxu0 %v5401_v34  ;;  %v2236_v62 = vld [vmem:[%s6796_s18 + $0x9b] sm:$0xff] }
 0x315   : >> { %3855 = vmatprep.subr.bf16.mxu1 %v5401_v34 }
 0x316   : >> { %4738 = vrot.lane.b32.xlu1 %v4737_v1, %s5403_s20  ;;  %v2249_v1 = vld [vmem:[%s6796_s18 + $0x13b] sm:$0xff] }
 0x317   : >> { %4733 = vrot.lane.b32.xlu0 %v4732_v22, %s5403_s20  ;;  %v2233_v22 = vld [vmem:[%s6796_s18 + $0x7b] sm:$0xff]  ;;  %2960 = vmatpush2.bf16.msra.mxu0 %v4860_v31  ;;  %v4787_v11 = vpack.i.bf16 %v2250_v6, %v2249_v1  ;;  %v2222_v1 = vld [vmem:[%s6796_s18 + $0x172] sm:$0xff]  ;;  %v2205_v6 = vld [vmem:[%s6796_s18 + $0xaa] sm:$0xff] }
 0x318   : >> { %3865 = vmatpush2.bf16.msra.mxu1 %v4860_v31  ;;  %2961 = vmatprep.subr.bf16.mxu0 %v5401_v34  ;;  %v4782_v16 = vpack.i.bf16 %v2234_v28, %v2233_v22  ;;  %v4827_v31 = vpack.i.bf16 %v2190_v55, %v2189_v37  ;;  %v2206_v22 = vld [vmem:[%s6796_s18 + $0xb2] sm:$0xff]  ;;  %v2273_v37 = vld [vmem:[%s6796_s18 + $0xdc] sm:$0xff]  ;;  %v2274_v55 = vld [vmem:[%s6796_s18 + $0xe4] sm:$0xff] }
 0x319   : >> { %3856 = vmatprep.subr.bf16.mxu1 %v5401_v34 }
 0x31a   : >> { %4748 = vrot.lane.b32.xlu1 %v4747_v33, %s5402_s19  ;;  %v2188_v33 = vld [vmem:[%s6796_s18 + $0x159] sm:$0xff] }
 0x31b   : >> { %4743 = vrot.lane.b32.xlu0 %v4742_v51, %s5402_s19  ;;  %v2171_v51 = vld [vmem:[%s6796_s18 + $0x91] sm:$0xff]  ;;  %2962 = vmatpush2.bf16.msra.mxu0 %v4861_v21  ;;  %v4797_v34 = vpack.i.bf16 %v2188_v33, %v2187_v56 }
 0x31c   : >> { %3866 = vmatpush2.bf16.msra.mxu1 %v4861_v21  ;;  %v4792_v45 = vpack.i.bf16 %v2172_v58, %v2171_v51  ;;  %v4832_v21 = vpack.i.bf16 %v2206_v22, %v2205_v6  ;;  %v2237_v56 = vld [vmem:[%s6796_s18 + $0xab] sm:$0xff]  ;;  %v2238_v33 = vld [vmem:[%s6796_s18 + $0xb3] sm:$0xff] }
 0x31d   : >> { %v4842_v58 = vpack.i.bf16 %v2238_v33, %v2237_v56  ;;  %v2787_v56 = vpack.c.bf16 %v2274_v55, %v2273_v37  ;;  %v2145_v37 = vld [vmem:[%s6796_s18 + $0xd8] sm:$0xff] }
 0x31e   : >> { %4758 = vrot.lane.b32.xlu1 %v4757_v7, %s5404_s21  ;;  %v2204_v7 = vld [vmem:[%s6796_s18 + $0x9a] sm:$0xff] }
 0x31f   : >> { %4753 = vrot.lane.b32.xlu0 %v4752_v19, %s5404_s21  ;;  %v4807_v19 = vpack.i.bf16 %v2220_v26, %v2219_v53  ;;  %v4802_v63 = vpack.i.bf16 %v2204_v7, %v2203_v24  ;;  %v2127_v24 = vld [vmem:[%s6796_s18] sm:$0xff] }
 0x322   : >> { %4768 = vrot.lane.b32.xlu1 %v4767_v35, %s5403_s20  ;;  %v4817_v35 = vpack.i.bf16 %v2252_v54, %v2251_v44  ;;  %v2143_v44 = vld [vmem:[%s6796_s18 + $0xc0] sm:$0xff]  ;;  %v2144_v54 = vld [vmem:[%s6796_s18 + $0xc8] sm:$0xff] }
 0x323   : >> { %4763 = vrot.lane.b32.xlu0 %v4762_v36, %s5403_s20  ;;  %v4812_v36 = vpack.i.bf16 %v2236_v62, %v2235_v42 }
 0x326   : >> { %4778 = vrot.lane.b32.xlu1 %v4777_v43, %s5402_s19  ;;  %v4822_v43 = vpack.i.bf16 %v2174_v50, %v2173_v59 }
 0x327   : >> { %4773 = vrot.lane.b32.xlu0 %v4772_v0, %s5402_s19  ;;  %v2221_v0 = vld [vmem:[%s6796_s18 + $0x16a] sm:$0xff] }
 0x328   : >> { %v4837_v28 = vpack.i.bf16 %v2222_v1, %v2221_v0 }
 0x32a   : >> { %4788 = vrot.lane.b32.xlu1 %v4787_v11, %s5404_s21  ;;  %v2253_v11 = vld [vmem:[%s6796_s18 + $0x16b] sm:$0xff] }
 0x32b   : >> { %4783 = vrot.lane.b32.xlu0 %v4782_v16, %s5404_s21  ;;  %v2254_v16 = vld [vmem:[%s6796_s18 + $0x173] sm:$0xff] }
 0x32c   : >> { %v4847_v51 = vpack.i.bf16 %v2254_v16, %v2253_v11  ;;  %v2257_v11 = vld [vmem:[%s6796_s18 + $0x1c] sm:$0xff]  ;;  %v2258_v16 = vld [vmem:[%s6796_s18 + $0x24] sm:$0xff] }
 0x32e   : >> { %4798 = vrot.lane.b32.xlu1 %v4797_v34, %s5403_s20 }
 0x32f   : >> { %4793 = vrot.lane.b32.xlu0 %v4792_v45, %s5403_s20 }
 0x332   : >> { %4808 = vrot.lane.b32.xlu1 %v4807_v19, %s5402_s19  ;;  %v2128_v19 = vld [vmem:[%s6796_s18 + $0x8] sm:$0xff] }
 0x333   : >> { %4803 = vrot.lane.b32.xlu0 %v4802_v63, %s5402_s19 }
 0x336   : >> { %4818 = vrot.lane.b32.xlu1 %v4817_v35, %s5404_s21 }
 0x337   : >> { %4813 = vrot.lane.b32.xlu0 %v4812_v36, %s5404_s21 }
 0x33a   : >> { %4828 = vrot.lane.b32.xlu1 %v4827_v31, %s5403_s20 }
 0x33b   : >> { %4823 = vrot.lane.b32.xlu0 %v4822_v43, %s5403_s20 }
 0x33e   : >> { %4838 = vrot.lane.b32.xlu1 %v4837_v28, %s5402_s19 }
 0x33f   : >> { %4833 = vrot.lane.b32.xlu0 %v4832_v21, %s5402_s19 }
 0x342   : >> { %4848 = vrot.lane.b32.xlu1 %v4847_v51, %s5404_s21 }
 0x343   : >> { %4843 = vrot.lane.b32.xlu0 %v4842_v58, %s5404_s21 }
 0x358   : >> { %v4624_v34 = vpop.permute.xlu1 %4623 }
 0x359   : >> { %v4614_v45 = vpop.permute.xlu0 %4613  ;;  %v4626_v59 = vunpack.i.h.bf16 %v4624_v34  ;;  %v4625_v50 = vunpack.i.l.bf16 %v4624_v34 }
 0x35a   : >> { %v4616_v53 = vunpack.i.h.bf16 %v4614_v45  ;;  %v4615_v26 = vunpack.i.l.bf16 %v4614_v45 }
 0x35c   : >> { %v4629_v7 = vpop.permute.xlu1 %4628  ;;  %v2671_v31 = vsel %vm1992_vm4, %v2127_v24, %v4615_v26  ;;  %v2672_v43 = vsel %vm1992_vm4, %v2128_v19, %v4616_v53 }
 0x35d   : >> { %v4619_v63 = vpop.permute.xlu0 %4618  ;;  %v4631_v42 = vunpack.i.h.bf16 %v4629_v7  ;;  %v4630_v62 = vunpack.i.l.bf16 %v4629_v7  ;;  %v2703_v45 = vsel %vm693_vm2, %v2671_v31, %v4625_v50  ;;  %v2704_v53 = vsel %vm693_vm2, %v2672_v43, %v4626_v59  ;;  %v2146_v59 = vld [vmem:[%s6796_s18 + $0xe0] sm:$0xff] }
 0x35e   : >> { %v4621_v35 = vunpack.i.h.bf16 %v4619_v63  ;;  %v4620_v36 = vunpack.i.l.bf16 %v4619_v63 }
 0x360   : >> { %v2687_v0 = vsel %vm1992_vm4, %v2143_v44, %v4620_v36  ;;  %v2688_v1 = vsel %vm1992_vm4, %v2144_v54, %v4621_v35  ;;  %v4639_v6 = vpop.permute.xlu1 %4638  ;;  %v2771_v54 = vpack.c.bf16 %v2258_v16, %v2257_v11 }
 0x361   : >> { %v4641_v22 = vunpack.i.h.bf16 %v4639_v6  ;;  %v4640_v28 = vunpack.i.l.bf16 %v4639_v6  ;;  %v4634_v21 = vpop.permute.xlu0 %4633  ;;  %v2719_v33 = vsel %vm693_vm2, %v2687_v0, %v4630_v62  ;;  %v2720_v51 = vsel %vm693_vm2, %v2688_v1, %v4631_v42  ;;  %v2275_v0 = vld [vmem:[%s6796_s18 + $0xf4] sm:$0xff]  ;;  %v2276_v1 = vld [vmem:[%s6796_s18 + $0xfc] sm:$0xff] }
 0x362   : >> { %v4636_v58 = vunpack.i.h.bf16 %v4634_v21  ;;  %v4635_v34 = vunpack.i.l.bf16 %v4634_v21  ;;  %v2129_v6 = vld [vmem:[%s6796_s18 + $0x18] sm:$0xff] }
 0x363   : >> { %v2752_v26 = vsel %vm2735_vm6, %v2719_v33, %v4640_v28  ;;  %v2753_v24 = vsel %vm2735_vm6, %v2720_v51, %v4641_v22  ;;  %v2130_v22 = vld [vmem:[%s6796_s18 + $0x20] sm:$0xff] }
 0x364   : >> { %v4649_v7 = vpop.permute.xlu1 %4648  ;;  %v2736_v19 = vsel %vm2735_vm6, %v2703_v45, %v4635_v34  ;;  %v2737_v63 = vsel %vm2735_vm6, %v2704_v53, %v4636_v58  ;;  %v2784_v44 = vpack.c.bf16 %v2753_v24, %v2752_v26  ;;  %v2789_v58 = vpack.c.bf16 %v2276_v1, %v2275_v0 }
 0x365   : >> { %v4644_v42 = vpop.permute.xlu0 %4643  ;;  %v2768_v62 = vpack.c.bf16 %v2737_v63, %v2736_v19  ;;  %v4651_v35 = vunpack.i.h.bf16 %v4649_v7  ;;  %v4650_v36 = vunpack.i.l.bf16 %v4649_v7  ;;  %v2259_v7 = vld [vmem:[%s6796_s18 + $0x34] sm:$0xff]  ;;  %v2260_v19 = vld [vmem:[%s6796_s18 + $0x3c] sm:$0xff] }
 0x366   : >> { %3028 = vmatmul.mubr.bf16.vlgmr.msra.gmra.mxu1 %v2784_v44  ;;  %v4646_v50 = vunpack.i.h.bf16 %v4644_v42  ;;  %v4645_v31 = vunpack.i.l.bf16 %v4644_v42 }
 0x367   : >> { %2964 = vmatmul.mubr.bf16.vlgmr.msra.gmra.mxu0 %v2768_v62  ;;  %3567 = vmatprep.mubr.msk.bf16.mxu1 %vm1992_vm4, %v2787_v56  ;;  %v2689_v56 = vsel %vm1992_vm4, %v2145_v37, %v4650_v36  ;;  %v2690_v33 = vsel %vm1992_vm4, %v2146_v59, %v4651_v35 }
 0x368   : >> { %v4659_v55 = vpop.permute.xlu1 %4658  ;;  %3559 = vmatprep.mubr.msk.bf16.mxu0 %vm1992_vm4, %v2771_v54  ;;  %v2673_v34 = vsel %vm1992_vm4, %v2129_v6, %v4645_v31  ;;  %v2674_v45 = vsel %vm1992_vm4, %v2130_v22, %v4646_v50 }
 0x369   : >> { %v4654_v43 = vpop.permute.xlu0 %4653  ;;  %v4661_v28 = vunpack.i.h.bf16 %v4659_v55  ;;  %v4660_v21 = vunpack.i.l.bf16 %v4659_v55 }
 0x36a   : >> { %v4656_v11 = vunpack.i.h.bf16 %v4654_v43  ;;  %v4655_v16 = vunpack.i.l.bf16 %v4654_v43  ;;  %v2773_v43 = vpack.c.bf16 %v2260_v19, %v2259_v7 }
 0x36b   : >> { %v2721_v63 = vsel %vm693_vm2, %v2689_v56, %v4660_v21  ;;  %v2722_v44 = vsel %vm693_vm2, %v2690_v33, %v4661_v28  ;;  %v2147_v28 = vld [vmem:[%s6796_s18 + $0xf0] sm:$0xff] }
 0x36c   : >> { %v4669_v51 = vpop.permute.xlu1 %4668  ;;  %v2705_v62 = vsel %vm693_vm2, %v2673_v34, %v4655_v16  ;;  %v2706_v35 = vsel %vm693_vm2, %v2674_v45, %v4656_v11  ;;  %v2148_v11 = vld [vmem:[%s6796_s18 + $0xf8] sm:$0xff]  ;;  %v2131_v45 = vld [vmem:[%s6796_s18 + $0x30] sm:$0xff] }
 0x36d   : >> { %v4671_v53 = vunpack.i.h.bf16 %v4669_v51  ;;  %v4670_v26 = vunpack.i.l.bf16 %v4669_v51  ;;  %v4664_v24 = vpop.permute.xlu0 %4663  ;;  %v2277_v51 = vld [vmem:[%s6796_s18 + $0x10c] sm:$0xff]  ;;  %v2278_v34 = vld [vmem:[%s6796_s18 + $0x114] sm:$0xff] }
 0x36e   : >> { %v4666_v54 = vunpack.i.h.bf16 %v4664_v24  ;;  %v4665_v42 = vunpack.i.l.bf16 %v4664_v24 }
 0x36f   : >> { %v2754_v36 = vsel %vm2735_vm6, %v2721_v63, %v4670_v26  ;;  %v2755_v37 = vsel %vm2735_vm6, %v2722_v44, %v4671_v53  ;;  %v2132_v53 = vld [vmem:[%s6796_s18 + $0x38] sm:$0xff] }
 0x370   : >> { %v4679_v55 = vpop.permute.xlu1 %4678  ;;  %v2738_v59 = vsel %vm2735_vm6, %v2705_v62, %v4665_v42  ;;  %v2739_v50 = vsel %vm2735_vm6, %v2706_v35, %v4666_v54  ;;  %v2786_v31 = vpack.c.bf16 %v2755_v37, %v2754_v36  ;;  %v2791_v54 = vpack.c.bf16 %v2278_v34, %v2277_v51 }
 0x371   : >> { %v4674_v0 = vpop.permute.xlu0 %4673  ;;  %v2770_v1 = vpack.c.bf16 %v2739_v50, %v2738_v59  ;;  %v4681_v6 = vunpack.i.h.bf16 %v4679_v55  ;;  %v4680_v22 = vunpack.i.l.bf16 %v4679_v55  ;;  %v2261_v55 = vld [vmem:[%s6796_s18 + $0x4c] sm:$0xff]  ;;  %v2262_v59 = vld [vmem:[%s6796_s18 + $0x54] sm:$0xff] }
 0x372   : >> { %3036 = vmatmul.mubr.bf16.gmra.mxu1 %v2786_v31  ;;  %v4676_v16 = vunpack.i.h.bf16 %v4674_v0  ;;  %v4675_v56 = vunpack.i.l.bf16 %v4674_v0 }
 0x373   : >> { %2972 = vmatmul.mubr.bf16.gmra.mxu0 %v2770_v1  ;;  %3568 = vmatprep.mubr.msk.bf16.mxu1 %vm1992_vm4, %v2789_v58  ;;  %v2691_v19 = vsel %vm1992_vm4, %v2147_v28, %v4680_v22  ;;  %v2692_v63 = vsel %vm1992_vm4, %v2148_v11, %v4681_v6 }
 0x374   : >> { %v4689_v21 = vpop.permute.xlu1 %4688  ;;  %3560 = vmatprep.mubr.msk.bf16.mxu0 %vm1992_vm4, %v2773_v43  ;;  %v2675_v42 = vsel %vm1992_vm4, %v2131_v45, %v4675_v56  ;;  %v2676_v62 = vsel %vm1992_vm4, %v2132_v53, %v4676_v16 }
 0x375   : >> { %v4684_v33 = vpop.permute.xlu0 %4683  ;;  %v4691_v26 = vunpack.i.h.bf16 %v4689_v21  ;;  %v4690_v24 = vunpack.i.l.bf16 %v4689_v21 }
 0x376   : >> { %v4686_v7 = vunpack.i.h.bf16 %v4684_v33  ;;  %v4685_v58 = vunpack.i.l.bf16 %v4684_v33  ;;  %v2775_v33 = vpack.c.bf16 %v2262_v59, %v2261_v55 }
 0x377   : >> { %v2723_v50 = vsel %vm693_vm2, %v2691_v19, %v4690_v24  ;;  %v2724_v31 = vsel %vm693_vm2, %v2692_v63, %v4691_v26  ;;  %v2149_v26 = vld [vmem:[%s6796_s18 + $0x108] sm:$0xff] }
 0x378   : >> { %v4699_v44 = vpop.permute.xlu1 %4698  ;;  %v2707_v1 = vsel %vm693_vm2, %v2675_v42, %v4685_v58  ;;  %v2708_v6 = vsel %vm693_vm2, %v2676_v62, %v4686_v7  ;;  %v2150_v7 = vld [vmem:[%s6796_s18 + $0x110] sm:$0xff]  ;;  %v2133_v62 = vld [vmem:[%s6796_s18 + $0x48] sm:$0xff] }
 0x379   : >> { %v4701_v35 = vunpack.i.h.bf16 %v4699_v44  ;;  %v4700_v36 = vunpack.i.l.bf16 %v4699_v44  ;;  %v4694_v37 = vpop.permute.xlu0 %4693  ;;  %v2279_v44 = vld [vmem:[%s6796_s18 + $0x124] sm:$0xff]  ;;  %v2280_v42 = vld [vmem:[%s6796_s18 + $0x12c] sm:$0xff] }
 0x37a   : >> { %v4696_v43 = vunpack.i.h.bf16 %v4694_v37  ;;  %v4695_v0 = vunpack.i.l.bf16 %v4694_v37 }
 0x37b   : >> { %v2756_v22 = vsel %vm2735_vm6, %v2723_v50, %v4700_v36  ;;  %v2757_v28 = vsel %vm2735_vm6, %v2724_v31, %v4701_v35  ;;  %v2134_v35 = vld [vmem:[%s6796_s18 + $0x50] sm:$0xff] }
 0x37c   : >> { %v4709_v21 = vpop.permute.xlu1 %4708  ;;  %v2740_v11 = vsel %vm2735_vm6, %v2707_v1, %v4695_v0  ;;  %v2741_v16 = vsel %vm2735_vm6, %v2708_v6, %v4696_v43  ;;  %v2788_v56 = vpack.c.bf16 %v2757_v28, %v2756_v22  ;;  %v2793_v43 = vpack.c.bf16 %v2280_v42, %v2279_v44 }
 0x37d   : >> { %v4704_v51 = vpop.permute.xlu0 %4703  ;;  %v2772_v34 = vpack.c.bf16 %v2741_v16, %v2740_v11  ;;  %v4711_v45 = vunpack.i.h.bf16 %v4709_v21  ;;  %v4710_v53 = vunpack.i.l.bf16 %v4709_v21  ;;  %v2263_v21 = vld [vmem:[%s6796_s18 + $0x64] sm:$0xff]  ;;  %v2264_v11 = vld [vmem:[%s6796_s18 + $0x6c] sm:$0xff] }
 0x37e   : >> { %3044 = vmatmul.mubr.bf16.gmra.mxu1 %v2788_v56  ;;  %v4706_v58 = vunpack.i.h.bf16 %v4704_v51  ;;  %v4705_v19 = vunpack.i.l.bf16 %v4704_v51 }
 0x37f   : >> { %2980 = vmatmul.mubr.bf16.gmra.mxu0 %v2772_v34  ;;  %3569 = vmatprep.mubr.msk.bf16.mxu1 %vm1992_vm4, %v2791_v54  ;;  %v2693_v59 = vsel %vm1992_vm4, %v2149_v26, %v4710_v53  ;;  %v2694_v50 = vsel %vm1992_vm4, %v2150_v7, %v4711_v45 }
 0x380   : >> { %v4719_v24 = vpop.permute.xlu1 %4718  ;;  %3561 = vmatprep.mubr.msk.bf16.mxu0 %vm1992_vm4, %v2775_v33  ;;  %v2677_v0 = vsel %vm1992_vm4, %v2133_v62, %v4705_v19  ;;  %v2678_v1 = vsel %vm1992_vm4, %v2134_v35, %v4706_v58 }
 0x381   : >> { %v4714_v63 = vpop.permute.xlu0 %4713  ;;  %v4721_v36 = vunpack.i.h.bf16 %v4719_v24  ;;  %v4720_v37 = vunpack.i.l.bf16 %v4719_v24 }
 0x382   : >> { %v4716_v55 = vunpack.i.h.bf16 %v4714_v63  ;;  %v4715_v54 = vunpack.i.l.bf16 %v4714_v63  ;;  %v2777_v63 = vpack.c.bf16 %v2264_v11, %v2263_v21 }
 0x383   : >> { %v2725_v16 = vsel %vm693_vm2, %v2693_v59, %v4720_v37  ;;  %v2726_v56 = vsel %vm693_vm2, %v2694_v50, %v4721_v36  ;;  %v2151_v36 = vld [vmem:[%s6796_s18 + $0x120] sm:$0xff] }
 0x384   : >> { %v4729_v31 = vpop.permute.xlu1 %4728  ;;  %v2709_v34 = vsel %vm693_vm2, %v2677_v0, %v4715_v54  ;;  %v2710_v45 = vsel %vm693_vm2, %v2678_v1, %v4716_v55  ;;  %v2152_v55 = vld [vmem:[%s6796_s18 + $0x128] sm:$0xff]  ;;  %v2135_v1 = vld [vmem:[%s6796_s18 + $0x60] sm:$0xff] }
 0x385   : >> { %v4731_v6 = vunpack.i.h.bf16 %v4729_v31  ;;  %v4730_v22 = vunpack.i.l.bf16 %v4729_v31  ;;  %v4724_v28 = vpop.permute.xlu0 %4723  ;;  %v2281_v31 = vld [vmem:[%s6796_s18 + $0x13c] sm:$0xff]  ;;  %v2282_v0 = vld [vmem:[%s6796_s18 + $0x144] sm:$0xff] }
 0x386   : >> { %v4726_v33 = vunpack.i.h.bf16 %v4724_v28  ;;  %v4725_v51 = vunpack.i.l.bf16 %v4724_v28 }
 0x387   : >> { %v2758_v53 = vsel %vm2735_vm6, %v2725_v16, %v4730_v22  ;;  %v2759_v26 = vsel %vm2735_vm6, %v2726_v56, %v4731_v6  ;;  %v2136_v6 = vld [vmem:[%s6796_s18 + $0x68] sm:$0xff] }
 0x388   : >> { %v4739_v24 = vpop.permute.xlu1 %4738  ;;  %v2742_v7 = vsel %vm2735_vm6, %v2709_v34, %v4725_v51  ;;  %v2743_v58 = vsel %vm2735_vm6, %v2710_v45, %v4726_v33  ;;  %v2790_v19 = vpack.c.bf16 %v2759_v26, %v2758_v53  ;;  %v2795_v33 = vpack.c.bf16 %v2282_v0, %v2281_v31 }
 0x389   : >> { %v4734_v44 = vpop.permute.xlu0 %4733  ;;  %v2774_v42 = vpack.c.bf16 %v2743_v58, %v2742_v7  ;;  %v4741_v62 = vunpack.i.h.bf16 %v4739_v24  ;;  %v4740_v35 = vunpack.i.l.bf16 %v4739_v24  ;;  %v2265_v24 = vld [vmem:[%s6796_s18 + $0x7c] sm:$0xff]  ;;  %v2266_v7 = vld [vmem:[%s6796_s18 + $0x84] sm:$0xff] }
 0x38a   : >> { %3052 = vmatmul.mubr.bf16.gmra.mxu1 %v2790_v19  ;;  %v4736_v54 = vunpack.i.h.bf16 %v4734_v44  ;;  %v4735_v59 = vunpack.i.l.bf16 %v4734_v44 }
 0x38b   : >> { %2988 = vmatmul.mubr.bf16.gmra.mxu0 %v2774_v42  ;;  %3570 = vmatprep.mubr.msk.bf16.mxu1 %vm1992_vm4, %v2793_v43  ;;  %v2695_v11 = vsel %vm1992_vm4, %v2151_v36, %v4740_v35  ;;  %v2696_v16 = vsel %vm1992_vm4, %v2152_v55, %v4741_v62 }
 0x38c   : >> { %v4749_v37 = vpop.permute.xlu1 %4748  ;;  %3562 = vmatprep.mubr.msk.bf16.mxu0 %vm1992_vm4, %v2777_v63  ;;  %v2679_v51 = vsel %vm1992_vm4, %v2135_v1, %v4735_v59  ;;  %v2680_v34 = vsel %vm1992_vm4, %v2136_v6, %v4736_v54 }
 0x38d   : >> { %v4744_v50 = vpop.permute.xlu0 %4743  ;;  %v4751_v22 = vunpack.i.h.bf16 %v4749_v37  ;;  %v4750_v28 = vunpack.i.l.bf16 %v4749_v37 }
 0x38e   : >> { %v4746_v21 = vunpack.i.h.bf16 %v4744_v50  ;;  %v4745_v43 = vunpack.i.l.bf16 %v4744_v50  ;;  %v2779_v50 = vpack.c.bf16 %v2266_v7, %v2265_v24 }
 0x38f   : >> { %v2727_v58 = vsel %vm693_vm2, %v2695_v11, %v4750_v28  ;;  %v2728_v19 = vsel %vm693_vm2, %v2696_v16, %v4751_v22  ;;  %v2153_v22 = vld [vmem:[%s6796_s18 + $0x138] sm:$0xff] }
 0x390   : >> { %v4759_v56 = vpop.permute.xlu1 %4758  ;;  %v2711_v42 = vsel %vm693_vm2, %v2679_v51, %v4745_v43  ;;  %v2712_v62 = vsel %vm693_vm2, %v2680_v34, %v4746_v21  ;;  %v2154_v21 = vld [vmem:[%s6796_s18 + $0x140] sm:$0xff]  ;;  %v2137_v34 = vld [vmem:[%s6796_s18 + $0x78] sm:$0xff] }
 0x391   : >> { %v4761_v45 = vunpack.i.h.bf16 %v4759_v56  ;;  %v4760_v53 = vunpack.i.l.bf16 %v4759_v56  ;;  %v4754_v26 = vpop.permute.xlu0 %4753  ;;  %v2283_v56 = vld [vmem:[%s6796_s18 + $0x154] sm:$0xff]  ;;  %v2284_v51 = vld [vmem:[%s6796_s18 + $0x15c] sm:$0xff] }
 0x392   : >> { %v4756_v63 = vunpack.i.h.bf16 %v4754_v26  ;;  %v4755_v44 = vunpack.i.l.bf16 %v4754_v26 }
 0x393   : >> { %v2760_v35 = vsel %vm2735_vm6, %v2727_v58, %v4760_v53  ;;  %v2761_v36 = vsel %vm2735_vm6, %v2728_v19, %v4761_v45  ;;  %v2138_v45 = vld [vmem:[%s6796_s18 + $0x80] sm:$0xff] }
 0x394   : >> { %v4769_v37 = vpop.permute.xlu1 %4768  ;;  %v2744_v55 = vsel %vm2735_vm6, %v2711_v42, %v4755_v44  ;;  %v2745_v54 = vsel %vm2735_vm6, %v2712_v62, %v4756_v63  ;;  %v2792_v59 = vpack.c.bf16 %v2761_v36, %v2760_v35  ;;  %v2797_v63 = vpack.c.bf16 %v2284_v51, %v2283_v56 }
 0x395   : >> { %v4764_v31 = vpop.permute.xlu0 %4763  ;;  %v2776_v0 = vpack.c.bf16 %v2745_v54, %v2744_v55  ;;  %v4771_v1 = vunpack.i.h.bf16 %v4769_v37  ;;  %v4770_v6 = vunpack.i.l.bf16 %v4769_v37  ;;  %v2267_v37 = vld [vmem:[%s6796_s18 + $0x94] sm:$0xff]  ;;  %v2268_v55 = vld [vmem:[%s6796_s18 + $0x9c] sm:$0xff] }
 0x396   : >> { %3060 = vmatmul.mubr.bf16.gmra.mxu1 %v2792_v59  ;;  %v4766_v43 = vunpack.i.h.bf16 %v4764_v31  ;;  %v4765_v11 = vunpack.i.l.bf16 %v4764_v31 }
 0x397   : >> { %2996 = vmatmul.mubr.bf16.gmra.mxu0 %v2776_v0  ;;  %3571 = vmatprep.mubr.msk.bf16.mxu1 %vm1992_vm4, %v2795_v33  ;;  %v2697_v7 = vsel %vm1992_vm4, %v2153_v22, %v4770_v6  ;;  %v2698_v58 = vsel %vm1992_vm4, %v2154_v21, %v4771_v1 }
 0x398   : >> { %v4779_v28 = vpop.permute.xlu1 %4778  ;;  %3563 = vmatprep.mubr.msk.bf16.mxu0 %vm1992_vm4, %v2779_v50  ;;  %v2681_v44 = vsel %vm1992_vm4, %v2137_v34, %v4765_v11  ;;  %v2682_v42 = vsel %vm1992_vm4, %v2138_v45, %v4766_v43 }
 0x399   : >> { %v4774_v16 = vpop.permute.xlu0 %4773  ;;  %v4781_v53 = vunpack.i.h.bf16 %v4779_v28  ;;  %v4780_v26 = vunpack.i.l.bf16 %v4779_v28 }
 0x39a   : >> { %v4776_v24 = vunpack.i.h.bf16 %v4774_v16  ;;  %v4775_v33 = vunpack.i.l.bf16 %v4774_v16  ;;  %v2781_v16 = vpack.c.bf16 %v2268_v55, %v2267_v37 }
 0x39b   : >> { %v2729_v54 = vsel %vm693_vm2, %v2697_v7, %v4780_v26  ;;  %v2730_v59 = vsel %vm693_vm2, %v2698_v58, %v4781_v53  ;;  %v2155_v53 = vld [vmem:[%s6796_s18 + $0x150] sm:$0xff] }
 0x39c   : >> { %v4789_v19 = vpop.permute.xlu1 %4788  ;;  %v2713_v0 = vsel %vm693_vm2, %v2681_v44, %v4775_v33  ;;  %v2714_v1 = vsel %vm693_vm2, %v2682_v42, %v4776_v24  ;;  %v2156_v24 = vld [vmem:[%s6796_s18 + $0x158] sm:$0xff]  ;;  %v2139_v42 = vld [vmem:[%s6796_s18 + $0x90] sm:$0xff] }
 0x39d   : >> { %v4791_v62 = vunpack.i.h.bf16 %v4789_v19  ;;  %v4790_v35 = vunpack.i.l.bf16 %v4789_v19  ;;  %v4784_v36 = vpop.permute.xlu0 %4783  ;;  %v2285_v19 = vld [vmem:[%s6796_s18 + $0x16c] sm:$0xff]  ;;  %v2286_v44 = vld [vmem:[%s6796_s18 + $0x174] sm:$0xff] }
 0x39e   : >> { %v4786_v50 = vunpack.i.h.bf16 %v4784_v36  ;;  %v4785_v31 = vunpack.i.l.bf16 %v4784_v36 }
 0x39f   : >> { %v2762_v6 = vsel %vm2735_vm6, %v2729_v54, %v4790_v35  ;;  %v2763_v22 = vsel %vm2735_vm6, %v2730_v59, %v4791_v62  ;;  %v2140_v62 = vld [vmem:[%s6796_s18 + $0x98] sm:$0xff] }
 0x3a0   : >> { %v4799_v28 = vpop.permute.xlu1 %4798  ;;  %v2746_v21 = vsel %vm2735_vm6, %v2713_v0, %v4785_v31  ;;  %v2747_v43 = vsel %vm2735_vm6, %v2714_v1, %v4786_v50  ;;  %v2794_v11 = vpack.c.bf16 %v2763_v22, %v2762_v6  ;;  %v2799_v50 = vpack.c.bf16 %v2286_v44, %v2285_v19 }
 0x3a1   : >> { %v4794_v56 = vpop.permute.xlu0 %4793  ;;  %v2778_v51 = vpack.c.bf16 %v2747_v43, %v2746_v21  ;;  %v4801_v34 = vunpack.i.h.bf16 %v4799_v28  ;;  %v4800_v45 = vunpack.i.l.bf16 %v4799_v28  ;;  %v2269_v28 = vld [vmem:[%s6796_s18 + $0xac] sm:$0xff]  ;;  %v2270_v21 = vld [vmem:[%s6796_s18 + $0xb4] sm:$0xff] }
 0x3a2   : >> { %3068 = vmatmul.mubr.bf16.gmra.mxu1 %v2794_v11  ;;  %v4796_v33 = vunpack.i.h.bf16 %v4794_v56  ;;  %v4795_v7 = vunpack.i.l.bf16 %v4794_v56 }
 0x3a3   : >> { %3004 = vmatmul.mubr.bf16.gmra.mxu0 %v2778_v51  ;;  %3572 = vmatprep.mubr.msk.bf16.mxu1 %vm1992_vm4, %v2797_v63  ;;  %v2699_v55 = vsel %vm1992_vm4, %v2155_v53, %v4800_v45  ;;  %v2700_v54 = vsel %vm1992_vm4, %v2156_v24, %v4801_v34 }
 0x3a4   : >> { %v4809_v26 = vpop.permute.xlu1 %4808  ;;  %3564 = vmatprep.mubr.msk.bf16.mxu0 %vm1992_vm4, %v2781_v16  ;;  %v2683_v31 = vsel %vm1992_vm4, %v2139_v42, %v4795_v7  ;;  %v2684_v0 = vsel %vm1992_vm4, %v2140_v62, %v4796_v33 }
 0x3a5   : >> { %v4804_v58 = vpop.permute.xlu0 %4803  ;;  %v4811_v35 = vunpack.i.h.bf16 %v4809_v26  ;;  %v4810_v36 = vunpack.i.l.bf16 %v4809_v26 }
 0x3a6   : >> { %v4806_v37 = vunpack.i.h.bf16 %v4804_v58  ;;  %v4805_v63 = vunpack.i.l.bf16 %v4804_v58  ;;  %v2783_v58 = vpack.c.bf16 %v2270_v21, %v2269_v28 }
 0x3a7   : >> { %v2731_v43 = vsel %vm693_vm2, %v2699_v55, %v4810_v36  ;;  %v2732_v11 = vsel %vm693_vm2, %v2700_v54, %v4811_v35  ;;  %v2157_v36 = vld [vmem:[%s6796_s18 + $0x168] sm:$0xff] }
 0x3a8   : >> { %v4819_v59 = vpop.permute.xlu1 %4818  ;;  %v2715_v51 = vsel %vm693_vm2, %v2683_v31, %v4805_v63  ;;  %v2716_v34 = vsel %vm693_vm2, %v2684_v0, %v4806_v37  ;;  %v2158_v37 = vld [vmem:[%s6796_s18 + $0x170] sm:$0xff] }
 0x3a9   : >> { %v4821_v1 = vunpack.i.h.bf16 %v4819_v59  ;;  %v4820_v6 = vunpack.i.l.bf16 %v4819_v59  ;;  %v4814_v22 = vpop.permute.xlu0 %4813  ;;  %v2141_v59 = vld [vmem:[%s6796_s18 + $0xa8] sm:$0xff]  ;;  %v2142_v31 = vld [vmem:[%s6796_s18 + $0xb0] sm:$0xff] }
 0x3aa   : >> { %v4816_v16 = vunpack.i.h.bf16 %v4814_v22  ;;  %v4815_v56 = vunpack.i.l.bf16 %v4814_v22 }
 0x3ab   : >> { %v2764_v45 = vsel %vm2735_vm6, %v2731_v43, %v4820_v6  ;;  %v2765_v53 = vsel %vm2735_vm6, %v2732_v11, %v4821_v1 }
 0x3ac   : >> { %v4829_v26 = vpop.permute.xlu1 %4828  ;;  %v2748_v24 = vsel %vm2735_vm6, %v2715_v51, %v4815_v56  ;;  %v2749_v33 = vsel %vm2735_vm6, %v2716_v34, %v4816_v16  ;;  %v2796_v7 = vpack.c.bf16 %v2765_v53, %v2764_v45 }
 0x3ad   : >> { %v4824_v19 = vpop.permute.xlu0 %4823  ;;  %v2780_v44 = vpack.c.bf16 %v2749_v33, %v2748_v24  ;;  %v4831_v42 = vunpack.i.h.bf16 %v4829_v26  ;;  %v4830_v62 = vunpack.i.l.bf16 %v4829_v26 }
 0x3ae   : >> { %3076 = vmatmul.mubr.bf16.gmra.mxu1 %v2796_v7  ;;  %v4826_v63 = vunpack.i.h.bf16 %v4824_v19  ;;  %v4825_v55 = vunpack.i.l.bf16 %v4824_v19 }
 0x3af   : >> { %3012 = vmatmul.mubr.bf16.gmra.mxu0 %v2780_v44  ;;  %3573 = vmatprep.mubr.msk.bf16.mxu1 %vm1992_vm4, %v2799_v50  ;;  %v2701_v28 = vsel %vm1992_vm4, %v2157_v36, %v4830_v62  ;;  %v2702_v50 = vsel %vm1992_vm4, %v2158_v37, %v4831_v42 }
 0x3b0   : >> { %v4839_v35 = vpop.permute.xlu1 %4838  ;;  %3565 = vmatprep.mubr.msk.bf16.mxu0 %vm1992_vm4, %v2783_v58  ;;  %v2685_v43 = vsel %vm1992_vm4, %v2141_v59, %v4825_v55  ;;  %v2686_v11 = vsel %vm1992_vm4, %v2142_v31, %v4826_v63 }
 0x3b1   : >> { %v4834_v54 = vpop.permute.xlu0 %4833  ;;  %v4841_v0 = vunpack.i.h.bf16 %v4839_v35  ;;  %v4840_v1 = vunpack.i.l.bf16 %v4839_v35 }
 0x3b2   : >> { %v4836_v6 = vunpack.i.h.bf16 %v4834_v54  ;;  %v4835_v22 = vunpack.i.l.bf16 %v4834_v54 }
 0x3b3   : >> { %v2733_v34 = vsel %vm693_vm2, %v2701_v28, %v4840_v1  ;;  %v2734_v45 = vsel %vm693_vm2, %v2702_v50, %v4841_v0 }
 0x3b4   : >> { %v4849_v21 = vpop.permute.xlu1 %4848  ;;  %v2717_v24 = vsel %vm693_vm2, %v2685_v43, %v4835_v22  ;;  %v2718_v33 = vsel %vm693_vm2, %v2686_v11, %v4836_v6 }
 0x3b5   : >> { %v4851_v16 = vunpack.i.h.bf16 %v4849_v21  ;;  %v4850_v56 = vunpack.i.l.bf16 %v4849_v21  ;;  %v4844_v51 = vpop.permute.xlu0 %4843 }
 0x3b6   : >> { %v4846_v53 = vunpack.i.h.bf16 %v4844_v51  ;;  %v4845_v26 = vunpack.i.l.bf16 %v4844_v51 }
 0x3b7   : >> { %v2766_v7 = vsel %vm2735_vm6, %v2733_v34, %v4850_v56  ;;  %v2767_v58 = vsel %vm2735_vm6, %v2734_v45, %v4851_v16 }
 0x3b8   : >> { %v2750_v19 = vsel %vm2735_vm6, %v2717_v24, %v4845_v26  ;;  %v2751_v44 = vsel %vm2735_vm6, %v2718_v33, %v4846_v53  ;;  %v2798_v42 = vpack.c.bf16 %v2767_v58, %v2766_v7 }
 0x3b9   : >> { %v2782_v62 = vpack.c.bf16 %v2751_v44, %v2750_v19 }
 0x3ba   : >> { %3084 = vmatmul.mubr.bf16.gmra.mxu1 %v2798_v42 }
 0x3bb   : >> { %3020 = vmatmul.mubr.bf16.gmra.mxu0 %v2782_v62 }
 0x426   : >> { %v3029_v35 = vpop.f32.mrf.mxu1 }
 0x427   : >> { %v2965_v36 = vpop.f32.mrf.mxu0  ;;  %v7153_v4 = vadd.f32 %v5328_v4, %v3029_v35  }
 0x428   : >> { %v7156_v3 = vadd.f32 %v5392_v3, %v2965_v36   ;;  %v3031_v55 = vpop.f32.mrf.mxu1 }
 0x429   : >> { %v7544_v37 = vmov %v7153_v4  ;;  %v2967_v54 = vpop.f32.mrf.mxu0 }
 0x42a   : >> { %v7545_v63 = vmov %v7156_v3  ;;  %v3032_v59 = vpop.f32.mrf.mxu1 }
 0x42b   : >> { %v2968_v31 = vpop.f32.mrf.mxu0  ;;  %v7159_v15 = vadd.f32 %v5324_v15, %v3032_v59  }
 0x42c   : >> { %v7162_v12 = vadd.f32 %v5388_v12, %v2968_v31   ;;  %v3034_v6 = vpop.f32.mrf.mxu1 }
 0x42d   : >> { %v7546_v0 = vmov %v7159_v15  ;;  %v2970_v22 = vpop.f32.mrf.mxu0 }
 0x42e   : >> { %v7547_v1 = vmov %v7162_v12 }
 0x432   : >> { %v3037_v28 = vpop.f32.mrf.mxu1 }
 0x433   : >> { %v2973_v50 = vpop.f32.mrf.mxu0  ;;  %v7165_v25 = vadd.f32 %v5320_v25, %v3037_v28  }
 0x434   : >> { %v7168_v17 = vadd.f32 %v5384_v17, %v2973_v50   ;;  %v3039_v4 = vpop.f32.mrf.mxu1 }
 0x435   : >> { %v7548_v21 = vmov %v7165_v25  ;;  %v2975_v3 = vpop.f32.mrf.mxu0 }
 0x436   : >> { %v7549_v43 = vmov %v7168_v17  ;;  %v3040_v11 = vpop.f32.mrf.mxu1 }
 0x437   : >> { %v2976_v16 = vpop.f32.mrf.mxu0  ;;  %v7171_v27 = vadd.f32 %v5316_v27, %v3040_v11  }
 0x438   : >> { %v7174_v20 = vadd.f32 %v5380_v20, %v2976_v16   ;;  %v3042_v15 = vpop.f32.mrf.mxu1 }
 0x439   : >> { %v7550_v56 = vmov %v7171_v27  ;;  %v2978_v12 = vpop.f32.mrf.mxu0 }
 0x43a   : >> { %v7551_v51 = vmov %v7174_v20 }
 0x43e   : >> { %v3045_v34 = vpop.f32.mrf.mxu1 }
 0x43f   : >> { %v2981_v45 = vpop.f32.mrf.mxu0  ;;  %v7177_v18 = vadd.f32 %v5312_v18, %v3045_v34  }
 0x440   : >> { %v7180_v2 = vadd.f32 %v5376_v2, %v2981_v45   ;;  %v3047_v25 = vpop.f32.mrf.mxu1 }
 0x441   : >> { %v7552_v53 = vmov %v7177_v18  ;;  %v2983_v17 = vpop.f32.mrf.mxu0 }
 0x442   : >> { %v7553_v26 = vmov %v7180_v2  ;;  %v3048_v24 = vpop.f32.mrf.mxu1 }
 0x443   : >> { %v2984_v33 = vpop.f32.mrf.mxu0  ;;  %v7183_v9 = vadd.f32 %v5308_v9, %v3048_v24  }
 0x444   : >> { %v7186_v29 = vadd.f32 %v5372_v29, %v2984_v33   ;;  %v3050_v27 = vpop.f32.mrf.mxu1 }
 0x445   : >> { %v7554_v7 = vmov %v7183_v9  ;;  %v2986_v20 = vpop.f32.mrf.mxu0 }
 0x446   : >> { %v7555_v58 = vmov %v7186_v29 }
 0x44a   : >> { %v3053_v19 = vpop.f32.mrf.mxu1 }
 0x44b   : >> { %v2989_v44 = vpop.f32.mrf.mxu0  ;;  %v7189_v30 = vadd.f32 %v5304_v30, %v3053_v19  }
 0x44c   : >> { %v7192_v13 = vadd.f32 %v5368_v13, %v2989_v44   ;;  %v3055_v18 = vpop.f32.mrf.mxu1 }
 0x44d   : >> { %v7556_v42 = vmov %v7189_v30  ;;  %v2991_v2 = vpop.f32.mrf.mxu0 }
 0x44e   : >> { %v7557_v62 = vmov %v7192_v13  ;;  %v3056_v35 = vpop.f32.mrf.mxu1 }
 0x44f   : >> { %v2992_v36 = vpop.f32.mrf.mxu0  ;;  %v7195_v14 = vadd.f32 %v5300_v14, %v3056_v35  }
 0x450   : >> { %v7198_v8 = vadd.f32 %v5364_v8, %v2992_v36   ;;  %v3058_v9 = vpop.f32.mrf.mxu1 }
 0x451   : >> { %v7558_v55 = vmov %v7195_v14  ;;  %v2994_v29 = vpop.f32.mrf.mxu0 }
 0x452   : >> { %v7559_v54 = vmov %v7198_v8 }
 0x456   : >> { %v3061_v59 = vpop.f32.mrf.mxu1 }
 0x457   : >> { %v2997_v31 = vpop.f32.mrf.mxu0  ;;  %v7201_v10 = vadd.f32 %v5296_v10, %v3061_v59  }
 0x458   : >> { %v7204_v47 = vadd.f32 %v5360_v47, %v2997_v31   ;;  %v3063_v30 = vpop.f32.mrf.mxu1 }
 0x459   : >> { %v7560_v6 = vmov %v7201_v10  ;;  %v2999_v13 = vpop.f32.mrf.mxu0  ;;  %v7592_v30 = vmov %v7556_v42 }
 0x45a   : >> { %v7561_v22 = vmov %v7204_v47  ;;  %v3064_v28 = vpop.f32.mrf.mxu1  ;;  %v7608_v13 = vmov %v7557_v62 }
 0x45b   : >> { %v3000_v50 = vpop.f32.mrf.mxu0  ;;  %v7207_v23 = vadd.f32 %v5292_v23, %v3064_v28  }
 0x45c   : >> { %v7210_v41 = vadd.f32 %v5356_v41, %v3000_v50   ;;  %v3066_v14 = vpop.f32.mrf.mxu1 }
 0x45d   : >> { %v7562_v11 = vmov %v7207_v23  ;;  %v3002_v8 = vpop.f32.mrf.mxu0  ;;  %v7591_v14 = vmov %v7558_v55 }
 0x45e   : >> { %v7563_v16 = vmov %v7210_v41  ;;  %v7607_v8 = vmov %v7559_v54 }
 0x462   : >> { %v3069_v4 = vpop.f32.mrf.mxu1 }
 0x463   : >> { %v3005_v3 = vpop.f32.mrf.mxu0  ;;  %v7213_v5 = vadd.f32 %v5288_v5, %v3069_v4   ;;  %v7598_v4 = vmov %v7544_v37 }
 0x464   : >> { %v7216_v61 = vadd.f32 %v5352_v61, %v3005_v3   ;;  %v3071_v10 = vpop.f32.mrf.mxu1  ;;  %v7614_v3 = vmov %v7545_v63 }
 0x465   : >> { %v7564_v34 = vmov %v7213_v5  ;;  %v3007_v47 = vpop.f32.mrf.mxu0  ;;  %v7590_v10 = vmov %v7560_v6  ;;  %v3574_v3 = vld [vmem:[#allocation4] ss:$0 sm:$0xff] (%p7251_p5) }
 0x466   : >> { %v7565_v45 = vmov %v7216_v61  ;;  %v3072_v15 = vpop.f32.mrf.mxu1  ;;  %v7606_v47 = vmov %v7561_v22  ;;  %v3149_v30 = vadd.f32 (%p7251_p5), %v3574_v3, %v7548_v21  ;;  %v3150_v13 = vadd.f32 (%p7251_p5), %v3574_v3, %v7550_v56 }
 0x467   : >> { %v3008_v12 = vpop.f32.mrf.mxu0  ;;  %v7219_v57 = vadd.f32 %v5284_v57, %v3072_v15   ;;  %v7597_v15 = vmov %v7546_v0 }
 0x468   : >> { %v7222_v52 = vadd.f32 %v5348_v52, %v3008_v12   ;;  %v3074_v23 = vpop.f32.mrf.mxu1  ;;  %v7613_v12 = vmov %v7547_v1  ;;  %3182 = vst.msk [vmem:[%s5473_s17 + $0x90] sm:$0xff] (%p7251_p5), %vm3163_vm7, %v3149_v30  ;;  %3183 = vst.msk [vmem:[%s5473_s17 + $0x98] sm:$0xff] (%p7251_p5), %vm3163_vm7, %v3150_v13 }
 0x469   : >> { %7566 = vst [vmem:[#allocation7_spill] sm:$0xff] %v7219_v57  ;;  %v7567_v24 = vmov %v7219_v57  ;;  %v3010_v41 = vpop.f32.mrf.mxu0  ;;  %v7589_v23 = vmov %v7562_v11 }
 0x46a   : >> { %v7568_v33 = vmov %v7222_v52  ;;  %v7605_v41 = vmov %v7563_v16 }
 0x46e   : >> { %v3077_v25 = vpop.f32.mrf.mxu1 }
 0x46f   : >> { %v3013_v17 = vpop.f32.mrf.mxu0  ;;  %v7225_v48 = vadd.f32 %v5280_v48, %v3077_v25   ;;  %v7596_v25 = vmov %v7548_v21  ;;  %v3153_v21 = vadd.f32 (%p7251_p5), %v3574_v3, %v7556_v42  ;;  %v3157_v42 = vadd.f32 (%p7251_p5), %v3574_v3, %v7564_v34 }
 0x470   : >> { %v7228_v46 = vadd.f32 %v5344_v46, %v3013_v17   ;;  %v3079_v5 = vpop.f32.mrf.mxu1  ;;  %v7612_v17 = vmov %v7549_v43 }
 0x471   : >> { %7569 = vst [vmem:[#allocation9_spill] sm:$0xff] %v7225_v48  ;;  %v7570_v19 = vmov %v7225_v48  ;;  %v3015_v61 = vpop.f32.mrf.mxu0  ;;  %v7588_v5 = vmov %v7564_v34  ;;  %3186 = vst.msk [vmem:[%s5473_s17 + $0xb0] sm:$0xff] (%p7251_p5), %vm3163_vm7, %v3153_v21 }
 0x472   : >> { %v7571_v44 = vmov %v7228_v46  ;;  %v3080_v27 = vpop.f32.mrf.mxu1  ;;  %v7604_v61 = vmov %v7565_v45  ;;  %3190 = vst.msk [vmem:[%s5473_s17 + $0xd0] sm:$0xff] (%p7251_p5), %vm3163_vm7, %v3157_v42 }
 0x473   : >> { %v3016_v20 = vpop.f32.mrf.mxu0  ;;  %v7231_v38 = vadd.f32 %v5276_v38, %v3080_v27   ;;  %v7595_v27 = vmov %v7550_v56  ;;  %v3154_v56 = vadd.f32 (%p7251_p5), %v3574_v3, %v7558_v55  ;;  %v7616_v55 = vld [vmem:[#allocation7_spill] sm:$0xff] (%p7251_p5) }
 0x474   : >> { %v7234_v40 = vadd.f32 %v5340_v40, %v3016_v20   ;;  %v3082_v57 = vpop.f32.mrf.mxu1  ;;  %v7611_v20 = vmov %v7551_v51 }
 0x475   : >> { %7572 = vst [vmem:[#allocation6_spill] sm:$0xff] %v7231_v38  ;;  %v7573_v35 = vmov %v7231_v38  ;;  %v3018_v52 = vpop.f32.mrf.mxu0  ;;  %v7587_v57 = vmov %v7567_v24  ;;  %v3135_v24 = vadd.f32 (%p7251_p5), %v3574_v3, %v7553_v26  ;;  %3187 = vst.msk [vmem:[%s5473_s17 + $0xb8] sm:$0xff] (%p7251_p5), %vm3163_vm7, %v3154_v56 }
 0x476   : >> { %v7574_v36 = vmov %v7234_v40  ;;  %v7603_v52 = vmov %v7568_v33 }
 0x477   : > { %3168 = vst.msk [vmem:[%s5473_s17 + $0x20] sm:$0xff] (%p7251_p5), %vm3163_vm7, %v3135_v24 }
 0x478   : > { %v7617_v14 = vld [vmem:[#allocation9_spill] sm:$0xff] (%p7251_p5) }
 0x47a   : >> { %v3085_v18 = vpop.f32.mrf.mxu1 }
 0x47b   : >> { %v3021_v2 = vpop.f32.mrf.mxu0  ;;  %v7237_v32 = vadd.f32 %v5272_v32, %v3085_v18   ;;  %v7594_v18 = vmov %v7552_v53 }
 0x47c   : >> { %v7240_v39 = vadd.f32 %v5336_v39, %v3021_v2   ;;  %v3087_v48 = vpop.f32.mrf.mxu1  ;;  %v7610_v2 = vmov %v7553_v26  ;;  %v3144_v26 = vadd.f32 (%p7251_p5), %v3574_v3, %v7574_v36  ;;  %v7618_v8 = vld [vmem:[#allocation6_spill] sm:$0xff] (%p7251_p5) }
 0x47d   : >> { %7575 = vst [vmem:[#allocation8_spill] sm:$0xff] %v7237_v32  ;;  %v3023_v46 = vpop.f32.mrf.mxu0  ;;  %v7583_v59 = vmov %v7237_v32  ;;  %v7586_v48 = vmov %v7570_v19  ;;  %v3134_v19 = vadd.f32 (%p7251_p5), %v3574_v3, %v7551_v51  ;;  %v3143_v51 = vadd.f32 (%p7251_p5), %v3574_v3, %v7571_v44 }
 0x47e   : >> { %v7577_v31 = vmov %v7240_v39  ;;  %v3088_v9 = vpop.f32.mrf.mxu1  ;;  %v7584_v32 = vmov %v7583_v59  ;;  %v7602_v46 = vmov %v7571_v44  ;;  %v3132_v59 = vadd.f32 (%p7251_p5), %v3574_v3, %v7547_v1  ;;  %3177 = vst.msk [vmem:[%s5473_s17 + $0x68] sm:$0xff] (%p7251_p5), %vm3163_vm7, %v3144_v26 }
 0x47f   : >> { %v3024_v29 = vpop.f32.mrf.mxu0  ;;  %v7243_v60 = vadd.f32 %v5268_v60, %v3088_v9   ;;  %v7593_v9 = vmov %v7554_v7  ;;  %v7600_v39 = vmov %v7577_v31  ;;  %2091 = sbr.rel (!%p7251_p5) target bundleno = 733 (0x2dd), region = 109  ;;  %v3137_v32 = vadd.f32 (%p7251_p5), %v3574_v3, %v7557_v62  ;;  %3167 = vst.msk [vmem:[%s5473_s17 + $0x18] sm:$0xff] (%p7251_p5), %vm3163_vm7, %v3134_v19  ;;  %3176 = vst.msk [vmem:[%s5473_s17 + $0x60] sm:$0xff] (%p7251_p5), %vm3163_vm7, %v3143_v51 }
 0x480   : >> { %v7246_v49 = vadd.f32 %v5332_v49, %v3024_v29   ;;  %v3090_v38 = vpop.f32.mrf.mxu1  ;;  %v7609_v29 = vmov %v7555_v58  ;;  %3165 = vst.msk [vmem:[%s5473_s17 + $0x8] sm:$0xff] (%p7251_p5), %vm3163_vm7, %v3132_v59  ;;  %v3139_v39 = vadd.f32 (%p7251_p5), %v3574_v3, %v7561_v22  ;;  %v3141_v1 = vadd.f32 (%p7251_p5), %v3574_v3, %v7565_v45 }
 0x481   : >> { %7578 = vst [vmem:[#allocation10_spill] sm:$0xff] %v7243_v60  ;;  %v7579_v28 = vmov %v7243_v60  ;;  %v3026_v40 = vpop.f32.mrf.mxu0  ;;  %v7585_v38 = vmov %v7573_v35  ;;  %v3133_v35 = vadd.f32 (%p7251_p5), %v3574_v3, %v7549_v43  ;;  %v3142_v43 = vadd.f32 (%p7251_p5), %v3574_v3, %v7568_v33  ;;  %3170 = vst.msk [vmem:[%s5473_s17 + $0x30] sm:$0xff] (%p7251_p5), %vm3163_vm7, %v3137_v32 }
 0x482   : >> { %v7580_v50 = vmov %v7246_v49  ;;  %v7582_v60 = vmov %v7579_v28  ;;  %v7601_v40 = vmov %v7574_v36  ;;  %v3131_v28 = vadd.f32 (%p7251_p5), %v3574_v3, %v7545_v63  ;;  %3172 = vst.msk [vmem:[%s5473_s17 + $0x40] sm:$0xff] (%p7251_p5), %vm3163_vm7, %v3139_v39  ;;  %3174 = vst.msk [vmem:[%s5473_s17 + $0x50] sm:$0xff] (%p7251_p5), %vm3163_vm7, %v3141_v1 }
 0x483   : >> { %v7599_v49 = vmov %v7580_v50  ;;  %v3136_v60 = vadd.f32 (%p7251_p5), %v3574_v3, %v7555_v58  ;;  %3166 = vst.msk [vmem:[%s5473_s17 + $0x10] sm:$0xff] (%p7251_p5), %vm3163_vm7, %v3133_v35  ;;  %v3140_v63 = vadd.f32 (%p7251_p5), %v3574_v3, %v7563_v16  ;;  %v3145_v58 = vadd.f32 (%p7251_p5), %v3574_v3, %v7577_v31  ;;  %3175 = vst.msk [vmem:[%s5473_s17 + $0x58] sm:$0xff] (%p7251_p5), %vm3163_vm7, %v3142_v43 }
 0x484   : > { %v3138_v49 = vadd.f32 %v3574_v3, %v7559_v54  ;;  %3164 = vst.msk [vmem:[%s5473_s17] sm:$0xff] %vm3163_vm7, %v3131_v28  ;;  %v3146_v62 = vadd.f32 %v3574_v3, %v7580_v50  ;;  %v3147_v54 = vadd.f32 %v3574_v3, %v7544_v37  ;;  %v3148_v22 = vadd.f32 %v3574_v3, %v7546_v0 }
 0x485   : > { %3169 = vst.msk [vmem:[%s5473_s17 + $0x28] sm:$0xff] %vm3163_vm7, %v3136_v60  ;;  %3173 = vst.msk [vmem:[%s5473_s17 + $0x48] sm:$0xff] %vm3163_vm7, %v3140_v63  ;;  %v3151_v37 = vadd.f32 %v3574_v3, %v7552_v53  ;;  %v3152_v0 = vadd.f32 %v3574_v3, %v7554_v7  ;;  %v3155_v53 = vadd.f32 %v3574_v3, %v7560_v6 }
 0x486   : > { %3171 = vst.msk [vmem:[%s5473_s17 + $0x38] sm:$0xff] %vm3163_vm7, %v3138_v49  ;;  %3178 = vst.msk [vmem:[%s5473_s17 + $0x70] sm:$0xff] %vm3163_vm7, %v3145_v58  ;;  %v3156_v7 = vadd.f32 %v3574_v3, %v7562_v11  ;;  %v3158_v16 = vadd.f32 %v3574_v3, %v7616_v55  ;;  %v3159_v6 = vadd.f32 %v3574_v3, %v7617_v14  ;;  %v7619_v11 = vld [vmem:[#allocation8_spill] sm:$0xff] }
 0x487   : > { %3179 = vst.msk [vmem:[%s5473_s17 + $0x78] sm:$0xff] %vm3163_vm7, %v3146_v62  ;;  %3180 = vst.msk [vmem:[%s5473_s17 + $0x80] sm:$0xff] %vm3163_vm7, %v3147_v54  ;;  %v3160_v4 = vadd.f32 %v3574_v3, %v7618_v8  ;;  %v3161_v45 = vadd.f32 %v3574_v3, %v7619_v11 }
 0x488   : > { %3181 = vst.msk [vmem:[%s5473_s17 + $0x88] sm:$0xff] %vm3163_vm7, %v3148_v22  ;;  %3184 = vst.msk [vmem:[%s5473_s17 + $0xa0] sm:$0xff] %vm3163_vm7, %v3151_v37  ;;  %v7620_v10 = vld [vmem:[#allocation10_spill] sm:$0xff] }
 0x489   : > { %3185 = vst.msk [vmem:[%s5473_s17 + $0xa8] sm:$0xff] %vm3163_vm7, %v3152_v0  ;;  %v3162_v34 = vadd.f32 %v3574_v3, %v7620_v10  ;;  %3188 = vst.msk [vmem:[%s5473_s17 + $0xc0] sm:$0xff] %vm3163_vm7, %v3155_v53 }
 0x48a   : > { %3189 = vst.msk [vmem:[%s5473_s17 + $0xc8] sm:$0xff] %vm3163_vm7, %v3156_v7  ;;  %3191 = vst.msk [vmem:[%s5473_s17 + $0xd8] sm:$0xff] %vm3163_vm7, %v3158_v16 }
 0x48b   : > { %3192 = vst.msk [vmem:[%s5473_s17 + $0xe0] sm:$0xff] %vm3163_vm7, %v3159_v6  ;;  %3193 = vst.msk [vmem:[%s5473_s17 + $0xe8] sm:$0xff] %vm3163_vm7, %v3160_v4 }
 0x48c   : > { %3194 = vst.msk [vmem:[%s5473_s17 + $0xf0] sm:$0xff] %vm3163_vm7, %v3161_v45  ;;  %3195 = vst.msk [vmem:[%s5473_s17 + $0xf8] sm:$0xff] %vm3163_vm7, %v3162_v34 }
 0x48d PF: > { %s19_s26 = sadd.s32 1, %s5132_s26  }
 0x48e   : > { %p16_p6 = scmp.ge.s32.totalorder %s19_s26, 4  }
 0x490   :  { %18 = sbr.rel (!%p16_p6) target bundleno = 3 (0x3), region = 120 }

</bundles_post_ra>
